<compile_context>
chip_gen: v7x
topology: tpu7x:2x2x1
jax: 0.10.0
libtpu: 0.0.40
codegen_flags: <defaults>
</compile_context>

<pallas_src>
import functools

import jax
import jax.numpy as jnp
from jax.experimental import pallas as pl
from jax.experimental.pallas import tpu as pltpu


def _layernorm(x, gamma, beta, eps=1e-5):
    mu = jnp.mean(x, axis=-1, keepdims=True)
    var = jnp.mean(jnp.square(x - mu), axis=-1, keepdims=True)
    return (x - mu) * jax.lax.rsqrt(var + eps) * gamma + beta


def encoder_layer_kernel(x_ref, wqkv_ref, bqkv_ref, wo_ref, bo_ref,
                         g1_ref, be1_ref, w1_ref, fb1_ref, w2_ref, fb2_ref,
                         g2_ref, be2_ref, o_ref, attn_scratch, *, nhead):
    x = x_ref[...]                                  # (S, D) f32
    S, D = x.shape
    Dh = D // nhead
    scale = 1.0 / (Dh ** 0.5)

    x_bf = x.astype(jnp.bfloat16)

    # --- fused QKV projection: one full-width bf16 MXU matmul, f32 accumulate ---
    qkv = jnp.dot(x_bf, wqkv_ref[...],
                  preferred_element_type=jnp.float32) + bqkv_ref[0]   # (S, 3D)

    # --- causal additive mask built in-kernel (zero HBM traffic) ---
    row = jax.lax.broadcasted_iota(jnp.int32, (S, S), 0)
    col = jax.lax.broadcasted_iota(jnp.int32, (S, S), 1)
    causal = col <= row

    # --- per-head attention; concat assembled in VMEM scratch ---
    # TODO(synk): for long sequences (S >= ~1k) this should become a
    # flash-style KV-tiled online softmax with causal tile skipping.
    for h in range(nhead):
        lo = h * Dh
        qh = qkv[:, lo:lo + Dh] * scale
        kh = qkv[:, D + lo:D + lo + Dh]
        vh = qkv[:, 2 * D + lo:2 * D + lo + Dh]
        s = jax.lax.dot_general(                      # q @ k^T without transpose op
            qh.astype(jnp.bfloat16), kh.astype(jnp.bfloat16),
            dimension_numbers=(((1,), (1,)), ((), ())),
            preferred_element_type=jnp.float32)       # (S, S) f32
        s = jnp.where(causal, s, -1e30)
        s = s - jnp.max(s, axis=-1, keepdims=True)
        p = jnp.exp(s)
        p = p * pl.reciprocal(jnp.sum(p, axis=-1, keepdims=True), approx=True)
        oh = jnp.dot(p.astype(jnp.bfloat16), vh.astype(jnp.bfloat16),
                     preferred_element_type=jnp.float32)              # (S, Dh)
        attn_scratch[:, lo:lo + Dh] = oh

    # single full-width output projection (S, D) @ (D, D)
    attn = jnp.dot(attn_scratch[...].astype(jnp.bfloat16), wo_ref[...],
                   preferred_element_type=jnp.float32) + bo_ref[0]

    # residual + post-LayerNorm 1 (f32 statistics)
    x = _layernorm(x + attn, g1_ref[0], be1_ref[0])

    # --- feed-forward (ReLU), bf16 matmuls with f32 accumulation ---
    # TODO(synk): for very large d_model on v7x (64 MiB VMEM) tile the FFN over
    # d_ff with a grid axis + VMEM accumulator instead of full-array weight blocks.
    h1 = jnp.dot(x.astype(jnp.bfloat16), w1_ref[...],
                 preferred_element_type=jnp.float32) + fb1_ref[0]
    h1 = jnp.maximum(h1, 0.0)
    ff = jnp.dot(h1.astype(jnp.bfloat16), w2_ref[...],
                 preferred_element_type=jnp.float32) + fb2_ref[0]

    # residual + post-LayerNorm 2, one lane-dense f32 store
    o_ref[...] = _layernorm(x + ff, g2_ref[0], be2_ref[0])


def linear_kernel(x_ref, w_ref, b_ref, o_ref):
    o_ref[...] = (jnp.dot(x_ref[...].astype(jnp.bfloat16), w_ref[...],
                          preferred_element_type=jnp.float32)
                  + b_ref[0]).astype(o_ref.dtype)


def encoder_layer(x, p, nhead):
    B, S, D = x.shape
    F = p["w1"].shape[1]

    def full(shape):
        return pl.BlockSpec(shape, lambda b: (0,) * len(shape))

    in_specs = [
        pl.BlockSpec((None, S, D), lambda b: (b, 0, 0)),    # x (batch squeezed)
        full((D, 3 * D)), full((1, 3 * D)),                 # wqkv, bqkv
        full((D, D)), full((1, D)),                         # wo, bo
        full((1, D)), full((1, D)),                         # ln1 gamma/beta
        full((D, F)), full((1, F)),                         # w1, b1
        full((F, D)), full((1, D)),                         # w2, b2
        full((1, D)), full((1, D)),                         # ln2 gamma/beta
    ]
    return pl.pallas_call(
        functools.partial(encoder_layer_kernel, nhead=nhead),
        out_shape=jax.ShapeDtypeStruct((B, S, D), jnp.float32),
        grid=(B,),
        in_specs=in_specs,
        out_specs=pl.BlockSpec((None, S, D), lambda b: (b, 0, 0)),
        scratch_shapes=[pltpu.VMEM((S, D), jnp.float32)],
        compiler_params=pltpu.CompilerParams(dimension_semantics=("parallel",)),
    )(x, p["wqkv"], p["bqkv"], p["wo"], p["bo"],
      p["ln1_g"], p["ln1_b"], p["w1"], p["b1"], p["w2"], p["b2"],
      p["ln2_g"], p["ln2_b"])


def _pick_vocab_tile(V, prefer=(2048, 1024, 512, 256, 128)):
    for t in prefer:
        if V % t == 0:
            return t
    return V


def fc_out(x, w, b):
    B, S, D = x.shape
    V = w.shape[1]
    tV = _pick_vocab_tile(V)
    return pl.pallas_call(
        linear_kernel,
        out_shape=jax.ShapeDtypeStruct((B, S, V), jnp.float32),
        grid=(B, V // tV),
        in_specs=[pl.BlockSpec((None, S, D), lambda b, j: (b, 0, 0)),
                  pl.BlockSpec((D, tV), lambda b, j: (0, j)),
                  pl.BlockSpec((1, tV), lambda b, j: (0, j))],
        out_specs=pl.BlockSpec((None, S, tV), lambda b, j: (b, 0, j)),
        compiler_params=pltpu.CompilerParams(
            dimension_semantics=("parallel", "parallel")),
    )(x, w, b)


def init_params(key, vocab_size, d_model, nhead, num_layers, d_ff):
    keys = jax.random.split(key, 3 + num_layers)
    scale = 0.02
    bf = jnp.bfloat16
    params = {
        "embedding": scale * jax.random.normal(keys[0], (vocab_size, d_model), jnp.float32),
        "pos": scale * jax.random.normal(keys[1], (1024, d_model), jnp.float32),
        "fc_w": (scale * jax.random.normal(keys[2], (d_model, vocab_size), jnp.float32)).astype(bf),
        "fc_b": jnp.zeros((1, vocab_size), jnp.float32),
        "layers": [],
    }
    for l in range(num_layers):
        lk = jax.random.split(keys[3 + l], 4)
        layer = {
            "wqkv": (scale * jax.random.normal(lk[0], (d_model, 3 * d_model), jnp.float32)).astype(bf),
            "bqkv": jnp.zeros((1, 3 * d_model), jnp.float32),
            "wo": (scale * jax.random.normal(lk[1], (d_model, d_model), jnp.float32)).astype(bf),
            "bo": jnp.zeros((1, d_model), jnp.float32),
            "ln1_g": jnp.ones((1, d_model), jnp.float32),
            "ln1_b": jnp.zeros((1, d_model), jnp.float32),
            "w1": (scale * jax.random.normal(lk[2], (d_model, d_ff), jnp.float32)).astype(bf),
            "b1": jnp.zeros((1, d_ff), jnp.float32),
            "w2": (scale * jax.random.normal(lk[3], (d_ff, d_model), jnp.float32)).astype(bf),
            "b2": jnp.zeros((1, d_model), jnp.float32),
            "ln2_g": jnp.ones((1, d_model), jnp.float32),
            "ln2_b": jnp.zeros((1, d_model), jnp.float32),
        }
        params["layers"].append(layer)
    return params


def transformer_forward(src, params, *, nhead):
    B, S = src.shape
    # glue: embedding gathers + positional add (no clean small-scale Pallas gather)
    emb = jnp.take(params["embedding"], src, axis=0)           # (B, S, D)
    pos = params["pos"][:S][None]                              # (1, S, D)
    x = emb + pos
    for layer_p in params["layers"]:
        x = encoder_layer(x, layer_p, nhead)
    return fc_out(x, params["fc_w"], params["fc_b"])


if __name__ == "__main__":
    # small, layout-friendly shapes consistent with the module
    # (d_model divisible by nhead; D multiple of 128; S multiple of 8)
    vocab_size, d_model, nhead, num_layers = 384, 128, 4, 2
    d_ff = 4 * d_model
    B, S = 2, 16

    key = jax.random.PRNGKey(0)
    pkey, skey = jax.random.split(key)
    params = init_params(pkey, vocab_size, d_model, nhead, num_layers, d_ff)
    src = jax.random.randint(skey, (B, S), 0, vocab_size, dtype=jnp.int32)

    fwd = jax.jit(functools.partial(transformer_forward, nhead=nhead))
    logits = fwd(src, params)
    jax.block_until_ready(logits)
    assert logits.shape == (B, S, vocab_size)
    assert bool(jnp.all(jnp.isfinite(logits)))
    # TODO(synk): dropout layers are treated as identity (eval-mode semantics).
    print("KERNEL_OK")
</pallas_src>

<mosaic_0001>
module attributes {stable_mosaic.version = 11 : i64} {
  func.func @linear_kernel(%arg0: i32, %arg1: i32, %arg2: memref<1x16x128xf32, #tpu.memory_space<vmem>>, %arg3: memref<128x128xbf16, #tpu.memory_space<vmem>>, %arg4: memref<1x128xf32, #tpu.memory_space<vmem>>, %arg5: memref<1x16x128xf32, #tpu.memory_space<vmem>>) attributes {dimension_semantics = [#tpu.dimension_semantics<parallel>, #tpu.dimension_semantics<parallel>], iteration_bounds = array<i64: 2, 3>, scalar_prefetch = 0 : i64, scratch_operands = 0 : i64, tpu.core_type = #tpu.core_type<tc>, window_params = [{transform_indices = @transform_0, window_bounds = array<i64: 1, 16, 128>}, {transform_indices = @transform_1, window_bounds = array<i64: 128, 128>}, {transform_indices = @transform_2, window_bounds = array<i64: 1, 128>}, {transform_indices = @transform_3, window_bounds = array<i64: 1, 16, 128>}]} {
    %c0 = arith.constant 0 : index
    %c0_0 = arith.constant 0 : index
    %c0_1 = arith.constant 0 : index
    %0 = vector.load %arg2[%c0, %c0_0, %c0_1] : memref<1x16x128xf32, #tpu.memory_space<vmem>>, vector<1x16x128xf32>
    %1 = vector.shape_cast %0 : vector<1x16x128xf32> to vector<16x128xf32>
    %2 = arith.truncf %1 : vector<16x128xf32> to vector<16x128xbf16>
    %c0_2 = arith.constant 0 : index
    %c0_3 = arith.constant 0 : index
    %3 = vector.load %arg3[%c0_2, %c0_3] : memref<128x128xbf16, #tpu.memory_space<vmem>>, vector<128x128xbf16>
    %cst = arith.constant dense<0.000000e+00> : vector<16x128xf32>
    %4 = tpu.matmul %2, %3, %cst {dimension_numbers = #tpu.dot_dimension_numbers<[1], [0], [0], [1], [0, 0, 1, 1], [], []>} : vector<16x128xbf16>, vector<128x128xbf16>, vector<16x128xf32> -> vector<16x128xf32>
    %c0_4 = arith.constant 0 : index
    %c0_5 = arith.constant 0 : index
    %5 = vector.load %arg4[%c0_4, %c0_5] : memref<1x128xf32, #tpu.memory_space<vmem>>, vector<1x128xf32>
    %6 = vector.shape_cast %5 : vector<1x128xf32> to vector<128xf32>
    %7 = vector.shape_cast %6 : vector<128xf32> to vector<1x128xf32>
    %8 = vector.broadcast %7 : vector<1x128xf32> to vector<16x128xf32>
    %9 = arith.addf %4, %8 : vector<16x128xf32>
    %c0_6 = arith.constant 0 : index
    %c0_7 = arith.constant 0 : index
    %c0_8 = arith.constant 0 : index
    %10 = vector.load %arg5[%c0_6, %c0_7, %c0_8] : memref<1x16x128xf32, #tpu.memory_space<vmem>>, vector<1x16x128xf32>
    %11 = vector.shape_cast %10 : vector<1x16x128xf32> to vector<16x128xf32>
    %12 = vector.shape_cast %9 : vector<16x128xf32> to vector<1x16x128xf32>
    tpu.vector_store %arg5[%c0_6, %c0_7, %c0_8], %12 {strides = array<i32>} : memref<1x16x128xf32, #tpu.memory_space<vmem>>, vector<1x16x128xf32>,
    return
  }
  func.func @transform_0(%arg0: i32, %arg1: i32) -> (i32, i32, i32) {
    %c0_i32 = arith.constant 0 : i32
    %c0_i32_0 = arith.constant 0 : i32
    %c0_i32_1 = arith.constant 0 : i32
    return %arg0, %c0_i32, %c0_i32_0 : i32, i32, i32
  }
  func.func @transform_1(%arg0: i32, %arg1: i32) -> (i32, i32) {
    %c0_i32 = arith.constant 0 : i32
    %c0_i32_0 = arith.constant 0 : i32
    return %c0_i32, %arg1 : i32, i32
  }
  func.func @transform_2(%arg0: i32, %arg1: i32) -> (i32, i32) {
    %c0_i32 = arith.constant 0 : i32
    %c0_i32_0 = arith.constant 0 : i32
    return %c0_i32, %arg1 : i32, i32
  }
  func.func @transform_3(%arg0: i32, %arg1: i32) -> (i32, i32, i32) {
    %c0_i32 = arith.constant 0 : i32
    %c0_i32_0 = arith.constant 0 : i32
    return %arg0, %c0_i32, %arg1 : i32, i32, i32
  }
}

module attributes {stable_mosaic.version = 11 : i64} {
  func.func @encoder_layer_kernel(%arg0: i32, %arg1: memref<1x16x128xf32, #tpu.memory_space<vmem>>, %arg2: memref<128x384xbf16, #tpu.memory_space<vmem>>, %arg3: memref<1x384xf32, #tpu.memory_space<vmem>>, %arg4: memref<128x128xbf16, #tpu.memory_space<vmem>>, %arg5: memref<1x128xf32, #tpu.memory_space<vmem>>, %arg6: memref<1x128xf32, #tpu.memory_space<vmem>>, %arg7: memref<1x128xf32, #tpu.memory_space<vmem>>, %arg8: memref<128x512xbf16, #tpu.memory_space<vmem>>, %arg9: memref<1x512xf32, #tpu.memory_space<vmem>>, %arg10: memref<512x128xbf16, #tpu.memory_space<vmem>>, %arg11: memref<1x128xf32, #tpu.memory_space<vmem>>, %arg12: memref<1x128xf32, #tpu.memory_space<vmem>>, %arg13: memref<1x128xf32, #tpu.memory_space<vmem>>, %arg14: memref<1x16x128xf32, #tpu.memory_space<vmem>>, %arg15: memref<16x128xf32, #tpu.memory_space<vmem>>) attributes {dimension_semantics = [#tpu.dimension_semantics<parallel>], iteration_bounds = array<i64: 2>, scalar_prefetch = 0 : i64, scratch_operands = 1 : i64, tpu.core_type = #tpu.core_type<tc>, window_params = [{transform_indices = @transform_0, window_bounds = array<i64: 1, 16, 128>}, {pipeline_mode = #tpu.pipeline_mode<synchronous>, transform_indices = @transform_1, window_bounds = array<i64: 128, 384>}, {pipeline_mode = #tpu.pipeline_mode<synchronous>, transform_indices = @transform_2, window_bounds = array<i64: 1, 384>}, {pipeline_mode = #tpu.pipeline_mode<synchronous>, transform_indices = @transform_3, window_bounds = array<i64: 128, 128>}, {pipeline_mode = #tpu.pipeline_mode<synchronous>, transform_indices = @transform_4, window_bounds = array<i64: 1, 128>}, {pipeline_mode = #tpu.pipeline_mode<synchronous>, transform_indices = @transform_5, window_bounds = array<i64: 1, 128>}, {pipeline_mode = #tpu.pipeline_mode<synchronous>, transform_indices = @transform_6, window_bounds = array<i64: 1, 128>}, {pipeline_mode = #tpu.pipeline_mode<synchronous>, transform_indices = @transform_7, window_bounds = array<i64: 128, 512>}, {pipeline_mode = #tpu.pipeline_mode<synchronous>, transform_indices = @transform_8, window_bounds = array<i64: 1, 512>}, {pipeline_mode = #tpu.pipeline_mode<synchronous>, transform_indices = @transform_9, window_bounds = array<i64: 512, 128>}, {pipeline_mode = #tpu.pipeline_mode<synchronous>, transform_indices = @transform_10, window_bounds = array<i64: 1, 128>}, {pipeline_mode = #tpu.pipeline_mode<synchronous>, transform_indices = @transform_11, window_bounds = array<i64: 1, 128>}, {pipeline_mode = #tpu.pipeline_mode<synchronous>, transform_indices = @transform_12, window_bounds = array<i64: 1, 128>}, {transform_indices = @transform_13, window_bounds = array<i64: 1, 16, 128>}]} {
    %c0 = arith.constant 0 : index
    %c0_0 = arith.constant 0 : index
    %c0_1 = arith.constant 0 : index
    %0 = vector.load %arg1[%c0, %c0_0, %c0_1] : memref<1x16x128xf32, #tpu.memory_space<vmem>>, vector<1x16x128xf32>
    %1 = vector.shape_cast %0 : vector<1x16x128xf32> to vector<16x128xf32>
    %2 = arith.truncf %1 : vector<16x128xf32> to vector<16x128xbf16>
    %c0_2 = arith.constant 0 : index
    %c0_3 = arith.constant 0 : index
    %3 = vector.load %arg2[%c0_2, %c0_3] : memref<128x384xbf16, #tpu.memory_space<vmem>>, vector<128x384xbf16>
    %cst = arith.constant dense<0.000000e+00> : vector<16x384xf32>
    %4 = tpu.matmul %2, %3, %cst {dimension_numbers = #tpu.dot_dimension_numbers<[1], [0], [0], [1], [0, 0, 1, 1], [], []>} : vector<16x128xbf16>, vector<128x384xbf16>, vector<16x384xf32> -> vector<16x384xf32>
    %c0_4 = arith.constant 0 : index
    %c0_5 = arith.constant 0 : index
    %5 = vector.load %arg3[%c0_4, %c0_5] : memref<1x384xf32, #tpu.memory_space<vmem>>, vector<1x384xf32>
    %6 = vector.shape_cast %5 : vector<1x384xf32> to vector<384xf32>
    %7 = vector.shape_cast %6 : vector<384xf32> to vector<1x384xf32>
    %8 = vector.broadcast %7 : vector<1x384xf32> to vector<16x384xf32>
    %9 = arith.addf %4, %8 : vector<16x384xf32>
    %10 = tpu.iota {dimensions = array<i32: 0>} : vector<16x16xi32>
    %11 = tpu.iota {dimensions = array<i32: 1>} : vector<16x16xi32>
    %12 = arith.cmpi sle, %11, %10 : vector<16x16xi32>
    %13 = vector.extract_strided_slice %9 {offsets = [0, 0], sizes = [16, 32], strides = [1, 1]} : vector<16x384xf32> to vector<16x32xf32>
    %cst_6 = arith.constant 0.176776692 : f32
    %14 = vector.broadcast %cst_6 : f32 to vector<16x32xf32>
    %15 = arith.mulf %13, %14 : vector<16x32xf32>
    %16 = vector.extract_strided_slice %9 {offsets = [0, 128], sizes = [16, 32], strides = [1, 1]} : vector<16x384xf32> to vector<16x32xf32>
    %17 = vector.extract_strided_slice %9 {offsets = [0, 256], sizes = [16, 32], strides = [1, 1]} : vector<16x384xf32> to vector<16x32xf32>
    %18 = arith.truncf %15 : vector<16x32xf32> to vector<16x32xbf16>
    %19 = arith.truncf %16 : vector<16x32xf32> to vector<16x32xbf16>
    %cst_7 = arith.constant dense<0.000000e+00> : vector<16x16xf32>
    %20 = tpu.matmul %18, %19, %cst_7 {dimension_numbers = #tpu.dot_dimension_numbers<[1], [1], [0], [0], [0, 0, 1, 0], [], []>} : vector<16x32xbf16>, vector<16x32xbf16>, vector<16x16xf32> -> vector<16x16xf32>
    %cst_8 = arith.constant -1.000000e+30 : f32
    %21 = vector.broadcast %cst_8 : f32 to vector<16x16xf32>
    %22 = arith.select %12, %20, %21 : vector<16x16xi1>, vector<16x16xf32>
    %cst_9 = arith.constant dense<0xFF800000> : vector<16xf32>
    %23 = vector.multi_reduction <maximumf>, %22, %cst_9 [1] : vector<16x16xf32> to vector<16xf32>
    %24 = vector.shape_cast %23 : vector<16xf32> to vector<16x1xf32>
    %25 = vector.broadcast %24 : vector<16x1xf32> to vector<16x16xf32>
    %26 = arith.subf %22, %25 : vector<16x16xf32>
    %27 = math.exp %26 : vector<16x16xf32>
    %cst_10 = arith.constant dense<0.000000e+00> : vector<16xf32>
    %28 = vector.multi_reduction <add>, %27, %cst_10 [1] : vector<16x16xf32> to vector<16xf32>
    %29 = vector.shape_cast %28 : vector<16xf32> to vector<16x1xf32>
    %30 = tpu.reciprocal %29 {approx = true} : vector<16x1xf32> -> vector<16x1xf32>
    %31 = vector.broadcast %30 : vector<16x1xf32> to vector<16x16xf32>
    %32 = arith.mulf %27, %31 : vector<16x16xf32>
    %33 = arith.truncf %32 : vector<16x16xf32> to vector<16x16xbf16>
    %34 = arith.truncf %17 : vector<16x32xf32> to vector<16x32xbf16>
    %cst_11 = arith.constant dense<0.000000e+00> : vector<16x32xf32>
    %35 = tpu.matmul %33, %34, %cst_11 {dimension_numbers = #tpu.dot_dimension_numbers<[1], [0], [0], [1], [0, 0, 1, 1], [], []>} : vector<16x16xbf16>, vector<16x32xbf16>, vector<16x32xf32> -> vector<16x32xf32>
    %c0_12 = arith.constant 0 : index
    %c0_13 = arith.constant 0 : index
    %36 = vector.load %arg15[%c0_12, %c0_13] : memref<16x128xf32, #tpu.memory_space<vmem>>, vector<16x32xf32>
    tpu.vector_store %arg15[%c0_12, %c0_13], %35 {strides = array<i32>} : memref<16x128xf32, #tpu.memory_space<vmem>>, vector<16x32xf32>,
    %37 = vector.extract_strided_slice %9 {offsets = [0, 32], sizes = [16, 32], strides = [1, 1]} : vector<16x384xf32> to vector<16x32xf32>
    %cst_14 = arith.constant 0.176776692 : f32
    %38 = vector.broadcast %cst_14 : f32 to vector<16x32xf32>
    %39 = arith.mulf %37, %38 : vector<16x32xf32>
    %40 = vector.extract_strided_slice %9 {offsets = [0, 160], sizes = [16, 32], strides = [1, 1]} : vector<16x384xf32> to vector<16x32xf32>
    %41 = vector.extract_strided_slice %9 {offsets = [0, 288], sizes = [16, 32], strides = [1, 1]} : vector<16x384xf32> to vector<16x32xf32>
    %42 = arith.truncf %39 : vector<16x32xf32> to vector<16x32xbf16>
    %43 = arith.truncf %40 : vector<16x32xf32> to vector<16x32xbf16>
    %cst_15 = arith.constant dense<0.000000e+00> : vector<16x16xf32>
    %44 = tpu.matmul %42, %43, %cst_15 {dimension_numbers = #tpu.dot_dimension_numbers<[1], [1], [0], [0], [0, 0, 1, 0], [], []>} : vector<16x32xbf16>, vector<16x32xbf16>, vector<16x16xf32> -> vector<16x16xf32>
    %cst_16 = arith.constant -1.000000e+30 : f32
    %45 = vector.broadcast %cst_16 : f32 to vector<16x16xf32>
    %46 = arith.select %12, %44, %45 : vector<16x16xi1>, vector<16x16xf32>
    %cst_17 = arith.constant dense<0xFF800000> : vector<16xf32>
    %47 = vector.multi_reduction <maximumf>, %46, %cst_17 [1] : vector<16x16xf32> to vector<16xf32>
    %48 = vector.shape_cast %47 : vector<16xf32> to vector<16x1xf32>
    %49 = vector.broadcast %48 : vector<16x1xf32> to vector<16x16xf32>
    %50 = arith.subf %46, %49 : vector<16x16xf32>
    %51 = math.exp %50 : vector<16x16xf32>
    %cst_18 = arith.constant dense<0.000000e+00> : vector<16xf32>
    %52 = vector.multi_reduction <add>, %51, %cst_18 [1] : vector<16x16xf32> to vector<16xf32>
    %53 = vector.shape_cast %52 : vector<16xf32> to vector<16x1xf32>
    %54 = tpu.reciprocal %53 {approx = true} : vector<16x1xf32> -> vector<16x1xf32>
    %55 = vector.broadcast %54 : vector<16x1xf32> to vector<16x16xf32>
    %56 = arith.mulf %51, %55 : vector<16x16xf32>
    %57 = arith.truncf %56 : vector<16x16xf32> to vector<16x16xbf16>
    %58 = arith.truncf %41 : vector<16x32xf32> to vector<16x32xbf16>
    %cst_19 = arith.constant dense<0.000000e+00> : vector<16x32xf32>
    %59 = tpu.matmul %57, %58, %cst_19 {dimension_numbers = #tpu.dot_dimension_numbers<[1], [0], [0], [1], [0, 0, 1, 1], [], []>} : vector<16x16xbf16>, vector<16x32xbf16>, vector<16x32xf32> -> vector<16x32xf32>
    %c0_20 = arith.constant 0 : index
    %c32 = arith.constant 32 : index
    %60 = vector.load %arg15[%c0_20, %c32] : memref<16x128xf32, #tpu.memory_space<vmem>>, vector<16x32xf32>
    tpu.vector_store %arg15[%c0_20, %c32], %59 {strides = array<i32>} : memref<16x128xf32, #tpu.memory_space<vmem>>, vector<16x32xf32>,
    %61 = vector.extract_strided_slice %9 {offsets = [0, 64], sizes = [16, 32], strides = [1, 1]} : vector<16x384xf32> to vector<16x32xf32>
    %cst_21 = arith.constant 0.176776692 : f32
    %62 = vector.broadcast %cst_21 : f32 to vector<16x32xf32>
    %63 = arith.mulf %61, %62 : vector<16x32xf32>
    %64 = vector.extract_strided_slice %9 {offsets = [0, 192], sizes = [16, 32], strides = [1, 1]} : vector<16x384xf32> to vector<16x32xf32>
    %65 = vector.extract_strided_slice %9 {offsets = [0, 320], sizes = [16, 32], strides = [1, 1]} : vector<16x384xf32> to vector<16x32xf32>
    %66 = arith.truncf %63 : vector<16x32xf32> to vector<16x32xbf16>
    %67 = arith.truncf %64 : vector<16x32xf32> to vector<16x32xbf16>
    %cst_22 = arith.constant dense<0.000000e+00> : vector<16x16xf32>
    %68 = tpu.matmul %66, %67, %cst_22 {dimension_numbers = #tpu.dot_dimension_numbers<[1], [1], [0], [0], [0, 0, 1, 0], [], []>} : vector<16x32xbf16>, vector<16x32xbf16>, vector<16x16xf32> -> vector<16x16xf32>
    %cst_23 = arith.constant -1.000000e+30 : f32
    %69 = vector.broadcast %cst_23 : f32 to vector<16x16xf32>
    %70 = arith.select %12, %68, %69 : vector<16x16xi1>, vector<16x16xf32>
    %cst_24 = arith.constant dense<0xFF800000> : vector<16xf32>
    %71 = vector.multi_reduction <maximumf>, %70, %cst_24 [1] : vector<16x16xf32> to vector<16xf32>
    %72 = vector.shape_cast %71 : vector<16xf32> to vector<16x1xf32>
    %73 = vector.broadcast %72 : vector<16x1xf32> to vector<16x16xf32>
    %74 = arith.subf %70, %73 : vector<16x16xf32>
    %75 = math.exp %74 : vector<16x16xf32>
    %cst_25 = arith.constant dense<0.000000e+00> : vector<16xf32>
    %76 = vector.multi_reduction <add>, %75, %cst_25 [1] : vector<16x16xf32> to vector<16xf32>
    %77 = vector.shape_cast %76 : vector<16xf32> to vector<16x1xf32>
    %78 = tpu.reciprocal %77 {approx = true} : vector<16x1xf32> -> vector<16x1xf32>
    %79 = vector.broadcast %78 : vector<16x1xf32> to vector<16x16xf32>
    %80 = arith.mulf %75, %79 : vector<16x16xf32>
    %81 = arith.truncf %80 : vector<16x16xf32> to vector<16x16xbf16>
    %82 = arith.truncf %65 : vector<16x32xf32> to vector<16x32xbf16>
    %cst_26 = arith.constant dense<0.000000e+00> : vector<16x32xf32>
    %83 = tpu.matmul %81, %82, %cst_26 {dimension_numbers = #tpu.dot_dimension_numbers<[1], [0], [0], [1], [0, 0, 1, 1], [], []>} : vector<16x16xbf16>, vector<16x32xbf16>, vector<16x32xf32> -> vector<16x32xf32>
    %c0_27 = arith.constant 0 : index
    %c64 = arith.constant 64 : index
    %84 = vector.load %arg15[%c0_27, %c64] : memref<16x128xf32, #tpu.memory_space<vmem>>, vector<16x32xf32>
    tpu.vector_store %arg15[%c0_27, %c64], %83 {strides = array<i32>} : memref<16x128xf32, #tpu.memory_space<vmem>>, vector<16x32xf32>,
    %85 = vector.extract_strided_slice %9 {offsets = [0, 96], sizes = [16, 32], strides = [1, 1]} : vector<16x384xf32> to vector<16x32xf32>
    %cst_28 = arith.constant 0.176776692 : f32
    %86 = vector.broadcast %cst_28 : f32 to vector<16x32xf32>
    %87 = arith.mulf %85, %86 : vector<16x32xf32>
    %88 = vector.extract_strided_slice %9 {offsets = [0, 224], sizes = [16, 32], strides = [1, 1]} : vector<16x384xf32> to vector<16x32xf32>
    %89 = vector.extract_strided_slice %9 {offsets = [0, 352], sizes = [16, 32], strides = [1, 1]} : vector<16x384xf32> to vector<16x32xf32>
    %90 = arith.truncf %87 : vector<16x32xf32> to vector<16x32xbf16>
    %91 = arith.truncf %88 : vector<16x32xf32> to vector<16x32xbf16>
    %cst_29 = arith.constant dense<0.000000e+00> : vector<16x16xf32>
    %92 = tpu.matmul %90, %91, %cst_29 {dimension_numbers = #tpu.dot_dimension_numbers<[1], [1], [0], [0], [0, 0, 1, 0], [], []>} : vector<16x32xbf16>, vector<16x32xbf16>, vector<16x16xf32> -> vector<16x16xf32>
    %cst_30 = arith.constant -1.000000e+30 : f32
    %93 = vector.broadcast %cst_30 : f32 to vector<16x16xf32>
    %94 = arith.select %12, %92, %93 : vector<16x16xi1>, vector<16x16xf32>
    %cst_31 = arith.constant dense<0xFF800000> : vector<16xf32>
    %95 = vector.multi_reduction <maximumf>, %94, %cst_31 [1] : vector<16x16xf32> to vector<16xf32>
    %96 = vector.shape_cast %95 : vector<16xf32> to vector<16x1xf32>
    %97 = vector.broadcast %96 : vector<16x1xf32> to vector<16x16xf32>
    %98 = arith.subf %94, %97 : vector<16x16xf32>
    %99 = math.exp %98 : vector<16x16xf32>
    %cst_32 = arith.constant dense<0.000000e+00> : vector<16xf32>
    %100 = vector.multi_reduction <add>, %99, %cst_32 [1] : vector<16x16xf32> to vector<16xf32>
    %101 = vector.shape_cast %100 : vector<16xf32> to vector<16x1xf32>
    %102 = tpu.reciprocal %101 {approx = true} : vector<16x1xf32> -> vector<16x1xf32>
    %103 = vector.broadcast %102 : vector<16x1xf32> to vector<16x16xf32>
    %104 = arith.mulf %99, %103 : vector<16x16xf32>
    %105 = arith.truncf %104 : vector<16x16xf32> to vector<16x16xbf16>
    %106 = arith.truncf %89 : vector<16x32xf32> to vector<16x32xbf16>
    %cst_33 = arith.constant dense<0.000000e+00> : vector<16x32xf32>
    %107 = tpu.matmul %105, %106, %cst_33 {dimension_numbers = #tpu.dot_dimension_numbers<[1], [0], [0], [1], [0, 0, 1, 1], [], []>} : vector<16x16xbf16>, vector<16x32xbf16>, vector<16x32xf32> -> vector<16x32xf32>
    %c0_34 = arith.constant 0 : index
    %c96 = arith.constant 96 : index
    %108 = vector.load %arg15[%c0_34, %c96] : memref<16x128xf32, #tpu.memory_space<vmem>>, vector<16x32xf32>
    tpu.vector_store %arg15[%c0_34, %c96], %107 {strides = array<i32>} : memref<16x128xf32, #tpu.memory_space<vmem>>, vector<16x32xf32>,
    %c0_35 = arith.constant 0 : index
    %c0_36 = arith.constant 0 : index
    %109 = vector.load %arg15[%c0_35, %c0_36] : memref<16x128xf32, #tpu.memory_space<vmem>>, vector<16x128xf32>
    %110 = arith.truncf %109 : vector<16x128xf32> to vector<16x128xbf16>
    %c0_37 = arith.constant 0 : index
    %c0_38 = arith.constant 0 : index
    %111 = vector.load %arg4[%c0_37, %c0_38] : memref<128x128xbf16, #tpu.memory_space<vmem>>, vector<128x128xbf16>
    %cst_39 = arith.constant dense<0.000000e+00> : vector<16x128xf32>
    %112 = tpu.matmul %110, %111, %cst_39 {dimension_numbers = #tpu.dot_dimension_numbers<[1], [0], [0], [1], [0, 0, 1, 1], [], []>} : vector<16x128xbf16>, vector<128x128xbf16>, vector<16x128xf32> -> vector<16x128xf32>
    %c0_40 = arith.constant 0 : index
    %c0_41 = arith.constant 0 : index
    %113 = vector.load %arg5[%c0_40, %c0_41] : memref<1x128xf32, #tpu.memory_space<vmem>>, vector<1x128xf32>
    %114 = vector.shape_cast %113 : vector<1x128xf32> to vector<128xf32>
    %115 = vector.shape_cast %114 : vector<128xf32> to vector<1x128xf32>
    %116 = vector.broadcast %115 : vector<1x128xf32> to vector<16x128xf32>
    %117 = arith.addf %112, %116 : vector<16x128xf32>
    %118 = arith.addf %1, %117 : vector<16x128xf32>
    %c0_42 = arith.constant 0 : index
    %c0_43 = arith.constant 0 : index
    %119 = vector.load %arg6[%c0_42, %c0_43] : memref<1x128xf32, #tpu.memory_space<vmem>>, vector<1x128xf32>
    %120 = vector.shape_cast %119 : vector<1x128xf32> to vector<128xf32>
    %c0_44 = arith.constant 0 : index
    %c0_45 = arith.constant 0 : index
    %121 = vector.load %arg7[%c0_44, %c0_45] : memref<1x128xf32, #tpu.memory_space<vmem>>, vector<1x128xf32>
    %122 = vector.shape_cast %121 : vector<1x128xf32> to vector<128xf32>
    %cst_46 = arith.constant dense<0.000000e+00> : vector<16xf32>
    %123 = vector.multi_reduction <add>, %118, %cst_46 [1] : vector<16x128xf32> to vector<16xf32>
    %124 = vector.shape_cast %123 : vector<16xf32> to vector<16x1xf32>
    %cst_47 = arith.constant 1.280000e+02 : f32
    %125 = vector.broadcast %cst_47 : f32 to vector<16x1xf32>
    %126 = arith.divf %124, %125 : vector<16x1xf32>
    %127 = vector.broadcast %126 : vector<16x1xf32> to vector<16x128xf32>
    %128 = arith.subf %118, %127 : vector<16x128xf32>
    %129 = arith.mulf %128, %128 : vector<16x128xf32>
    %cst_48 = arith.constant dense<0.000000e+00> : vector<16xf32>
    %130 = vector.multi_reduction <add>, %129, %cst_48 [1] : vector<16x128xf32> to vector<16xf32>
    %131 = vector.shape_cast %130 : vector<16xf32> to vector<16x1xf32>
    %cst_49 = arith.constant 1.280000e+02 : f32
    %132 = vector.broadcast %cst_49 : f32 to vector<16x1xf32>
    %133 = arith.divf %131, %132 : vector<16x1xf32>
    %134 = vector.broadcast %126 : vector<16x1xf32> to vector<16x128xf32>
    %135 = arith.subf %118, %134 : vector<16x128xf32>
    %cst_50 = arith.constant 9.99999974E-6 : f32
    %136 = vector.broadcast %cst_50 : f32 to vector<16x1xf32>
    %137 = arith.addf %133, %136 : vector<16x1xf32>
    %138 = math.rsqrt %137 : vector<16x1xf32>
    %139 = vector.broadcast %138 : vector<16x1xf32> to vector<16x128xf32>
    %140 = arith.mulf %135, %139 : vector<16x128xf32>
    %141 = vector.shape_cast %120 : vector<128xf32> to vector<1x128xf32>
    %142 = vector.broadcast %141 : vector<1x128xf32> to vector<16x128xf32>
    %143 = arith.mulf %140, %142 : vector<16x128xf32>
    %144 = vector.shape_cast %122 : vector<128xf32> to vector<1x128xf32>
    %145 = vector.broadcast %144 : vector<1x128xf32> to vector<16x128xf32>
    %146 = arith.addf %143, %145 : vector<16x128xf32>
    %147 = arith.truncf %146 : vector<16x128xf32> to vector<16x128xbf16>
    %c0_51 = arith.constant 0 : index
    %c0_52 = arith.constant 0 : index
    %148 = vector.load %arg8[%c0_51, %c0_52] : memref<128x512xbf16, #tpu.memory_space<vmem>>, vector<128x512xbf16>
    %cst_53 = arith.constant dense<0.000000e+00> : vector<16x512xf32>
    %149 = tpu.matmul %147, %148, %cst_53 {dimension_numbers = #tpu.dot_dimension_numbers<[1], [0], [0], [1], [0, 0, 1, 1], [], []>} : vector<16x128xbf16>, vector<128x512xbf16>, vector<16x512xf32> -> vector<16x512xf32>
    %c0_54 = arith.constant 0 : index
    %c0_55 = arith.constant 0 : index
    %150 = vector.load %arg9[%c0_54, %c0_55] : memref<1x512xf32, #tpu.memory_space<vmem>>, vector<1x512xf32>
    %151 = vector.shape_cast %150 : vector<1x512xf32> to vector<512xf32>
    %152 = vector.shape_cast %151 : vector<512xf32> to vector<1x512xf32>
    %153 = vector.broadcast %152 : vector<1x512xf32> to vector<16x512xf32>
    %154 = arith.addf %149, %153 : vector<16x512xf32>
    %cst_56 = arith.constant 0.000000e+00 : f32
    %155 = vector.broadcast %cst_56 : f32 to vector<16x512xf32>
    %156 = arith.maximumf %154, %155 : vector<16x512xf32>
    %157 = arith.truncf %156 : vector<16x512xf32> to vector<16x512xbf16>
    %c0_57 = arith.constant 0 : index
    %c0_58 = arith.constant 0 : index
    %158 = vector.load %arg10[%c0_57, %c0_58] : memref<512x128xbf16, #tpu.memory_space<vmem>>, vector<512x128xbf16>
    %cst_59 = arith.constant dense<0.000000e+00> : vector<16x128xf32>
    %159 = tpu.matmul %157, %158, %cst_59 {dimension_numbers = #tpu.dot_dimension_numbers<[1], [0], [0], [1], [0, 0, 1, 1], [], []>} : vector<16x512xbf16>, vector<512x128xbf16>, vector<16x128xf32> -> vector<16x128xf32>
    %c0_60 = arith.constant 0 : index
    %c0_61 = arith.constant 0 : index
    %160 = vector.load %arg11[%c0_60, %c0_61] : memref<1x128xf32, #tpu.memory_space<vmem>>, vector<1x128xf32>
    %161 = vector.shape_cast %160 : vector<1x128xf32> to vector<128xf32>
    %162 = vector.shape_cast %161 : vector<128xf32> to vector<1x128xf32>
    %163 = vector.broadcast %162 : vector<1x128xf32> to vector<16x128xf32>
    %164 = arith.addf %159, %163 : vector<16x128xf32>
    %165 = arith.addf %146, %164 : vector<16x128xf32>
    %c0_62 = arith.constant 0 : index
    %c0_63 = arith.constant 0 : index
    %166 = vector.load %arg12[%c0_62, %c0_63] : memref<1x128xf32, #tpu.memory_space<vmem>>, vector<1x128xf32>
    %167 = vector.shape_cast %166 : vector<1x128xf32> to vector<128xf32>
    %c0_64 = arith.constant 0 : index
    %c0_65 = arith.constant 0 : index
    %168 = vector.load %arg13[%c0_64, %c0_65] : memref<1x128xf32, #tpu.memory_space<vmem>>, vector<1x128xf32>
    %169 = vector.shape_cast %168 : vector<1x128xf32> to vector<128xf32>
    %cst_66 = arith.constant dense<0.000000e+00> : vector<16xf32>
    %170 = vector.multi_reduction <add>, %165, %cst_66 [1] : vector<16x128xf32> to vector<16xf32>
    %171 = vector.shape_cast %170 : vector<16xf32> to vector<16x1xf32>
    %cst_67 = arith.constant 1.280000e+02 : f32
    %172 = vector.broadcast %cst_67 : f32 to vector<16x1xf32>
    %173 = arith.divf %171, %172 : vector<16x1xf32>
    %174 = vector.broadcast %173 : vector<16x1xf32> to vector<16x128xf32>
    %175 = arith.subf %165, %174 : vector<16x128xf32>
    %176 = arith.mulf %175, %175 : vector<16x128xf32>
    %cst_68 = arith.constant dense<0.000000e+00> : vector<16xf32>
    %177 = vector.multi_reduction <add>, %176, %cst_68 [1] : vector<16x128xf32> to vector<16xf32>
    %178 = vector.shape_cast %177 : vector<16xf32> to vector<16x1xf32>
    %cst_69 = arith.constant 1.280000e+02 : f32
    %179 = vector.broadcast %cst_69 : f32 to vector<16x1xf32>
    %180 = arith.divf %178, %179 : vector<16x1xf32>
    %181 = vector.broadcast %173 : vector<16x1xf32> to vector<16x128xf32>
    %182 = arith.subf %165, %181 : vector<16x128xf32>
    %cst_70 = arith.constant 9.99999974E-6 : f32
    %183 = vector.broadcast %cst_70 : f32 to vector<16x1xf32>
    %184 = arith.addf %180, %183 : vector<16x1xf32>
    %185 = math.rsqrt %184 : vector<16x1xf32>
    %186 = vector.broadcast %185 : vector<16x1xf32> to vector<16x128xf32>
    %187 = arith.mulf %182, %186 : vector<16x128xf32>
    %188 = vector.shape_cast %167 : vector<128xf32> to vector<1x128xf32>
    %189 = vector.broadcast %188 : vector<1x128xf32> to vector<16x128xf32>
    %190 = arith.mulf %187, %189 : vector<16x128xf32>
    %191 = vector.shape_cast %169 : vector<128xf32> to vector<1x128xf32>
    %192 = vector.broadcast %191 : vector<1x128xf32> to vector<16x128xf32>
    %193 = arith.addf %190, %192 : vector<16x128xf32>
    %c0_71 = arith.constant 0 : index
    %c0_72 = arith.constant 0 : index
    %c0_73 = arith.constant 0 : index
    %194 = vector.load %arg14[%c0_71, %c0_72, %c0_73] : memref<1x16x128xf32, #tpu.memory_space<vmem>>, vector<1x16x128xf32>
    %195 = vector.shape_cast %194 : vector<1x16x128xf32> to vector<16x128xf32>
    %196 = vector.shape_cast %193 : vector<16x128xf32> to vector<1x16x128xf32>
    tpu.vector_store %arg14[%c0_71, %c0_72, %c0_73], %196 {strides = array<i32>} : memref<1x16x128xf32, #tpu.memory_space<vmem>>, vector<1x16x128xf32>,
    return
  }
  func.func @transform_0(%arg0: i32) -> (i32, i32, i32) {
    %c0_i32 = arith.constant 0 : i32
    %c0_i32_0 = arith.constant 0 : i32
    %c0_i32_1 = arith.constant 0 : i32
    return %arg0, %c0_i32, %c0_i32_0 : i32, i32, i32
  }
  func.func @transform_1(%arg0: i32) -> (i32, i32) {
    %c0_i32 = arith.constant 0 : i32
    %c0_i32_0 = arith.constant 0 : i32
    %c0_i32_1 = arith.constant 0 : i32
    return %c0_i32, %c0_i32_0 : i32, i32
  }
  func.func @transform_2(%arg0: i32) -> (i32, i32) {
    %c0_i32 = arith.constant 0 : i32
    %c0_i32_0 = arith.constant 0 : i32
    %c0_i32_1 = arith.constant 0 : i32
    return %c0_i32, %c0_i32_0 : i32, i32
  }
  func.func @transform_3(%arg0: i32) -> (i32, i32) {
    %c0_i32 = arith.constant 0 : i32
    %c0_i32_0 = arith.constant 0 : i32
    %c0_i32_1 = arith.constant 0 : i32
    return %c0_i32, %c0_i32_0 : i32, i32
  }
  func.func @transform_4(%arg0: i32) -> (i32, i32) {
    %c0_i32 = arith.constant 0 : i32
    %c0_i32_0 = arith.constant 0 : i32
    %c0_i32_1 = arith.constant 0 : i32
    return %c0_i32, %c0_i32_0 : i32, i32
  }
  func.func @transform_5(%arg0: i32) -> (i32, i32) {
    %c0_i32 = arith.constant 0 : i32
    %c0_i32_0 = arith.constant 0 : i32
    %c0_i32_1 = arith.constant 0 : i32
    return %c0_i32, %c0_i32_0 : i32, i32
  }
  func.func @transform_6(%arg0: i32) -> (i32, i32) {
    %c0_i32 = arith.constant 0 : i32
    %c0_i32_0 = arith.constant 0 : i32
    %c0_i32_1 = arith.constant 0 : i32
    return %c0_i32, %c0_i32_0 : i32, i32
  }
  func.func @transform_7(%arg0: i32) -> (i32, i32) {
    %c0_i32 = arith.constant 0 : i32
    %c0_i32_0 = arith.constant 0 : i32
    %c0_i32_1 = arith.constant 0 : i32
    return %c0_i32, %c0_i32_0 : i32, i32
  }
  func.func @transform_8(%arg0: i32) -> (i32, i32) {
    %c0_i32 = arith.constant 0 : i32
    %c0_i32_0 = arith.constant 0 : i32
    %c0_i32_1 = arith.constant 0 : i32
    return %c0_i32, %c0_i32_0 : i32, i32
  }
  func.func @transform_9(%arg0: i32) -> (i32, i32) {
    %c0_i32 = arith.constant 0 : i32
    %c0_i32_0 = arith.constant 0 : i32
    %c0_i32_1 = arith.constant 0 : i32
    return %c0_i32, %c0_i32_0 : i32, i32
  }
  func.func @transform_10(%arg0: i32) -> (i32, i32) {
    %c0_i32 = arith.constant 0 : i32
    %c0_i32_0 = arith.constant 0 : i32
    %c0_i32_1 = arith.constant 0 : i32
    return %c0_i32, %c0_i32_0 : i32, i32
  }
  func.func @transform_11(%arg0: i32) -> (i32, i32) {
    %c0_i32 = arith.constant 0 : i32
    %c0_i32_0 = arith.constant 0 : i32
    %c0_i32_1 = arith.constant 0 : i32
    return %c0_i32, %c0_i32_0 : i32, i32
  }
  func.func @transform_12(%arg0: i32) -> (i32, i32) {
    %c0_i32 = arith.constant 0 : i32
    %c0_i32_0 = arith.constant 0 : i32
    %c0_i32_1 = arith.constant 0 : i32
    return %c0_i32, %c0_i32_0 : i32, i32
  }
  func.func @transform_13(%arg0: i32) -> (i32, i32, i32) {
    %c0_i32 = arith.constant 0 : i32
    %c0_i32_0 = arith.constant 0 : i32
    %c0_i32_1 = arith.constant 0 : i32
    return %arg0, %c0_i32, %c0_i32_0 : i32, i32, i32
  }
}

module attributes {stable_mosaic.version = 11 : i64} {
  func.func @encoder_layer_kernel(%arg0: i32, %arg1: memref<1x16x128xf32, #tpu.memory_space<vmem>>, %arg2: memref<128x384xbf16, #tpu.memory_space<vmem>>, %arg3: memref<1x384xf32, #tpu.memory_space<vmem>>, %arg4: memref<128x128xbf16, #tpu.memory_space<vmem>>, %arg5: memref<1x128xf32, #tpu.memory_space<vmem>>, %arg6: memref<1x128xf32, #tpu.memory_space<vmem>>, %arg7: memref<1x128xf32, #tpu.memory_space<vmem>>, %arg8: memref<128x512xbf16, #tpu.memory_space<vmem>>, %arg9: memref<1x512xf32, #tpu.memory_space<vmem>>, %arg10: memref<512x128xbf16, #tpu.memory_space<vmem>>, %arg11: memref<1x128xf32, #tpu.memory_space<vmem>>, %arg12: memref<1x128xf32, #tpu.memory_space<vmem>>, %arg13: memref<1x128xf32, #tpu.memory_space<vmem>>, %arg14: memref<1x16x128xf32, #tpu.memory_space<vmem>>, %arg15: memref<16x128xf32, #tpu.memory_space<vmem>>) attributes {dimension_semantics = [#tpu.dimension_semantics<parallel>], iteration_bounds = array<i64: 2>, scalar_prefetch = 0 : i64, scratch_operands = 1 : i64, tpu.core_type = #tpu.core_type<tc>, window_params = [{transform_indices = @transform_0, window_bounds = array<i64: 1, 16, 128>}, {pipeline_mode = #tpu.pipeline_mode<synchronous>, transform_indices = @transform_1, window_bounds = array<i64: 128, 384>}, {pipeline_mode = #tpu.pipeline_mode<synchronous>, transform_indices = @transform_2, window_bounds = array<i64: 1, 384>}, {pipeline_mode = #tpu.pipeline_mode<synchronous>, transform_indices = @transform_3, window_bounds = array<i64: 128, 128>}, {pipeline_mode = #tpu.pipeline_mode<synchronous>, transform_indices = @transform_4, window_bounds = array<i64: 1, 128>}, {pipeline_mode = #tpu.pipeline_mode<synchronous>, transform_indices = @transform_5, window_bounds = array<i64: 1, 128>}, {pipeline_mode = #tpu.pipeline_mode<synchronous>, transform_indices = @transform_6, window_bounds = array<i64: 1, 128>}, {pipeline_mode = #tpu.pipeline_mode<synchronous>, transform_indices = @transform_7, window_bounds = array<i64: 128, 512>}, {pipeline_mode = #tpu.pipeline_mode<synchronous>, transform_indices = @transform_8, window_bounds = array<i64: 1, 512>}, {pipeline_mode = #tpu.pipeline_mode<synchronous>, transform_indices = @transform_9, window_bounds = array<i64: 512, 128>}, {pipeline_mode = #tpu.pipeline_mode<synchronous>, transform_indices = @transform_10, window_bounds = array<i64: 1, 128>}, {pipeline_mode = #tpu.pipeline_mode<synchronous>, transform_indices = @transform_11, window_bounds = array<i64: 1, 128>}, {pipeline_mode = #tpu.pipeline_mode<synchronous>, transform_indices = @transform_12, window_bounds = array<i64: 1, 128>}, {transform_indices = @transform_13, window_bounds = array<i64: 1, 16, 128>}]} {
    %c0 = arith.constant 0 : index
    %c0_0 = arith.constant 0 : index
    %c0_1 = arith.constant 0 : index
    %0 = vector.load %arg1[%c0, %c0_0, %c0_1] : memref<1x16x128xf32, #tpu.memory_space<vmem>>, vector<1x16x128xf32>
    %1 = vector.shape_cast %0 : vector<1x16x128xf32> to vector<16x128xf32>
    %2 = arith.truncf %1 : vector<16x128xf32> to vector<16x128xbf16>
    %c0_2 = arith.constant 0 : index
    %c0_3 = arith.constant 0 : index
    %3 = vector.load %arg2[%c0_2, %c0_3] : memref<128x384xbf16, #tpu.memory_space<vmem>>, vector<128x384xbf16>
    %cst = arith.constant dense<0.000000e+00> : vector<16x384xf32>
    %4 = tpu.matmul %2, %3, %cst {dimension_numbers = #tpu.dot_dimension_numbers<[1], [0], [0], [1], [0, 0, 1, 1], [], []>} : vector<16x128xbf16>, vector<128x384xbf16>, vector<16x384xf32> -> vector<16x384xf32>
    %c0_4 = arith.constant 0 : index
    %c0_5 = arith.constant 0 : index
    %5 = vector.load %arg3[%c0_4, %c0_5] : memref<1x384xf32, #tpu.memory_space<vmem>>, vector<1x384xf32>
    %6 = vector.shape_cast %5 : vector<1x384xf32> to vector<384xf32>
    %7 = vector.shape_cast %6 : vector<384xf32> to vector<1x384xf32>
    %8 = vector.broadcast %7 : vector<1x384xf32> to vector<16x384xf32>
    %9 = arith.addf %4, %8 : vector<16x384xf32>
    %10 = tpu.iota {dimensions = array<i32: 0>} : vector<16x16xi32>
    %11 = tpu.iota {dimensions = array<i32: 1>} : vector<16x16xi32>
    %12 = arith.cmpi sle, %11, %10 : vector<16x16xi32>
    %13 = vector.extract_strided_slice %9 {offsets = [0, 0], sizes = [16, 32], strides = [1, 1]} : vector<16x384xf32> to vector<16x32xf32>
    %cst_6 = arith.constant 0.176776692 : f32
    %14 = vector.broadcast %cst_6 : f32 to vector<16x32xf32>
    %15 = arith.mulf %13, %14 : vector<16x32xf32>
    %16 = vector.extract_strided_slice %9 {offsets = [0, 128], sizes = [16, 32], strides = [1, 1]} : vector<16x384xf32> to vector<16x32xf32>
    %17 = vector.extract_strided_slice %9 {offsets = [0, 256], sizes = [16, 32], strides = [1, 1]} : vector<16x384xf32> to vector<16x32xf32>
    %18 = arith.truncf %15 : vector<16x32xf32> to vector<16x32xbf16>
    %19 = arith.truncf %16 : vector<16x32xf32> to vector<16x32xbf16>
    %cst_7 = arith.constant dense<0.000000e+00> : vector<16x16xf32>
    %20 = tpu.matmul %18, %19, %cst_7 {dimension_numbers = #tpu.dot_dimension_numbers<[1], [1], [0], [0], [0, 0, 1, 0], [], []>} : vector<16x32xbf16>, vector<16x32xbf16>, vector<16x16xf32> -> vector<16x16xf32>
    %cst_8 = arith.constant -1.000000e+30 : f32
    %21 = vector.broadcast %cst_8 : f32 to vector<16x16xf32>
    %22 = arith.select %12, %20, %21 : vector<16x16xi1>, vector<16x16xf32>
    %cst_9 = arith.constant dense<0xFF800000> : vector<16xf32>
    %23 = vector.multi_reduction <maximumf>, %22, %cst_9 [1] : vector<16x16xf32> to vector<16xf32>
    %24 = vector.shape_cast %23 : vector<16xf32> to vector<16x1xf32>
    %25 = vector.broadcast %24 : vector<16x1xf32> to vector<16x16xf32>
    %26 = arith.subf %22, %25 : vector<16x16xf32>
    %27 = math.exp %26 : vector<16x16xf32>
    %cst_10 = arith.constant dense<0.000000e+00> : vector<16xf32>
    %28 = vector.multi_reduction <add>, %27, %cst_10 [1] : vector<16x16xf32> to vector<16xf32>
    %29 = vector.shape_cast %28 : vector<16xf32> to vector<16x1xf32>
    %30 = tpu.reciprocal %29 {approx = true} : vector<16x1xf32> -> vector<16x1xf32>
    %31 = vector.broadcast %30 : vector<16x1xf32> to vector<16x16xf32>
    %32 = arith.mulf %27, %31 : vector<16x16xf32>
    %33 = arith.truncf %32 : vector<16x16xf32> to vector<16x16xbf16>
    %34 = arith.truncf %17 : vector<16x32xf32> to vector<16x32xbf16>
    %cst_11 = arith.constant dense<0.000000e+00> : vector<16x32xf32>
    %35 = tpu.matmul %33, %34, %cst_11 {dimension_numbers = #tpu.dot_dimension_numbers<[1], [0], [0], [1], [0, 0, 1, 1], [], []>} : vector<16x16xbf16>, vector<16x32xbf16>, vector<16x32xf32> -> vector<16x32xf32>
    %c0_12 = arith.constant 0 : index
    %c0_13 = arith.constant 0 : index
    %36 = vector.load %arg15[%c0_12, %c0_13] : memref<16x128xf32, #tpu.memory_space<vmem>>, vector<16x32xf32>
    tpu.vector_store %arg15[%c0_12, %c0_13], %35 {strides = array<i32>} : memref<16x128xf32, #tpu.memory_space<vmem>>, vector<16x32xf32>,
    %37 = vector.extract_strided_slice %9 {offsets = [0, 32], sizes = [16, 32], strides = [1, 1]} : vector<16x384xf32> to vector<16x32xf32>
    %cst_14 = arith.constant 0.176776692 : f32
    %38 = vector.broadcast %cst_14 : f32 to vector<16x32xf32>
    %39 = arith.mulf %37, %38 : vector<16x32xf32>
    %40 = vector.extract_strided_slice %9 {offsets = [0, 160], sizes = [16, 32], strides = [1, 1]} : vector<16x384xf32> to vector<16x32xf32>
    %41 = vector.extract_strided_slice %9 {offsets = [0, 288], sizes = [16, 32], strides = [1, 1]} : vector<16x384xf32> to vector<16x32xf32>
    %42 = arith.truncf %39 : vector<16x32xf32> to vector<16x32xbf16>
    %43 = arith.truncf %40 : vector<16x32xf32> to vector<16x32xbf16>
    %cst_15 = arith.constant dense<0.000000e+00> : vector<16x16xf32>
    %44 = tpu.matmul %42, %43, %cst_15 {dimension_numbers = #tpu.dot_dimension_numbers<[1], [1], [0], [0], [0, 0, 1, 0], [], []>} : vector<16x32xbf16>, vector<16x32xbf16>, vector<16x16xf32> -> vector<16x16xf32>
    %cst_16 = arith.constant -1.000000e+30 : f32
    %45 = vector.broadcast %cst_16 : f32 to vector<16x16xf32>
    %46 = arith.select %12, %44, %45 : vector<16x16xi1>, vector<16x16xf32>
    %cst_17 = arith.constant dense<0xFF800000> : vector<16xf32>
    %47 = vector.multi_reduction <maximumf>, %46, %cst_17 [1] : vector<16x16xf32> to vector<16xf32>
    %48 = vector.shape_cast %47 : vector<16xf32> to vector<16x1xf32>
    %49 = vector.broadcast %48 : vector<16x1xf32> to vector<16x16xf32>
    %50 = arith.subf %46, %49 : vector<16x16xf32>
    %51 = math.exp %50 : vector<16x16xf32>
    %cst_18 = arith.constant dense<0.000000e+00> : vector<16xf32>
    %52 = vector.multi_reduction <add>, %51, %cst_18 [1] : vector<16x16xf32> to vector<16xf32>
    %53 = vector.shape_cast %52 : vector<16xf32> to vector<16x1xf32>
    %54 = tpu.reciprocal %53 {approx = true} : vector<16x1xf32> -> vector<16x1xf32>
    %55 = vector.broadcast %54 : vector<16x1xf32> to vector<16x16xf32>
    %56 = arith.mulf %51, %55 : vector<16x16xf32>
    %57 = arith.truncf %56 : vector<16x16xf32> to vector<16x16xbf16>
    %58 = arith.truncf %41 : vector<16x32xf32> to vector<16x32xbf16>
    %cst_19 = arith.constant dense<0.000000e+00> : vector<16x32xf32>
    %59 = tpu.matmul %57, %58, %cst_19 {dimension_numbers = #tpu.dot_dimension_numbers<[1], [0], [0], [1], [0, 0, 1, 1], [], []>} : vector<16x16xbf16>, vector<16x32xbf16>, vector<16x32xf32> -> vector<16x32xf32>
    %c0_20 = arith.constant 0 : index
    %c32 = arith.constant 32 : index
    %60 = vector.load %arg15[%c0_20, %c32] : memref<16x128xf32, #tpu.memory_space<vmem>>, vector<16x32xf32>
    tpu.vector_store %arg15[%c0_20, %c32], %59 {strides = array<i32>} : memref<16x128xf32, #tpu.memory_space<vmem>>, vector<16x32xf32>,
    %61 = vector.extract_strided_slice %9 {offsets = [0, 64], sizes = [16, 32], strides = [1, 1]} : vector<16x384xf32> to vector<16x32xf32>
    %cst_21 = arith.constant 0.176776692 : f32
    %62 = vector.broadcast %cst_21 : f32 to vector<16x32xf32>
    %63 = arith.mulf %61, %62 : vector<16x32xf32>
    %64 = vector.extract_strided_slice %9 {offsets = [0, 192], sizes = [16, 32], strides = [1, 1]} : vector<16x384xf32> to vector<16x32xf32>
    %65 = vector.extract_strided_slice %9 {offsets = [0, 320], sizes = [16, 32], strides = [1, 1]} : vector<16x384xf32> to vector<16x32xf32>
    %66 = arith.truncf %63 : vector<16x32xf32> to vector<16x32xbf16>
    %67 = arith.truncf %64 : vector<16x32xf32> to vector<16x32xbf16>
    %cst_22 = arith.constant dense<0.000000e+00> : vector<16x16xf32>
    %68 = tpu.matmul %66, %67, %cst_22 {dimension_numbers = #tpu.dot_dimension_numbers<[1], [1], [0], [0], [0, 0, 1, 0], [], []>} : vector<16x32xbf16>, vector<16x32xbf16>, vector<16x16xf32> -> vector<16x16xf32>
    %cst_23 = arith.constant -1.000000e+30 : f32
    %69 = vector.broadcast %cst_23 : f32 to vector<16x16xf32>
    %70 = arith.select %12, %68, %69 : vector<16x16xi1>, vector<16x16xf32>
    %cst_24 = arith.constant dense<0xFF800000> : vector<16xf32>
    %71 = vector.multi_reduction <maximumf>, %70, %cst_24 [1] : vector<16x16xf32> to vector<16xf32>
    %72 = vector.shape_cast %71 : vector<16xf32> to vector<16x1xf32>
    %73 = vector.broadcast %72 : vector<16x1xf32> to vector<16x16xf32>
    %74 = arith.subf %70, %73 : vector<16x16xf32>
    %75 = math.exp %74 : vector<16x16xf32>
    %cst_25 = arith.constant dense<0.000000e+00> : vector<16xf32>
    %76 = vector.multi_reduction <add>, %75, %cst_25 [1] : vector<16x16xf32> to vector<16xf32>
    %77 = vector.shape_cast %76 : vector<16xf32> to vector<16x1xf32>
    %78 = tpu.reciprocal %77 {approx = true} : vector<16x1xf32> -> vector<16x1xf32>
    %79 = vector.broadcast %78 : vector<16x1xf32> to vector<16x16xf32>
    %80 = arith.mulf %75, %79 : vector<16x16xf32>
    %81 = arith.truncf %80 : vector<16x16xf32> to vector<16x16xbf16>
    %82 = arith.truncf %65 : vector<16x32xf32> to vector<16x32xbf16>
    %cst_26 = arith.constant dense<0.000000e+00> : vector<16x32xf32>
    %83 = tpu.matmul %81, %82, %cst_26 {dimension_numbers = #tpu.dot_dimension_numbers<[1], [0], [0], [1], [0, 0, 1, 1], [], []>} : vector<16x16xbf16>, vector<16x32xbf16>, vector<16x32xf32> -> vector<16x32xf32>
    %c0_27 = arith.constant 0 : index
    %c64 = arith.constant 64 : index
    %84 = vector.load %arg15[%c0_27, %c64] : memref<16x128xf32, #tpu.memory_space<vmem>>, vector<16x32xf32>
    tpu.vector_store %arg15[%c0_27, %c64], %83 {strides = array<i32>} : memref<16x128xf32, #tpu.memory_space<vmem>>, vector<16x32xf32>,
    %85 = vector.extract_strided_slice %9 {offsets = [0, 96], sizes = [16, 32], strides = [1, 1]} : vector<16x384xf32> to vector<16x32xf32>
    %cst_28 = arith.constant 0.176776692 : f32
    %86 = vector.broadcast %cst_28 : f32 to vector<16x32xf32>
    %87 = arith.mulf %85, %86 : vector<16x32xf32>
    %88 = vector.extract_strided_slice %9 {offsets = [0, 224], sizes = [16, 32], strides = [1, 1]} : vector<16x384xf32> to vector<16x32xf32>
    %89 = vector.extract_strided_slice %9 {offsets = [0, 352], sizes = [16, 32], strides = [1, 1]} : vector<16x384xf32> to vector<16x32xf32>
    %90 = arith.truncf %87 : vector<16x32xf32> to vector<16x32xbf16>
    %91 = arith.truncf %88 : vector<16x32xf32> to vector<16x32xbf16>
    %cst_29 = arith.constant dense<0.000000e+00> : vector<16x16xf32>
    %92 = tpu.matmul %90, %91, %cst_29 {dimension_numbers = #tpu.dot_dimension_numbers<[1], [1], [0], [0], [0, 0, 1, 0], [], []>} : vector<16x32xbf16>, vector<16x32xbf16>, vector<16x16xf32> -> vector<16x16xf32>
    %cst_30 = arith.constant -1.000000e+30 : f32
    %93 = vector.broadcast %cst_30 : f32 to vector<16x16xf32>
    %94 = arith.select %12, %92, %93 : vector<16x16xi1>, vector<16x16xf32>
    %cst_31 = arith.constant dense<0xFF800000> : vector<16xf32>
    %95 = vector.multi_reduction <maximumf>, %94, %cst_31 [1] : vector<16x16xf32> to vector<16xf32>
    %96 = vector.shape_cast %95 : vector<16xf32> to vector<16x1xf32>
    %97 = vector.broadcast %96 : vector<16x1xf32> to vector<16x16xf32>
    %98 = arith.subf %94, %97 : vector<16x16xf32>
    %99 = math.exp %98 : vector<16x16xf32>
    %cst_32 = arith.constant dense<0.000000e+00> : vector<16xf32>
    %100 = vector.multi_reduction <add>, %99, %cst_32 [1] : vector<16x16xf32> to vector<16xf32>
    %101 = vector.shape_cast %100 : vector<16xf32> to vector<16x1xf32>
    %102 = tpu.reciprocal %101 {approx = true} : vector<16x1xf32> -> vector<16x1xf32>
    %103 = vector.broadcast %102 : vector<16x1xf32> to vector<16x16xf32>
    %104 = arith.mulf %99, %103 : vector<16x16xf32>
    %105 = arith.truncf %104 : vector<16x16xf32> to vector<16x16xbf16>
    %106 = arith.truncf %89 : vector<16x32xf32> to vector<16x32xbf16>
    %cst_33 = arith.constant dense<0.000000e+00> : vector<16x32xf32>
    %107 = tpu.matmul %105, %106, %cst_33 {dimension_numbers = #tpu.dot_dimension_numbers<[1], [0], [0], [1], [0, 0, 1, 1], [], []>} : vector<16x16xbf16>, vector<16x32xbf16>, vector<16x32xf32> -> vector<16x32xf32>
    %c0_34 = arith.constant 0 : index
    %c96 = arith.constant 96 : index
    %108 = vector.load %arg15[%c0_34, %c96] : memref<16x128xf32, #tpu.memory_space<vmem>>, vector<16x32xf32>
    tpu.vector_store %arg15[%c0_34, %c96], %107 {strides = array<i32>} : memref<16x128xf32, #tpu.memory_space<vmem>>, vector<16x32xf32>,
    %c0_35 = arith.constant 0 : index
    %c0_36 = arith.constant 0 : index
    %109 = vector.load %arg15[%c0_35, %c0_36] : memref<16x128xf32, #tpu.memory_space<vmem>>, vector<16x128xf32>
    %110 = arith.truncf %109 : vector<16x128xf32> to vector<16x128xbf16>
    %c0_37 = arith.constant 0 : index
    %c0_38 = arith.constant 0 : index
    %111 = vector.load %arg4[%c0_37, %c0_38] : memref<128x128xbf16, #tpu.memory_space<vmem>>, vector<128x128xbf16>
    %cst_39 = arith.constant dense<0.000000e+00> : vector<16x128xf32>
    %112 = tpu.matmul %110, %111, %cst_39 {dimension_numbers = #tpu.dot_dimension_numbers<[1], [0], [0], [1], [0, 0, 1, 1], [], []>} : vector<16x128xbf16>, vector<128x128xbf16>, vector<16x128xf32> -> vector<16x128xf32>
    %c0_40 = arith.constant 0 : index
    %c0_41 = arith.constant 0 : index
    %113 = vector.load %arg5[%c0_40, %c0_41] : memref<1x128xf32, #tpu.memory_space<vmem>>, vector<1x128xf32>
    %114 = vector.shape_cast %113 : vector<1x128xf32> to vector<128xf32>
    %115 = vector.shape_cast %114 : vector<128xf32> to vector<1x128xf32>
    %116 = vector.broadcast %115 : vector<1x128xf32> to vector<16x128xf32>
    %117 = arith.addf %112, %116 : vector<16x128xf32>
    %118 = arith.addf %1, %117 : vector<16x128xf32>
    %c0_42 = arith.constant 0 : index
    %c0_43 = arith.constant 0 : index
    %119 = vector.load %arg6[%c0_42, %c0_43] : memref<1x128xf32, #tpu.memory_space<vmem>>, vector<1x128xf32>
    %120 = vector.shape_cast %119 : vector<1x128xf32> to vector<128xf32>
    %c0_44 = arith.constant 0 : index
    %c0_45 = arith.constant 0 : index
    %121 = vector.load %arg7[%c0_44, %c0_45] : memref<1x128xf32, #tpu.memory_space<vmem>>, vector<1x128xf32>
    %122 = vector.shape_cast %121 : vector<1x128xf32> to vector<128xf32>
    %cst_46 = arith.constant dense<0.000000e+00> : vector<16xf32>
    %123 = vector.multi_reduction <add>, %118, %cst_46 [1] : vector<16x128xf32> to vector<16xf32>
    %124 = vector.shape_cast %123 : vector<16xf32> to vector<16x1xf32>
    %cst_47 = arith.constant 1.280000e+02 : f32
    %125 = vector.broadcast %cst_47 : f32 to vector<16x1xf32>
    %126 = arith.divf %124, %125 : vector<16x1xf32>
    %127 = vector.broadcast %126 : vector<16x1xf32> to vector<16x128xf32>
    %128 = arith.subf %118, %127 : vector<16x128xf32>
    %129 = arith.mulf %128, %128 : vector<16x128xf32>
    %cst_48 = arith.constant dense<0.000000e+00> : vector<16xf32>
    %130 = vector.multi_reduction <add>, %129, %cst_48 [1] : vector<16x128xf32> to vector<16xf32>
    %131 = vector.shape_cast %130 : vector<16xf32> to vector<16x1xf32>
    %cst_49 = arith.constant 1.280000e+02 : f32
    %132 = vector.broadcast %cst_49 : f32 to vector<16x1xf32>
    %133 = arith.divf %131, %132 : vector<16x1xf32>
    %134 = vector.broadcast %126 : vector<16x1xf32> to vector<16x128xf32>
    %135 = arith.subf %118, %134 : vector<16x128xf32>
    %cst_50 = arith.constant 9.99999974E-6 : f32
    %136 = vector.broadcast %cst_50 : f32 to vector<16x1xf32>
    %137 = arith.addf %133, %136 : vector<16x1xf32>
    %138 = math.rsqrt %137 : vector<16x1xf32>
    %139 = vector.broadcast %138 : vector<16x1xf32> to vector<16x128xf32>
    %140 = arith.mulf %135, %139 : vector<16x128xf32>
    %141 = vector.shape_cast %120 : vector<128xf32> to vector<1x128xf32>
    %142 = vector.broadcast %141 : vector<1x128xf32> to vector<16x128xf32>
    %143 = arith.mulf %140, %142 : vector<16x128xf32>
    %144 = vector.shape_cast %122 : vector<128xf32> to vector<1x128xf32>
    %145 = vector.broadcast %144 : vector<1x128xf32> to vector<16x128xf32>
    %146 = arith.addf %143, %145 : vector<16x128xf32>
    %147 = arith.truncf %146 : vector<16x128xf32> to vector<16x128xbf16>
    %c0_51 = arith.constant 0 : index
    %c0_52 = arith.constant 0 : index
    %148 = vector.load %arg8[%c0_51, %c0_52] : memref<128x512xbf16, #tpu.memory_space<vmem>>, vector<128x512xbf16>
    %cst_53 = arith.constant dense<0.000000e+00> : vector<16x512xf32>
    %149 = tpu.matmul %147, %148, %cst_53 {dimension_numbers = #tpu.dot_dimension_numbers<[1], [0], [0], [1], [0, 0, 1, 1], [], []>} : vector<16x128xbf16>, vector<128x512xbf16>, vector<16x512xf32> -> vector<16x512xf32>
    %c0_54 = arith.constant 0 : index
    %c0_55 = arith.constant 0 : index
    %150 = vector.load %arg9[%c0_54, %c0_55] : memref<1x512xf32, #tpu.memory_space<vmem>>, vector<1x512xf32>
    %151 = vector.shape_cast %150 : vector<1x512xf32> to vector<512xf32>
    %152 = vector.shape_cast %151 : vector<512xf32> to vector<1x512xf32>
    %153 = vector.broadcast %152 : vector<1x512xf32> to vector<16x512xf32>
    %154 = arith.addf %149, %153 : vector<16x512xf32>
    %cst_56 = arith.constant 0.000000e+00 : f32
    %155 = vector.broadcast %cst_56 : f32 to vector<16x512xf32>
    %156 = arith.maximumf %154, %155 : vector<16x512xf32>
    %157 = arith.truncf %156 : vector<16x512xf32> to vector<16x512xbf16>
    %c0_57 = arith.constant 0 : index
    %c0_58 = arith.constant 0 : index
    %158 = vector.load %arg10[%c0_57, %c0_58] : memref<512x128xbf16, #tpu.memory_space<vmem>>, vector<512x128xbf16>
    %cst_59 = arith.constant dense<0.000000e+00> : vector<16x128xf32>
    %159 = tpu.matmul %157, %158, %cst_59 {dimension_numbers = #tpu.dot_dimension_numbers<[1], [0], [0], [1], [0, 0, 1, 1], [], []>} : vector<16x512xbf16>, vector<512x128xbf16>, vector<16x128xf32> -> vector<16x128xf32>
    %c0_60 = arith.constant 0 : index
    %c0_61 = arith.constant 0 : index
    %160 = vector.load %arg11[%c0_60, %c0_61] : memref<1x128xf32, #tpu.memory_space<vmem>>, vector<1x128xf32>
    %161 = vector.shape_cast %160 : vector<1x128xf32> to vector<128xf32>
    %162 = vector.shape_cast %161 : vector<128xf32> to vector<1x128xf32>
    %163 = vector.broadcast %162 : vector<1x128xf32> to vector<16x128xf32>
    %164 = arith.addf %159, %163 : vector<16x128xf32>
    %165 = arith.addf %146, %164 : vector<16x128xf32>
    %c0_62 = arith.constant 0 : index
    %c0_63 = arith.constant 0 : index
    %166 = vector.load %arg12[%c0_62, %c0_63] : memref<1x128xf32, #tpu.memory_space<vmem>>, vector<1x128xf32>
    %167 = vector.shape_cast %166 : vector<1x128xf32> to vector<128xf32>
    %c0_64 = arith.constant 0 : index
    %c0_65 = arith.constant 0 : index
    %168 = vector.load %arg13[%c0_64, %c0_65] : memref<1x128xf32, #tpu.memory_space<vmem>>, vector<1x128xf32>
    %169 = vector.shape_cast %168 : vector<1x128xf32> to vector<128xf32>
    %cst_66 = arith.constant dense<0.000000e+00> : vector<16xf32>
    %170 = vector.multi_reduction <add>, %165, %cst_66 [1] : vector<16x128xf32> to vector<16xf32>
    %171 = vector.shape_cast %170 : vector<16xf32> to vector<16x1xf32>
    %cst_67 = arith.constant 1.280000e+02 : f32
    %172 = vector.broadcast %cst_67 : f32 to vector<16x1xf32>
    %173 = arith.divf %171, %172 : vector<16x1xf32>
    %174 = vector.broadcast %173 : vector<16x1xf32> to vector<16x128xf32>
    %175 = arith.subf %165, %174 : vector<16x128xf32>
    %176 = arith.mulf %175, %175 : vector<16x128xf32>
    %cst_68 = arith.constant dense<0.000000e+00> : vector<16xf32>
    %177 = vector.multi_reduction <add>, %176, %cst_68 [1] : vector<16x128xf32> to vector<16xf32>
    %178 = vector.shape_cast %177 : vector<16xf32> to vector<16x1xf32>
    %cst_69 = arith.constant 1.280000e+02 : f32
    %179 = vector.broadcast %cst_69 : f32 to vector<16x1xf32>
    %180 = arith.divf %178, %179 : vector<16x1xf32>
    %181 = vector.broadcast %173 : vector<16x1xf32> to vector<16x128xf32>
    %182 = arith.subf %165, %181 : vector<16x128xf32>
    %cst_70 = arith.constant 9.99999974E-6 : f32
    %183 = vector.broadcast %cst_70 : f32 to vector<16x1xf32>
    %184 = arith.addf %180, %183 : vector<16x1xf32>
    %185 = math.rsqrt %184 : vector<16x1xf32>
    %186 = vector.broadcast %185 : vector<16x1xf32> to vector<16x128xf32>
    %187 = arith.mulf %182, %186 : vector<16x128xf32>
    %188 = vector.shape_cast %167 : vector<128xf32> to vector<1x128xf32>
    %189 = vector.broadcast %188 : vector<1x128xf32> to vector<16x128xf32>
    %190 = arith.mulf %187, %189 : vector<16x128xf32>
    %191 = vector.shape_cast %169 : vector<128xf32> to vector<1x128xf32>
    %192 = vector.broadcast %191 : vector<1x128xf32> to vector<16x128xf32>
    %193 = arith.addf %190, %192 : vector<16x128xf32>
    %c0_71 = arith.constant 0 : index
    %c0_72 = arith.constant 0 : index
    %c0_73 = arith.constant 0 : index
    %194 = vector.load %arg14[%c0_71, %c0_72, %c0_73] : memref<1x16x128xf32, #tpu.memory_space<vmem>>, vector<1x16x128xf32>
    %195 = vector.shape_cast %194 : vector<1x16x128xf32> to vector<16x128xf32>
    %196 = vector.shape_cast %193 : vector<16x128xf32> to vector<1x16x128xf32>
    tpu.vector_store %arg14[%c0_71, %c0_72, %c0_73], %196 {strides = array<i32>} : memref<1x16x128xf32, #tpu.memory_space<vmem>>, vector<1x16x128xf32>,
    return
  }
  func.func @transform_0(%arg0: i32) -> (i32, i32, i32) {
    %c0_i32 = arith.constant 0 : i32
    %c0_i32_0 = arith.constant 0 : i32
    %c0_i32_1 = arith.constant 0 : i32
    return %arg0, %c0_i32, %c0_i32_0 : i32, i32, i32
  }
  func.func @transform_1(%arg0: i32) -> (i32, i32) {
    %c0_i32 = arith.constant 0 : i32
    %c0_i32_0 = arith.constant 0 : i32
    %c0_i32_1 = arith.constant 0 : i32
    return %c0_i32, %c0_i32_0 : i32, i32
  }
  func.func @transform_2(%arg0: i32) -> (i32, i32) {
    %c0_i32 = arith.constant 0 : i32
    %c0_i32_0 = arith.constant 0 : i32
    %c0_i32_1 = arith.constant 0 : i32
    return %c0_i32, %c0_i32_0 : i32, i32
  }
  func.func @transform_3(%arg0: i32) -> (i32, i32) {
    %c0_i32 = arith.constant 0 : i32
    %c0_i32_0 = arith.constant 0 : i32
    %c0_i32_1 = arith.constant 0 : i32
    return %c0_i32, %c0_i32_0 : i32, i32
  }
  func.func @transform_4(%arg0: i32) -> (i32, i32) {
    %c0_i32 = arith.constant 0 : i32
    %c0_i32_0 = arith.constant 0 : i32
    %c0_i32_1 = arith.constant 0 : i32
    return %c0_i32, %c0_i32_0 : i32, i32
  }
  func.func @transform_5(%arg0: i32) -> (i32, i32) {
    %c0_i32 = arith.constant 0 : i32
    %c0_i32_0 = arith.constant 0 : i32
    %c0_i32_1 = arith.constant 0 : i32
    return %c0_i32, %c0_i32_0 : i32, i32
  }
  func.func @transform_6(%arg0: i32) -> (i32, i32) {
    %c0_i32 = arith.constant 0 : i32
    %c0_i32_0 = arith.constant 0 : i32
    %c0_i32_1 = arith.constant 0 : i32
    return %c0_i32, %c0_i32_0 : i32, i32
  }
  func.func @transform_7(%arg0: i32) -> (i32, i32) {
    %c0_i32 = arith.constant 0 : i32
    %c0_i32_0 = arith.constant 0 : i32
    %c0_i32_1 = arith.constant 0 : i32
    return %c0_i32, %c0_i32_0 : i32, i32
  }
  func.func @transform_8(%arg0: i32) -> (i32, i32) {
    %c0_i32 = arith.constant 0 : i32
    %c0_i32_0 = arith.constant 0 : i32
    %c0_i32_1 = arith.constant 0 : i32
    return %c0_i32, %c0_i32_0 : i32, i32
  }
  func.func @transform_9(%arg0: i32) -> (i32, i32) {
    %c0_i32 = arith.constant 0 : i32
    %c0_i32_0 = arith.constant 0 : i32
    %c0_i32_1 = arith.constant 0 : i32
    return %c0_i32, %c0_i32_0 : i32, i32
  }
  func.func @transform_10(%arg0: i32) -> (i32, i32) {
    %c0_i32 = arith.constant 0 : i32
    %c0_i32_0 = arith.constant 0 : i32
    %c0_i32_1 = arith.constant 0 : i32
    return %c0_i32, %c0_i32_0 : i32, i32
  }
  func.func @transform_11(%arg0: i32) -> (i32, i32) {
    %c0_i32 = arith.constant 0 : i32
    %c0_i32_0 = arith.constant 0 : i32
    %c0_i32_1 = arith.constant 0 : i32
    return %c0_i32, %c0_i32_0 : i32, i32
  }
  func.func @transform_12(%arg0: i32) -> (i32, i32) {
    %c0_i32 = arith.constant 0 : i32
    %c0_i32_0 = arith.constant 0 : i32
    %c0_i32_1 = arith.constant 0 : i32
    return %c0_i32, %c0_i32_0 : i32, i32
  }
  func.func @transform_13(%arg0: i32) -> (i32, i32, i32) {
    %c0_i32 = arith.constant 0 : i32
    %c0_i32_0 = arith.constant 0 : i32
    %c0_i32_1 = arith.constant 0 : i32
    return %arg0, %c0_i32, %c0_i32_0 : i32, i32, i32
  }
}

</mosaic_0001>

<bundles_post_ra>
// kernel: transformer_forward.5
= control target key start
LH: loop header
LB: loop body
LE: loop exit
PB: predicated region body
PF: predicated region fallthrough
CT: control target
= control target key end

     0   :  { %8 = vsyncpa [#allocation4], 0  ;;  %s1043_s0 = inlined_call_operand.vmem [shape: f32[2,16,128], index: 0, kind: input, shape index: {}]   ;;  %s1044_s1 = inlined_call_operand.vmem [shape: bf16[128,384], index: 1, kind: input, shape index: {}]   ;;  %s1045_s2 = inlined_call_operand.vmem [shape: f32[1,384], index: 2, kind: input, shape index: {}]   ;;  %s1046_s3 = inlined_call_operand.hbm [shape: f32[2,16,384], index: 3, kind: output, shape index: {}]  }
   0x1   :  { %10 = vsyncpa [#allocation4 + $0x1], 0  ;;  %s846_s12 = smov 0   ;;  %s848_s13 = smov 0  }
   0x2   :  { %s850_s14 = smov 0   ;;  %s852_s15 = smov 0  }
   0x3   :  { %s854_s16 = smov 0   ;;  %s856_s17 = smov 0  }
   0x4   :  { %s858_s18 = smov 0   ;;  %s860_s19 = smov 0  }
   0x5   :  { %s862_s20 = smov 0   ;;  %s864_s21 = smov 0  }
   0x6 LB: > { %s553_s22 = sadd.s32 4294967295, %s818_s21   ;;  %s554_s23 = sadd.s32 4294967294, %s818_s21   ;;  %s818_s21 = sphi %s864_s21, %s16_s21   ;;  %s814_s20 = sphi %s862_s20, %s1058_s20   ;;  %s810_s19 = sphi %s860_s19, %s1057_s19   ;;  %s806_s18 = sphi %s858_s18, %s1056_s18   ;;  %s802_s17 = sphi %s856_s17, %s1055_s17   ;;  %s798_s16 = sphi %s854_s16, %s1054_s16   ;;  %s794_s15 = sphi %s852_s15, %s1053_s15   ;;  %s790_s14 = sphi %s850_s14, %s1052_s14   ;;  %s786_s13 = sphi %s848_s13, %s1051_s13   ;;  %s782_s12 = sphi %s846_s12, %s1050_s12  }
   0x7   : > { %s25_s24 = sadd.s32 1, %s810_s19  ;;  %s28_s25 = sadd.s32 1, %s814_s20 }
   0x8   : > { %p26_p0 = scmp.ge.s32.totalorder %s25_s24, 3  ;;  %s61_s26 = sadd.s32 1, %s798_s16 }
   0x9   : > { %p68_p1 = scmp.ne.s32.totalorder %s798_s16, %s794_s15  ;;  %p69_p2 = scmp.eq.s32.totalorder %s818_s21, 0 }
   0xa   : > { %s1060_s24 = smov (%p26_p0, %s25_s24), 0  ;;  %s1062_s25 = smov (!%p26_p0, %s28_s25), %s814_s20 }
   0xb   : > { %s58_s27 = ssub.s32 %s810_s19, %s1060_s24  ;;  %p909_p3 = por %p69_p2, %p68_p1 }
   0xc   : > { %p30_p4 = scmp.ge.s32.totalorder %s1062_s25, 2  ;;  %p59_p5 = scmp.eq.s32.totalorder %s58_s27, 0 }
   0xd   : > { %s115_s29 = sadd.s32 1, %s790_s14  ;;  %p125_p6 = scmp.ne.s32.totalorder %s790_s14, %s786_s13 }
   0xe   : > { %s1064_s25 = smov (%p30_p4, %s1062_s25), 0  ;;  %p126_p7 = scmp.eq.s32.totalorder %s553_s22, 5 }
   0xf   : > { %s919_s30 = scalar_select %p59_p5, %s798_s16, %s61_s26  }
  0x10   : > { %s110_s4 = ssub.s32 %s814_s20, %s1064_s25  ;;  %p131_p8 = scmp.ne.s32.totalorder %s786_s13, %s782_s12 }
  0x11   : > { %s112_s5 = sor.u32 %s110_s4, %s58_s27  ;;  %p925_p10 = por %p126_p7, %p125_p6 }
  0x12   : > { %p113_p9 = scmp.eq.s32.totalorder %s112_s5, 0  ;;  %p132_p11 = scmp.eq.s32.totalorder %s554_s23, 5 }
  0x13   : > { %p556_p13 = scmp.ge.s32.totalorder %s818_s21, 6 }
  0x14   : > { %s930_s7 = scalar_select %p113_p9, %s790_s14, %s115_s29  }
  0x15   : > { %p932_p12 = por %p132_p11, %p131_p8  ;;  %148 = sbr.rel (%p556_p13) target bundleno = 42 (0x2a), region = 16 }
  0x1c   : > { %159 = sbr.rel (!%p909_p3) target bundleno = 42 (0x2a), region = 24  ;;  %s161_s9 = sand.u32 (%p909_p3), 1, %s798_s16  }
  0x1d   : > { %s558_s10 = sshll.u32 (%p909_p3), %s810_s19, 2  ;;  %s557_s11 = sshll.u32 (%p909_p3), %s161_s9, 6 }
  0x1e   : > { %s944_s23 = scalar_lea.vmem (%p909_p3), %s1044_s1, %s558_s10  ;;  %s163_s27 = scalar_lea.vmem (%p909_p3), [#allocation2], %s557_s11 }
  0x1f   : > { %v181_v0 = vld [vmem:[%s944_s23] sm:$0xf] (%p909_p3)  ;;  %v183_v1 = vld [vmem:[%s944_s23 + $0xc] sm:$0xf] (%p909_p3)  ;;  %v185_v2 = vld [vmem:[%s944_s23 + $0x18] sm:$0xf] (%p909_p3) }
  0x20   : > { %182 = vst [vmem:[%s163_s27] sm:$0xf] (%p909_p3), %v181_v0  ;;  %184 = vst [vmem:[%s163_s27 + $0x4] sm:$0xf] (%p909_p3), %v183_v1  ;;  %v187_v3 = vld [vmem:[%s944_s23 + $0x24] sm:$0xf] (%p909_p3) }
  0x21   : > { %v189_v4 = vld [vmem:[%s944_s23 + $0x30] sm:$0xf] (%p909_p3)  ;;  %186 = vst [vmem:[%s163_s27 + $0x8] sm:$0xf] (%p909_p3), %v185_v2  ;;  %188 = vst [vmem:[%s163_s27 + $0xc] sm:$0xf] (%p909_p3), %v187_v3 }
  0x22   : > { %190 = vst [vmem:[%s163_s27 + $0x10] sm:$0xf] (%p909_p3), %v189_v4  ;;  %v191_v5 = vld [vmem:[%s944_s23 + $0x3c] sm:$0xf] (%p909_p3)  ;;  %v193_v6 = vld [vmem:[%s944_s23 + $0x48] sm:$0xf] (%p909_p3) }
  0x23   : > { %v195_v7 = vld [vmem:[%s944_s23 + $0x54] sm:$0xf]  ;;  %192 = vst [vmem:[%s163_s27 + $0x14] sm:$0xf] %v191_v5  ;;  %194 = vst [vmem:[%s163_s27 + $0x18] sm:$0xf] %v193_v6 }
  0x24   : > { %196 = vst [vmem:[%s163_s27 + $0x1c] sm:$0xf] %v195_v7  ;;  %v197_v8 = vld [vmem:[%s944_s23 + $0x60] sm:$0xf]  ;;  %v199_v9 = vld [vmem:[%s944_s23 + $0x6c] sm:$0xf] }
  0x25   : > { %v201_v10 = vld [vmem:[%s944_s23 + $0x78] sm:$0xf]  ;;  %198 = vst [vmem:[%s163_s27 + $0x20] sm:$0xf] %v197_v8  ;;  %200 = vst [vmem:[%s163_s27 + $0x24] sm:$0xf] %v199_v9 }
  0x26   : > { %202 = vst [vmem:[%s163_s27 + $0x28] sm:$0xf] %v201_v10  ;;  %v203_v11 = vld [vmem:[%s944_s23 + $0x84] sm:$0xf]  ;;  %v205_v12 = vld [vmem:[%s944_s23 + $0x90] sm:$0xf] }
  0x27   : > { %v207_v13 = vld [vmem:[%s944_s23 + $0x9c] sm:$0xf]  ;;  %204 = vst [vmem:[%s163_s27 + $0x2c] sm:$0xf] %v203_v11  ;;  %206 = vst [vmem:[%s163_s27 + $0x30] sm:$0xf] %v205_v12 }
  0x28   : > { %208 = vst [vmem:[%s163_s27 + $0x34] sm:$0xf] %v207_v13  ;;  %v209_v14 = vld [vmem:[%s944_s23 + $0xa8] sm:$0xf]  ;;  %v211_v15 = vld [vmem:[%s944_s23 + $0xb4] sm:$0xf] }
  0x29   : > { %210 = vst [vmem:[%s163_s27 + $0x38] sm:$0xf] %v209_v14  ;;  %212 = vst [vmem:[%s163_s27 + $0x3c] sm:$0xf] %v211_v15 }
  0x2a PF: > { %p559_p0 = scmp.ge.s32.totalorder %s818_s21, 1  ;;  %p272_p1 = scmp.lt.s32.totalorder %s818_s21, 7 }
  0x2c   : > { %p273_p2 = pnand %p559_p0, %p272_p1 }
  0x2d   : > { %s279_s28 = sand.u32 (!%p273_p2), 1, %s794_s15   ;;  %v820_v16 = vmov (!%p273_p2), 0.0   ;;  %vm821_vm0 = vmmov (!%p273_p2), 0   ;;  %p310_p3 = scmp.lt.s32.totalorder (!%p273_p2), %s806_s18, 1 }
  0x2e   : > { %276 = sbr.rel (%p273_p2) target bundleno = 312 (0x138), region = 69  ;;  %587 = vmatprep.subr.bf16.mxu0 (!%p273_p2), %v820_v16  ;;  %s560_s29 = sshll.u32 (!%p273_p2), %s279_s28, 6  ;;  %603 = vmatprep.mubr.msk.bf16.mxu0 (!%p273_p2), %vm821_vm0, %v820_v16 }
  0x2f   : > { %s281_s4 = scalar_lea.vmem (!%p273_p2), [#allocation2], %s560_s29  ;;  %p315_p4 = scmp.lt.s32.totalorder (!%p273_p2), %s802_s17, 2 }
  0x30   : > { %v700_v17 = vld [vmem:[%s281_s4] sm:$0xff] (!%p273_p2)   ;;  %v701_v18 = vld [vmem:[%s281_s4 + $0x8] sm:$0xff] (!%p273_p2)   ;;  %v702_v19 = vld [vmem:[%s281_s4 + $0x10] sm:$0xff] (!%p273_p2)   ;;  %s307_s22 = sand.u32 (!%p273_p2), 1, %s786_s13   ;;  %s607_s27 = smul.u32 (!%p273_p2), 6, %s806_s18 }
  0x31   : > { %588 = vmatpush3.bf16.msra.mxu0 (!%p273_p2), %v700_v17  ;;  %v703_v20 = vld [vmem:[%s281_s4 + $0x18] sm:$0xff] (!%p273_p2)   ;;  %v704_v21 = vld [vmem:[%s281_s4 + $0x20] sm:$0xff] (!%p273_p2)   ;;  %v705_v22 = vld [vmem:[%s281_s4 + $0x28] sm:$0xff] (!%p273_p2)   ;;  %s561_s23 = sshll.u32 (!%p273_p2), %s307_s22, 4 }
  0x32   : > { %589 = vmatprep.subr.bf16.mxu0 (!%p273_p2), %v820_v16  ;;  %v706_v23 = vld [vmem:[%s281_s4 + $0x30] sm:$0xff] (!%p273_p2)   ;;  %v707_v24 = vld [vmem:[%s281_s4 + $0x38] sm:$0xff] (!%p273_p2)   ;;  %s448_s9 = sadd.s32 (!%p273_p2), %s802_s17, %s607_s27 }
  0x33   : > { %s574_s10 = sshll.u32 (!%p273_p2), %s448_s9, 7 }
  0x34   : > { %s983_s28 = scalar_lea.hbm (!%p273_p2), %s1046_s3, %s574_s10 }
  0x35   : > { %590 = vmatpush3.bf16.msra.mxu0 %v701_v18  ;;  %s311_s15 = scalar_select %p310_p3, %s806_s18, 1 }
  0x36   : > { %591 = vmatprep.subr.bf16.mxu0 %v820_v16  ;;  %s316_s26 = scalar_select %p315_p4, %s802_s17, 2 }
  0x37   : > { %s577_s5 = sshll.u32 %s311_s15, 4  ;;  %s985_s17 = scalar_lea.sflag [#allocation4], %s307_s22 }
  0x38   : > { %s314_s11 = scalar_lea.vmem %s1043_s0, %s577_s5  ;;  %s317_s15 = scalar_lea.vmem %s1045_s2, %s316_s26 }
  0x39   : > { %592 = vmatpush3.bf16.msra.mxu0 %v702_v19  ;;  %v319_v25 = vld [vmem:[%s314_s11] sm:$0xff]  ;;  %v320_v26 = vld [vmem:[%s314_s11 + $0x8] sm:$0xff]  ;;  %s309_s5 = scalar_lea.vmem [#allocation3], %s561_s23  ;;  %s822_s23 = smov [#allocation3]  }
  0x3a   : > { %593 = vmatprep.subr.bf16.mxu0 %v820_v16  ;;  %v321_v27 = vpack.c.bf16 %v320_v26, %v319_v25  ;;  %v564_v28 = vld [vmem:[%s317_s15] ss:$0 sm:$0xff]  ;;  %s451_s4 = sshll.u32 %s309_s5, 4  ;;  %s712_s27 = sshll.u32 %s822_s23, 4  ;;  %s978_s4 = int_to_ptr.vmem [resolvable:$true] %s451_s4  ;;  %s713_s27 = int_to_ptr.vmem [resolvable:$false] %s712_s27 }
  0x3b   : > { %s708_s26 = scalar_lea.vmem %s978_s4, 256  ;;  %s714_s29 = scalar_lea.vmem %s713_s27, 512 }
  0x3c   : > { %p709_p5 = scmp.ne.s32.totalorder %s978_s4, %s708_s26  ;;  %p715_p8 = scmp.lt.s32.totalorder %s978_s4, %s713_s27 }
  0x3d   : > { %594 = vmatpush3.bf16.msra.mxu0 %v703_v20  ;;  %p716_p9 = scmp.lt.s32.totalorder %s714_s29, %s708_s26 }
  0x3e   : > { %595 = vmatprep.subr.bf16.mxu0 %v820_v16  ;;  %p710_p6 = pnand %p709_p5, %p925_p10 }
  0x3f   : > { %p717_p11 = por %p716_p9, %p715_p8 }
  0x40   : > { %p711_p7 = pneg %p710_p6 }
  0x41   : > { %596 = vmatpush3.bf16.msra.mxu0 %v704_v21 }
  0x42   : > { %597 = vmatprep.subr.bf16.mxu0 %v820_v16  ;;  %p718_p13 = pnand %p717_p11, %p711_p7 }
  0x45   : > { %598 = vmatpush3.bf16.msra.mxu0 %v705_v22 }
  0x46   : > { %599 = vmatprep.subr.bf16.mxu0 %v820_v16 }
  0x49   : > { %600 = vmatpush3.bf16.msra.mxu0 %v706_v23 }
  0x4a   : > { %601 = vmatprep.subr.bf16.mxu0 %v820_v16 }
  0x4d   : > { %602 = vmatpush3.bf16.msra.mxu0 %v707_v24 }
  0x50   : > { %604 = vmatmul.mubr.bf16.vlgmr.msra.gmra.mrb[0].mxu0 %v321_v27 }
 0x123   : > { %v427_v29 = vpop.f32.mrb[0].mxu0 }
 0x124   : > { %v428_v30 = vadd.f32 %v564_v28, %v427_v29  ;;  %v605_v31 = vpop.f32.mrb[1].mxu0 }
 0x125   : > { %v430_v32 = vpop.f32.mrb[2].mxu0 }
 0x126   : > { %434 = vst [vmem:[%s309_s5] sm:$0xff] %v428_v30  ;;  %v431_v33 = vadd.f32 %v564_v28, %v430_v32  ;;  %v606_v34 = vpop.f32.mrb[3].mxu0 }
 0x128   : > { %435 = vst [vmem:[%s309_s5 + $0x8] sm:$0xff] %v431_v33 }
 0x129   : > { %721 = shalt.err (!%p718_p13)
}
 0x12a   : > { %s722_s22 = scalar_lea.hbm %s983_s28, 256  ;;  %s726_s5 = scalar_lea.hbm %s1046_s3, 1536 }
 0x12b   : > { %p723_p0 = scmp.ne.s32.totalorder %s983_s28, %s722_s22  ;;  %p727_p3 = scmp.lt.u32.totalorder %s983_s28, %s1046_s3 }
 0x12c   : > { %p728_p4 = scmp.lt.u32.totalorder %s726_s5, %s722_s22  ;;  %p730_p6 = scmp.lt.u32.totalorder %s722_s22, %s983_s28 }
 0x12d   : > { %p724_p1 = pnand %p723_p0, %p925_p10 }
 0x12e   : > { %p729_p5 = por %p728_p4, %p727_p3 }
 0x12f   : > { %p725_p2 = pneg %p724_p1 }
 0x130   : > { %p731_p7 = por %p730_p6, %p729_p5 }
 0x132   : > { %p732_p8 = pnand %p731_p7, %p725_p2 }
 0x134   : > { %735 = shalt.err (!%p732_p8)
}
 0x135   : > { %s823_s11 = smov 128   ;;  %s824_s26 = smov 384  }
 0x136   : > { %s825_s23 = smov 8  }
 0x137   : > { %608 = dma.vmem_to_hbm [thread:$0]  (%p925_p10), %s978_s4, 256, %s983_s28, %s985_s17, %s823_s11, %s824_s26, %s825_s23  }
 0x138 PF: > { %p614_p9 = scmp.ge.s32.totalorder %s818_s21, 2  ;;  %s466_s27 = sand.u32 1, %s782_s12  }
 0x139   : > { %s467_s29 = scalar_lea.sflag [#allocation4], %s466_s27 }
 0x13a   : > { %p611_p11 = pnand %p614_p9, %p932_p12 }
 0x13c   : > { %777 = dma.done.wait (!%p611_p11), %s467_s29, 256  }
 0x13d   : > { %779 = vsyncadd (!%p611_p11), %s467_s29, 4294967040  ;;  %s16_s21 = sadd.s32 1, %s818_s21   ;;  %s1050_s12 = smov %s786_s13 }
 0x13e   : > { %p13_p13 = scmp.ge.s32.totalorder %s16_s21, 8   ;;  %s1051_s13 = smov %s790_s14 }
 0x13f   : > { %s1052_s14 = smov %s930_s7  ;;  %s1053_s15 = smov %s798_s16 }
 0x140   : > { %s1054_s16 = smov %s919_s30  ;;  %s1055_s17 = smov %s810_s19 }
 0x141   : > { %s1056_s18 = smov %s814_s20  ;;  %s1057_s19 = smov %s1060_s24 }
 0x142   : > { %s1058_s20 = smov %s1064_s25  ;;  %15 = sbr.rel (!%p13_p13) target bundleno = 6 (0x6), region = 119 }
 0x149   :  { %472 = vsyncpa [#allocation4], 1 }
 0x14a   :  { %474 = vsyncpa [#allocation4 + $0x1], 1 }

// kernel: transformer_forward.4
= control target key start
LH: loop header
LB: loop body
LE: loop exit
PB: predicated region body
PF: predicated region fallthrough
CT: control target
= control target key end

     0   :  { %s2705_s25 = smov 0   ;;  %s3216_s0 = inlined_call_operand.vmem [shape: f32[2,16,128], index: 0, kind: input, shape index: {}]   ;;  %s3217_s1 = inlined_call_operand.vmem [shape: bf16[128,384], index: 1, kind: input, shape index: {}]   ;;  %s3218_s2 = inlined_call_operand.vmem [shape: f32[1,384], index: 2, kind: input, shape index: {}]   ;;  %s3219_s3 = inlined_call_operand.vmem [shape: bf16[128,128], index: 3, kind: input, shape index: {}]   ;;  %s3220_s4 = inlined_call_operand.vmem [shape: f32[1,128], index: 4, kind: input, shape index: {}]   ;;  %s3221_s5 = inlined_call_operand.vmem [shape: f32[1,128], index: 5, kind: input, shape index: {}]   ;;  %s3222_s6 = inlined_call_operand.vmem [shape: f32[1,128], index: 6, kind: input, shape index: {}]   ;;  %s3223_s7 = inlined_call_operand.vmem [shape: bf16[128,512], index: 7, kind: input, shape index: {}]   ;;  %s3224_s8 = inlined_call_operand.vmem [shape: f32[1,512], index: 8, kind: input, shape index: {}]   ;;  %s3225_s9 = inlined_call_operand.vmem [shape: bf16[512,128], index: 9, kind: input, shape index: {}]   ;;  %s3226_s10 = inlined_call_operand.vmem [shape: f32[1,128], index: 10, kind: input, shape index: {}]   ;;  %s3227_s11 = inlined_call_operand.vmem [shape: f32[1,128], index: 11, kind: input, shape index: {}]   ;;  %s3228_s12 = inlined_call_operand.vmem [shape: f32[1,128], index: 12, kind: input, shape index: {}]   ;;  %s3229_s13 = inlined_call_operand.vmem [shape: f32[2,16,128], index: 13, kind: output, shape index: {}]  }
   0x1 LB: > { %s2158_s26 = sadd.s32 4294967295, %s2627_s25   ;;  %p2162_p0 = scmp.ge.s32.totalorder %s2627_s25, 1  ;;  %s2627_s25 = sphi %s2705_s25, %s23_s25  }
   0x2   : > { %p387_p1 = scmp.lt.s32.totalorder %s2627_s25, 3 }
   0x4   : > { %p388_p2 = pnand %p2162_p0, %p387_p1 }
   0x5   : > { %v2461_v0 = vld [vmem:[%s3217_s1 + $0x4] ss:$12 sps:$4 sm:$0xff] (!%p388_p2)   ;;  %v2463_v1 = vld [vmem:[%s3217_s1] ss:$12 sps:$4 sm:$0xff] (!%p388_p2)   ;;  %v2629_v2 = vmov (!%p388_p2), 0   ;;  %v2630_v4 = vmov (!%p388_p2), 0.0   ;;  %v479_v29 = vlaneseq (!%p388_p2) }
   0x6   : > { %391 = sbr.rel (%p388_p2) target bundleno = 2997 (0xbb5), region = 72  ;;  %654 = vmatprep.mubr.bf16.mxu0 (!%p388_p2), %v2629_v2  ;;  %622 = vmatprep.subr.bf16.mxu0 (!%p388_p2), %v2461_v0  ;;  %v2464_v3 = vld [vmem:[%s3217_s1 + $0x1c] ss:$12 sps:$4 sm:$0xff] (!%p388_p2)   ;;  %v2466_v5 = vld [vmem:[%s3217_s1 + $0x18] ss:$12 sps:$4 sm:$0xff] (!%p388_p2)   ;;  %p431_p3 = scmp.lt.s32.totalorder (!%p388_p2), %s2158_s26, 1 }
   0x7   : > { %2359 = vmatprep.subr.bf16.mxu1 (!%p388_p2), %v2630_v4  ;;  %623 = vmatpush1.bf16.msra.mxu0 (!%p388_p2), %v2463_v1  ;;  %v2467_v6 = vld [vmem:[%s3217_s1 + $0x34] ss:$12 sps:$4 sm:$0xff] (!%p388_p2)   ;;  %v2469_v7 = vld [vmem:[%s3217_s1 + $0x30] ss:$12 sps:$4 sm:$0xff] (!%p388_p2)   ;;  %v2470_v8 = vld [vmem:[%s3217_s1 + $0x4c] ss:$12 sps:$4 sm:$0xff] (!%p388_p2)  }
   0x8   : > { %624 = vmatprep.subr.bf16.mxu0 (!%p388_p2), %v2464_v3  ;;  %v2472_v9 = vld [vmem:[%s3217_s1 + $0x48] ss:$12 sps:$4 sm:$0xff] (!%p388_p2)   ;;  %v2473_v10 = vld [vmem:[%s3217_s1 + $0x64] ss:$12 sps:$4 sm:$0xff] (!%p388_p2)   ;;  %v2486_v12 = vld [vmem:[%s3217_s1 + $0x20] ss:$12 sps:$4 sm:$0xff] (!%p388_p2)  }
   0x9   : > { %v2485_v11 = vld [vmem:[%s3217_s1 + $0x8] ss:$12 sps:$4 sm:$0xff] (!%p388_p2)   ;;  %v2475_v13 = vld [vmem:[%s3217_s1 + $0x60] ss:$12 sps:$4 sm:$0xff] (!%p388_p2)   ;;  %v2478_v15 = vld [vmem:[%s3217_s1 + $0x78] ss:$12 sps:$4 sm:$0xff] (!%p388_p2)  }
   0xa   : > { %2360 = vmatpush3.bf16.msra.mxu1 (!%p388_p2), %v2485_v11  ;;  %v2476_v14 = vld [vmem:[%s3217_s1 + $0x7c] ss:$12 sps:$4 sm:$0xff] (!%p388_p2)   ;;  %v2479_v16 = vld [vmem:[%s3217_s1 + $0x94] ss:$12 sps:$4 sm:$0xff] (!%p388_p2)   ;;  %v2487_v17 = vld [vmem:[%s3217_s1 + $0x38] ss:$12 sps:$4 sm:$0xff] (!%p388_p2)  }
   0xb   : > { %625 = vmatpush1.bf16.msra.mxu0 (!%p388_p2), %v2466_v5  ;;  %2361 = vmatprep.subr.bf16.mxu1 (!%p388_p2), %v2630_v4  ;;  %v2488_v18 = vld [vmem:[%s3217_s1 + $0x50] ss:$12 sps:$4 sm:$0xff] (!%p388_p2)   ;;  %v2482_v20 = vld [vmem:[%s3217_s1 + $0xac] ss:$12 sps:$4 sm:$0xff] (!%p388_p2)   ;;  %v2489_v21 = vld [vmem:[%s3217_s1 + $0x68] ss:$12 sps:$4 sm:$0xff] (!%p388_p2)  }
   0xc   : > { %626 = vmatprep.subr.bf16.mxu0 (!%p388_p2), %v2467_v6  ;;  %v2481_v19 = vld [vmem:[%s3217_s1 + $0x90] ss:$12 sps:$4 sm:$0xff] (!%p388_p2)   ;;  %v2484_v22 = vld [vmem:[%s3217_s1 + $0xa8] ss:$12 sps:$4 sm:$0xff] (!%p388_p2)   ;;  %v2490_v25 = vld [vmem:[%s3217_s1 + $0x80] ss:$12 sps:$4 sm:$0xff] (!%p388_p2)  }
   0xd   : > { %s3231_s26 = smov (!%p431_p3, %s2158_s26), 1  ;;  %v2491_v27 = vld [vmem:[%s3217_s1 + $0x98] ss:$12 sps:$4 sm:$0xff]   ;;  %v2492_v28 = vld [vmem:[%s3217_s1 + $0xb0] ss:$12 sps:$4 sm:$0xff]   ;;  %vm2631_vm0 = vmmov 0  }
   0xe   : > { %s2279_s15 = sshll.u32 %s3231_s26, 4  ;;  %2362 = vmatpush3.bf16.msra.mxu1 %v2486_v12  ;;  %2375 = vmatprep.mubr.msk.bf16.mxu1 %vm2631_vm0, %v2630_v4  ;;  %v2816_v30 = vshrl.u32 %v479_v29, 7  ;;  %v477_v32 = vld [vmem:[%s3218_s2] sm:$0x7]  ;;  %vm717_vm1 = vcmask 261120   ;;  %v2839_v58 = vand.u32 127, %v479_v29 }
   0xf   : > { %627 = vmatpush1.bf16.msra.mxu0 %v2469_v7  ;;  %2363 = vmatprep.subr.bf16.mxu1 %v2630_v4  ;;  %s435_s22 = scalar_lea.vmem %s3216_s0, %s2279_s15  ;;  %vm767_vm3 = vcmask 130048   ;;  %s2632_s21 = smov 96   ;;  %vm972_vm5 = vcmask 523520   ;;  %vm1106_vm6 = vcmask 785920   ;;  %vm1240_vm7 = vcmask 1048320  }
  0x10   : > { %628 = vmatprep.subr.bf16.mxu0 %v2470_v8  ;;  %v2789_v23 = vld [vmem:[%s435_s22] sm:$0xff]  ;;  %v2791_v24 = vld [vmem:[%s435_s22 + $0x8] sm:$0xff]  ;;  %v481_v31 = vsub.s32 0, %v2816_v30  ;;  %v485_v33 = vsub.s32 1, %v2816_v30  ;;  %v489_v49 = vsub.s32 2, %v2816_v30  ;;  %v2842_v59 = vadd.s32 8, %v2816_v30  ;;  %s440_s16 = scalar_lea.vmem %s3229_s13, %s2279_s15 }
  0x11   : > { %v444_v26 = vpack.c.bf16 %v2791_v24, %v2789_v23  ;;  %vm711_vm2 = vcmp.le.s32.totalorder %v2839_v58, %v2816_v30  ;;  %s2633_s22 = smov 32   ;;  %s2634_s23 = smov 64  }
  0x12   : > { %2364 = vmatpush3.bf16.msra.mxu1 %v2487_v17  ;;  %v482_v34 = vrot.slane %v477_v32, %v481_v31  ;;  %v486_v36 = vrot.slane %v477_v32, %v485_v33  ;;  %v490_v50 = vrot.slane %v477_v32, %v489_v49  ;;  %vm712_vm4 = vcmp.le.s32.totalorder %v2839_v58, %v2842_v59 }
  0x13   : > { %629 = vmatpush1.bf16.msra.mxu0 %v2472_v9  ;;  %2365 = vmatprep.subr.bf16.mxu1 %v2630_v4 }
  0x14   : > { %630 = vmatprep.subr.bf16.mxu0 %v2473_v10 }
  0x16   : > { %2366 = vmatpush3.bf16.msra.mxu1 %v2488_v18 }
  0x17   : > { %631 = vmatpush1.bf16.msra.mxu0 %v2475_v13  ;;  %2367 = vmatprep.subr.bf16.mxu1 %v2630_v4 }
  0x18   : > { %632 = vmatprep.subr.bf16.mxu0 %v2476_v14 }
  0x1a   : > { %2368 = vmatpush3.bf16.msra.mxu1 %v2489_v21 }
  0x1b   : > { %633 = vmatpush1.bf16.msra.mxu0 %v2478_v15  ;;  %2369 = vmatprep.subr.bf16.mxu1 %v2630_v4 }
  0x1c   : > { %634 = vmatprep.subr.bf16.mxu0 %v2479_v16 }
  0x1e   : > { %2370 = vmatpush3.bf16.msra.mxu1 %v2490_v25 }
  0x1f   : > { %635 = vmatpush1.bf16.msra.mxu0 %v2481_v19  ;;  %2371 = vmatprep.subr.bf16.mxu1 %v2630_v4 }
  0x20   : > { %636 = vmatprep.subr.bf16.mxu0 %v2482_v20 }
  0x22   : > { %2372 = vmatpush3.bf16.msra.mxu1 %v2491_v27 }
  0x23   : > { %637 = vmatpush1.bf16.msra.mxu0 %v2484_v22  ;;  %2373 = vmatprep.subr.bf16.mxu1 %v2630_v4 }
  0x24   : > { %2403 = vmatprep.subr.bf16.mxu0 %v2630_v4 }
  0x26   : > { %655 = vmatmul.mubr.bf16.vlgmr.msra.gmra.mrb[0].mxu0 %v444_v26  ;;  %2374 = vmatpush3.bf16.msra.mxu1 %v2492_v28 }
  0x27   : > { %2379 = vmatprep.subr.bf16.mxu1 %v2630_v4  ;;  %2405 = vmatprep.mubr.msk.bf16.mxu0 %vm2631_vm0, %v2630_v4 }
  0x29   : > { %2376 = vmatmul.mubr.bf16.vlgmr.msra.gmra.mrb[0].mxu1 %v444_v26 }
  0x2a   : > { %2381 = vmatprep.mubr.msk.bf16.mxu1 %vm2631_vm0, %v2630_v4 }
  0xf9   : > { %v656_v35 = vpop.f32.mrb[0].mxu0 }
  0xfa   : > { %v657_v37 = vadd.f32 %v656_v35, %v482_v34  ;;  %v658_v38 = vpop.f32.mrb[1].mxu0 }
  0xfb   : > { %v660_v39 = vpop.f32.mrb[2].mxu0  ;;  %v659_v42 = vadd.f32 %v658_v38, %v486_v36 }
  0xfc   : > { %v661_v40 = vadd.f32 %v660_v39, %v482_v34  ;;  %v662_v41 = vpop.f32.mrb[3].mxu0  ;;  %v713_v44 = vmul.f32 0.17677669, %v657_v37  ;;  %v699_v51 = vpop.f32.mrb[0].mxu1 }
  0xfd   : > { %v663_v43 = vadd.f32 %v662_v41, %v486_v36  ;;  %v700_v52 = vadd.f32 %v699_v51, %v490_v50  ;;  %v2377_v53 = vpop.f32.mrb[1].mxu1 }
  0xfe   : > { %v714_v45 = vmul.f32 0.17677669, %v661_v40  ;;  %v702_v54 = vpop.f32.mrb[2].mxu1 }
  0xff   : > { %v716_v46 = vpack.c.bf16 %v663_v43, %v659_v42  ;;  %v703_v55 = vadd.f32 %v702_v54, %v490_v50  ;;  %v2378_v56 = vpop.f32.mrb[3].mxu1 }
 0x100   : > { %v715_v47 = vpack.c.bf16 %v714_v45, %v713_v44 }
 0x101   : > { %v722_v48 = vsel %vm717_vm1, %v716_v46, 0  ;;  %v2835_v57 = vpack.c.bf16 %v703_v55, %v700_v52 }
 0x102   : > { %2380 = vmatpush3.bf16.xpose.msra.mxu1 %v722_v48 }
 0x103   : > { %2385 = vmatprep.subr.bf16.mxu1 %v2630_v4 }
 0x109   : > { %2382 = vmatmul.mubr.msk.bf16.vlgmr.msra.gmra.mrb[4].mxu1 %vm717_vm1, %v715_v47 }
 0x10a   : > { %2387 = vmatprep.mubr.msk.bf16.mxu1 %vm2631_vm0, %v2630_v4  ;;  %2386 = vmatpush3.bf16.msra.mxu1 %v2835_v57 }
 0x10b   : > { %2391 = vmatprep.subr.bf16.mxu1 %v2630_v4 }
 0x1dc   : > { %v758_v60 = vpop.f32.mrb[4].mxu1 }
 0x1dd   : > { %v765_v61 = vsel %vm711_vm2, %v758_v60, -1e+30  ;;  %v2383_v62 = vpop.f32.mrb[5].mxu1 }
 0x1de   : > { %v761_v63 = vpop.f32.mrb[6].mxu1  ;;  %v768_v0 = vsel %vm767_vm3, %v765_v61, -inf }
 0x1df   : > { %v766_v1 = vsel %vm712_vm4, %v761_v63, -1e+30  ;;  %769 = vmax.xlane.f32.xlu0 %v768_v0  ;;  %v2384_v3 = vpop.f32.mrb[7].mxu1 }
 0x1e0   : > { %v771_v5 = vsel %vm767_vm3, %v766_v1, -inf }
 0x1e3   : > { %772 = vmax.xlane.f32.xlu0 %v771_v5 }
 0x1f9   : > { %842 = vrot.lane.b32.xlu0 %v716_v46, %s2632_s21 }
 0x1fd   : > { %1111 = vrot.lane.b32.xlu0 %v716_v46, %s2633_s22 }
 0x26c   : > { %v770_v6 = vpop.xlane.xlu0 %769 }
 0x26d   : > { %v774_v7 = vsub.f32 %v765_v61, %v770_v6 }
 0x26f   : > { %v776_v8 = vmul.f32 1.442695, %v774_v7 }
 0x270   : > { %v773_v9 = vpop.xlane.xlu0 %772 }
 0x271   : > { %2581 = vpow2.f32 %v776_v8  ;;  %v775_v10 = vsub.f32 %v766_v1, %v773_v9 }
 0x273   : > { %v778_v11 = vmul.f32 1.442695, %v775_v10 }
 0x274   : > { %v843_v19 = vpop.permute.xlu0 %842 }
 0x275   : > { %2583 = vpow2.f32 %v778_v11  ;;  %v848_v32 = vsel %vm717_vm1, %v843_v19, 0 }
 0x278   : > { %v1112_v28 = vpop.permute.xlu0 %1111 }
 0x279   : > { %v1117_v35 = vsel %vm717_vm1, %v1112_v28, 0 }
 0x27b   : > { %v2582_v12 = vpop.eup %2581 }
 0x27c   : > { %v780_v13 = vsel %vm767_vm3, %v2582_v12, 0.0 }
 0x27d   : > { %781 = vadd.xlane.f32.xlu1 %v780_v13 }
 0x27f   : > { %v2584_v14 = vpop.eup %2583 }
 0x280   : > { %v783_v15 = vsel %vm767_vm3, %v2584_v14, 0.0 }
 0x281   : > { %784 = vadd.xlane.f32.xlu1 %v783_v15 }
 0x292   : > { %839 = vrot.lane.b32.xlu1 %v715_v47, %s2632_s21 }
 0x296   : > { %977 = vrot.lane.b32.xlu1 %v716_v46, %s2634_s23 }
 0x29a   : > { %975 = vrot.lane.b32.xlu1 %v715_v47, %s2634_s23 }
 0x29e   : > { %1109 = vrot.lane.b32.xlu1 %v715_v47, %s2633_s22 }
 0x30a   : > { %v782_v16 = vpop.xlane.xlu1 %781 }
 0x30b   : > { %2585 = vrcp.f32 %v782_v16 }
 0x30e   : > { %v785_v17 = vpop.xlane.xlu1 %784 }
 0x30f   : > { %2587 = vrcp.f32 %v785_v17 }
 0x312   : > { %v840_v18 = vpop.permute.xlu1 %839 }
 0x315   : > { %v2586_v21 = vpop.eup %2585 }
 0x316   : > { %v978_v20 = vpop.permute.xlu1 %977  ;;  %v788_v26 = vmul.f32 %v2586_v21, %v2582_v12 }
 0x317   : > { %v983_v22 = vsel %vm717_vm1, %v978_v20, 0 }
 0x318   : > { %2404 = vmatpush3.bf16.xpose.msra.mxu0 %v983_v22 }
 0x319   : > { %v2588_v25 = vpop.eup %2587  ;;  %2415 = vmatprep.subr.bf16.mxu0 %v2630_v4 }
 0x31a   : > { %v789_v27 = vmul.f32 %v2588_v25, %v2584_v14  ;;  %v976_v34 = vpop.permute.xlu1 %975 }
 0x31c   : > { %v790_v29 = vpack.c.bf16 %v789_v27, %v788_v26 }
 0x31e   : > { %2388 = vmatmul.mubr.msk.bf16.vlgmr.msra.gmra.mrb[8].mxu1 %vm767_vm3, %v790_v29  ;;  %v1110_v36 = vpop.permute.xlu1 %1109 }
 0x31f   : > { %2392 = vmatpush3.bf16.xpose.msra.mxu1 %v848_v32  ;;  %2406 = vmatmul.mubr.msk.bf16.vlgmr.msra.gmra.mrb[4].mxu0 %vm717_vm1, %v976_v34 }
 0x320   : > { %2416 = vmatpush3.bf16.xpose.msra.mxu0 %v1117_v35  ;;  %2393 = vmatprep.mubr.msk.bf16.mxu1 %vm2631_vm0, %v2630_v4 }
 0x321   : > { %2417 = vmatprep.mubr.msk.bf16.mxu0 %vm2631_vm0, %v2630_v4  ;;  %2397 = vmatprep.subr.bf16.mxu1 %v2630_v4 }
 0x322   : > { %2427 = vmatprep.subr.bf16.mxu0 %v2630_v4 }
 0x326   : > { %2394 = vmatmul.mubr.msk.bf16.vlgmr.msra.gmra.mrb[12].mxu1 %vm717_vm1, %v840_v18 }
 0x327   : > { %2418 = vmatmul.mubr.msk.bf16.vlgmr.msra.gmra.mrb[8].mxu0 %vm717_vm1, %v1110_v36  ;;  %2399 = vmatprep.mubr.msk.bf16.mxu1 %vm2631_vm0, %v2630_v4 }
 0x328   : > { %2443 = vmatprep.mubr.msk.bf16.mxu0 %vm2631_vm0, %v2630_v4 }
 0x3f1   : > { %v829_v37 = vpop.f32.mrb[8].mxu1 }
 0x3f2   : > { %836 = vst.msk [vmem:[#allocation2] sm:$0xff] %vm717_vm1, %v829_v37  ;;  %v2389_v38 = vpop.f32.mrb[9].mxu1  ;;  %v1019_v39 = vpop.f32.mrb[4].mxu0 }
 0x3f3   : > { %v832_v40 = vpop.f32.mrb[10].mxu1  ;;  %v2407_v41 = vpop.f32.mrb[5].mxu0  ;;  %v1026_v53 = vsel %vm711_vm2, %v1019_v39, -1e+30 }
 0x3f4   : > { %837 = vst.msk [vmem:[#allocation2 + $0x8] sm:$0xff] %vm717_vm1, %v832_v40  ;;  %v2390_v42 = vpop.f32.mrb[11].mxu1  ;;  %v1022_v43 = vpop.f32.mrb[6].mxu0  ;;  %v1028_v63 = vsel %vm767_vm3, %v1026_v53, -inf }
 0x3f5   : > { %v2408_v44 = vpop.f32.mrb[7].mxu0  ;;  %v1027_v0 = vsel %vm712_vm4, %v1022_v43, -1e+30 }
 0x3f6   : > { %v1031_v3 = vsel %vm767_vm3, %v1027_v0, -inf }
 0x3f9   : > { %v884_v45 = vpop.f32.mrb[12].mxu1 }
 0x3fa   : > { %v891_v46 = vsel %vm711_vm2, %v884_v45, -1e+30  ;;  %v2395_v47 = vpop.f32.mrb[13].mxu1  ;;  %v1153_v48 = vpop.f32.mrb[8].mxu0 }
 0x3fb   : > { %v887_v50 = vpop.f32.mrb[14].mxu1  ;;  %v2419_v51 = vpop.f32.mrb[9].mxu0  ;;  %v893_v52 = vsel %vm767_vm3, %v891_v46, -inf  ;;  %v1160_v5 = vsel %vm711_vm2, %v1153_v48, -1e+30 }
 0x3fc   : > { %v892_v54 = vsel %vm712_vm4, %v887_v50, -1e+30  ;;  %v1156_v55 = vpop.f32.mrb[10].mxu0  ;;  %894 = vmax.xlane.f32.xlu0 %v893_v52  ;;  %v2396_v56 = vpop.f32.mrb[15].mxu1  ;;  %v1162_v6 = vsel %vm767_vm3, %v1160_v5, -inf }
 0x3fd   : > { %v2420_v60 = vpop.f32.mrb[11].mxu0  ;;  %v896_v61 = vsel %vm767_vm3, %v892_v54, -inf  ;;  %v1161_v62 = vsel %vm712_vm4, %v1156_v55, -1e+30 }
 0x3fe   : > { %897 = vmax.xlane.f32.xlu1 %v896_v61  ;;  %v1165_v1 = vsel %vm767_vm3, %v1161_v62, -inf }
 0x400   : > { %1029 = vmax.xlane.f32.xlu0 %v1028_v63 }
 0x402   : > { %1166 = vmax.xlane.f32.xlu1 %v1165_v1 }
 0x404   : > { %1032 = vmax.xlane.f32.xlu0 %v1031_v3 }
 0x408   : > { %1163 = vmax.xlane.f32.xlu0 %v1162_v6  ;;  %v2494_v6 = vld [vmem:[%s3219_s3 + $0x8] sm:$0xff]  }
 0x489   : > { %v895_v7 = vpop.xlane.xlu0 %894 }
 0x48a   : > { %v899_v15 = vsub.f32 %v891_v46, %v895_v7  ;;  %v2495_v7 = vld [vmem:[%s3219_s3 + $0x10] sm:$0xff]  }
 0x48b   : > { %v898_v8 = vpop.xlane.xlu1 %897 }
 0x48c   : > { %v900_v16 = vsub.f32 %v892_v54, %v898_v8  ;;  %v901_v20 = vmul.f32 1.442695, %v899_v15  ;;  %v2496_v8 = vld [vmem:[%s3219_s3 + $0x18] sm:$0xff]  }
 0x48d   : > { %v1030_v9 = vpop.xlane.xlu0 %1029 }
 0x48e   : > { %v1034_v10 = vsub.f32 %v1026_v53, %v1030_v9  ;;  %v903_v21 = vmul.f32 1.442695, %v900_v16  ;;  %v2497_v9 = vld [vmem:[%s3219_s3 + $0x20] sm:$0xff]  }
 0x48f   : > { %v1167_v59 = vpop.xlane.xlu1 %1166 }
 0x490   : > { %v1036_v11 = vmul.f32 1.442695, %v1034_v10  ;;  %v1169_v12 = vsub.f32 %v1161_v62, %v1167_v59 }
 0x491   : > { %v1033_v13 = vpop.xlane.xlu0 %1032 }
 0x492   : > { %2589 = vpow2.f32 %v1036_v11  ;;  %v1035_v14 = vsub.f32 %v1027_v0, %v1033_v13  ;;  %v1172_v17 = vmul.f32 1.442695, %v1169_v12  ;;  %v2498_v13 = vld [vmem:[%s3219_s3 + $0x28] sm:$0xff]  }
 0x494   : > { %v1038_v18 = vmul.f32 1.442695, %v1035_v14  ;;  %v2499_v14 = vld [vmem:[%s3219_s3 + $0x30] sm:$0xff]  }
 0x495   : > { %v1164_v58 = vpop.xlane.xlu0 %1163 }
 0x496   : > { %2591 = vpow2.f32 %v1038_v18  ;;  %v1168_v19 = vsub.f32 %v1160_v5, %v1164_v58  ;;  %v2493_v5 = vld [vmem:[%s3219_s3] sm:$0xff]   ;;  %v2500_v18 = vld [vmem:[%s3219_s3 + $0x38] sm:$0xff]  }
 0x497   : > { %2593 = vpow2.f32 %v1172_v17  ;;  %2428 = vmatpush3.bf16.msra.mxu0 %v2493_v5  ;;  %v2519_v5 = vld [vmem:[%s3223_s7 + $0x60] ss:$16 sps:$4 sm:$0xff]  }
 0x498   : > { %v1170_v22 = vmul.f32 1.442695, %v1168_v19  ;;  %2429 = vmatprep.subr.bf16.mxu0 %v2630_v4 }
 0x49a   : > { %2595 = vpow2.f32 %v1170_v22 }
 0x49b   : > { %2597 = vpow2.f32 %v901_v20  ;;  %2430 = vmatpush3.bf16.msra.mxu0 %v2494_v6  ;;  %v2522_v6 = vld [vmem:[%s3223_s7 + $0x68] ss:$16 sps:$4 sm:$0xff]  }
 0x49c   : > { %v2590_v25 = vpop.eup %2589  ;;  %2599 = vpow2.f32 %v903_v21  ;;  %2431 = vmatprep.subr.bf16.mxu0 %v2630_v4 }
 0x49d   : > { %v1040_v26 = vsel %vm767_vm3, %v2590_v25, 0.0 }
 0x49e   : > { %1041 = vadd.xlane.f32.xlu0 %v1040_v26 }
 0x49f   : > { %2432 = vmatpush3.bf16.msra.mxu0 %v2495_v7  ;;  %v2527_v7 = vld [vmem:[%s3223_s7 + $0x84] ss:$16 sps:$4 sm:$0xff]  }
 0x4a0   : > { %v2592_v27 = vpop.eup %2591  ;;  %2433 = vmatprep.subr.bf16.mxu0 %v2630_v4 }
 0x4a1   : > { %v1043_v28 = vsel %vm767_vm3, %v2592_v27, 0.0  ;;  %v2594_v29 = vpop.eup %2593 }
 0x4a2   : > { %1044 = vadd.xlane.f32.xlu1 %v1043_v28  ;;  %v1177_v36 = vsel %vm767_vm3, %v2594_v29, 0.0 }
 0x4a3   : > { %2434 = vmatpush3.bf16.msra.mxu0 %v2496_v8  ;;  %v2530_v8 = vld [vmem:[%s3223_s7 + $0x8c] ss:$16 sps:$4 sm:$0xff]  }
 0x4a4   : > { %v2596_v32 = vpop.eup %2595  ;;  %2435 = vmatprep.subr.bf16.mxu0 %v2630_v4 }
 0x4a5   : > { %v2598_v34 = vpop.eup %2597  ;;  %v1174_v35 = vsel %vm767_vm3, %v2596_v32, 0.0 }
 0x4a6   : > { %v2600_v37 = vpop.eup %2599  ;;  %1175 = vadd.xlane.f32.xlu0 %v1174_v35  ;;  %1178 = vadd.xlane.f32.xlu1 %v1177_v36  ;;  %v905_v38 = vsel %vm767_vm3, %v2598_v34, 0.0  ;;  %v2199_v36 = vld [vmem:[%s3220_s4] ss:$0 sm:$0xff] }
 0x4a7   : > { %v908_v39 = vsel %vm767_vm3, %v2600_v37, 0.0  ;;  %2436 = vmatpush3.bf16.msra.mxu0 %v2497_v9  ;;  %v2525_v9 = vld [vmem:[%s3223_s7 + $0x80] ss:$16 sps:$4 sm:$0xff]  }
 0x4a8   : > { %2437 = vmatprep.subr.bf16.mxu0 %v2630_v4 }
 0x4aa   : > { %906 = vadd.xlane.f32.xlu0 %v905_v38  ;;  %909 = vadd.xlane.f32.xlu1 %v908_v39 }
 0x4ab   : > { %2438 = vmatpush3.bf16.msra.mxu0 %v2498_v13  ;;  %v2534_v13 = vld [vmem:[%s3223_s7 + $0xa8] ss:$16 sps:$4 sm:$0xff]  }
 0x4ac   : > { %2439 = vmatprep.subr.bf16.mxu0 %v2630_v4 }
 0x4af   : > { %2440 = vmatpush3.bf16.msra.mxu0 %v2499_v14  ;;  %v2539_v14 = vld [vmem:[%s3223_s7 + $0xc4] ss:$16 sps:$4 sm:$0xff]  }
 0x4b0   : > { %2441 = vmatprep.subr.bf16.mxu0 %v2630_v4 }
 0x4b3   : > { %2442 = vmatpush3.bf16.msra.mxu0 %v2500_v18  ;;  %v2545_v18 = vld [vmem:[%s3223_s7 + $0xe4] ss:$16 sps:$4 sm:$0xff]  }
 0x4bb   : > { %1051 = vrot.lane.b32.xlu1 %v2835_v57, %s2634_s23 }
 0x4bf   : > { %1185 = vrot.lane.b32.xlu1 %v2835_v57, %s2633_s22 }
 0x4c0   : > { %917 = vrot.lane.b32.xlu0 %v2835_v57, %s2632_s21 }
 0x52b   : > { %v1042_v40 = vpop.xlane.xlu0 %1041 }
 0x52f   : > { %v1045_v41 = vpop.xlane.xlu1 %1044 }
 0x533   : > { %v1176_v42 = vpop.xlane.xlu0 %1175  ;;  %v1179_v43 = vpop.xlane.xlu1 %1178 }
 0x537   : > { %v907_v44 = vpop.xlane.xlu0 %906  ;;  %v910_v45 = vpop.xlane.xlu1 %909 }
 0x538   : > { %2601 = vrcp.f32 %v907_v44 }
 0x539   : > { %2603 = vrcp.f32 %v910_v45  ;;  %v2503_v45 = vld [vmem:[%s3223_s7 + $0x4] ss:$16 sps:$4 sm:$0xff]  }
 0x53a   : > { %2605 = vrcp.f32 %v1045_v41 }
 0x53b   : > { %v918_v46 = vpop.permute.xlu0 %917  ;;  %2607 = vrcp.f32 %v1042_v40  ;;  %v1052_v53 = vpop.permute.xlu1 %1051 }
 0x53c   : > { %2398 = vmatpush3.bf16.msra.mxu1 %v918_v46  ;;  %2609 = vrcp.f32 %v1176_v42  ;;  %v2504_v46 = vld [vmem:[%s3223_s7 + $0x8] ss:$16 sps:$4 sm:$0xff]  }
 0x53d   : > { %2409 = vmatprep.subr.bf16.mxu1 %v2630_v4  ;;  %2611 = vrcp.f32 %v1179_v43 }
 0x53f   : > { %v1186_v63 = vpop.permute.xlu1 %1185 }
 0x542   : > { %v2602_v47 = vpop.eup %2601 }
 0x543   : > { %v2604_v48 = vpop.eup %2603  ;;  %v913_v50 = vmul.f32 %v2602_v47, %v2598_v34  ;;  %v2512_v47 = vld [vmem:[%s3223_s7 + $0x2c] ss:$16 sps:$4 sm:$0xff]  }
 0x544   : > { %v914_v51 = vmul.f32 %v2604_v48, %v2600_v37  ;;  %v2606_v52 = vpop.eup %2605  ;;  %v2507_v48 = vld [vmem:[%s3223_s7 + $0x20] ss:$16 sps:$4 sm:$0xff]  }
 0x545   : > { %v2608_v54 = vpop.eup %2607  ;;  %v1049_v55 = vmul.f32 %v2606_v52, %v2592_v27 }
 0x546   : > { %v915_v57 = vpack.c.bf16 %v914_v51, %v913_v50  ;;  %v1048_v56 = vmul.f32 %v2608_v54, %v2590_v25  ;;  %v2610_v60 = vpop.eup %2609  ;;  %v2510_v50 = vld [vmem:[%s3223_s7 + $0x28] ss:$16 sps:$4 sm:$0xff]  }
 0x547   : > { %v2612_v62 = vpop.eup %2611  ;;  %v1182_v0 = vmul.f32 %v2610_v60, %v2596_v32 }
 0x548   : > { %2400 = vmatmul.mubr.msk.bf16.vlgmr.msra.gmra.mrb[16].mxu1 %vm767_vm3, %v915_v57  ;;  %v1050_v61 = vpack.c.bf16 %v1049_v55, %v1048_v56  ;;  %v1183_v1 = vmul.f32 %v2612_v62, %v2594_v29  ;;  %v2518_v62 = vld [vmem:[%s3223_s7 + $0x4c] ss:$16 sps:$4 sm:$0xff]  }
 0x549   : > { %2410 = vmatpush3.bf16.msra.mxu1 %v1052_v53  ;;  %2411 = vmatprep.mubr.msk.bf16.mxu1 %vm2631_vm0, %v2630_v4 }
 0x54a   : > { %2421 = vmatprep.subr.bf16.mxu1 %v2630_v4  ;;  %v1184_v3 = vpack.c.bf16 %v1183_v1, %v1182_v0  ;;  %v2516_v0 = vld [vmem:[%s3223_s7 + $0x48] ss:$16 sps:$4 sm:$0xff]   ;;  %v2521_v1 = vld [vmem:[%s3223_s7 + $0x64] ss:$16 sps:$4 sm:$0xff]  }
 0x550   : > { %2412 = vmatmul.mubr.msk.bf16.vlgmr.msra.gmra.mrb[20].mxu1 %vm767_vm3, %v1050_v61  ;;  %v2515_v61 = vld [vmem:[%s3223_s7 + $0x44] ss:$16 sps:$4 sm:$0xff]  }
 0x551   : > { %2422 = vmatpush3.bf16.msra.mxu1 %v1186_v63  ;;  %2423 = vmatprep.mubr.msk.bf16.mxu1 %vm2631_vm0, %v2630_v4  ;;  %v2513_v63 = vld [vmem:[%s3223_s7 + $0x40] ss:$16 sps:$4 sm:$0xff]  }
 0x552   : > { %1616 = vmatprep.subr.bf16.mxu1 %v2503_v45  ;;  %v2553_v45 = vld [vmem:[%s3225_s9 + $0x48] sm:$0xff]  }
 0x558   : > { %2424 = vmatmul.mubr.msk.bf16.vlgmr.msra.gmra.mrb[24].mxu1 %vm767_vm3, %v1184_v3  ;;  %v2524_v3 = vld [vmem:[%s3223_s7 + $0x6c] ss:$16 sps:$4 sm:$0xff]  }
 0x559   : > { %1648 = vmatprep.mubr.bf16.mxu1 %v2629_v2 }
 0x61b   : > { %v957_v10 = vpop.f32.mrb[16].mxu1 }
 0x61c   : > { %966 = vrot.lane.b32.xlu1 %v957_v10, %s2633_s22  ;;  %v2401_v59 = vpop.f32.mrb[17].mxu1  ;;  %v2528_v10 = vld [vmem:[%s3223_s7 + $0x88] ss:$16 sps:$4 sm:$0xff]  }
 0x61d   : > { %v960_v11 = vpop.f32.mrb[18].mxu1  ;;  %v2533_v59 = vld [vmem:[%s3223_s7 + $0xa4] ss:$16 sps:$4 sm:$0xff]  }
 0x61e   : > { %968 = vrot.lane.b32.xlu0 %v960_v11, %s2633_s22  ;;  %v2402_v12 = vpop.f32.mrb[19].mxu1  ;;  %v2536_v11 = vld [vmem:[%s3223_s7 + $0xac] ss:$16 sps:$4 sm:$0xff]  }
 0x61f   : > { %v2531_v12 = vld [vmem:[%s3223_s7 + $0xa0] ss:$16 sps:$4 sm:$0xff]  }
 0x623   : > { %v1091_v15 = vpop.f32.mrb[20].mxu1 }
 0x624   : > { %1100 = vrot.lane.b32.xlu1 %v1091_v15, %s2634_s23  ;;  %v2413_v16 = vpop.f32.mrb[21].mxu1  ;;  %v2542_v15 = vld [vmem:[%s3223_s7 + $0xcc] ss:$16 sps:$4 sm:$0xff]  }
 0x625   : > { %v1094_v17 = vpop.f32.mrb[22].mxu1  ;;  %v2537_v16 = vld [vmem:[%s3223_s7 + $0xc0] ss:$16 sps:$4 sm:$0xff]  }
 0x626   : > { %1102 = vrot.lane.b32.xlu0 %v1094_v17, %s2634_s23  ;;  %v2414_v58 = vpop.f32.mrb[23].mxu1  ;;  %v2540_v17 = vld [vmem:[%s3223_s7 + $0xc8] ss:$16 sps:$4 sm:$0xff]  }
 0x627   : > { %v2548_v58 = vld [vmem:[%s3223_s7 + $0xec] ss:$16 sps:$4 sm:$0xff]  }
 0x62b   : > { %v1225_v19 = vpop.f32.mrb[24].mxu1 }
 0x62c   : > { %1234 = vrot.lane.b32.xlu1 %v1225_v19, %s2632_s21  ;;  %v2425_v20 = vpop.f32.mrb[25].mxu1  ;;  %v2543_v19 = vld [vmem:[%s3223_s7 + $0xe0] ss:$16 sps:$4 sm:$0xff]  }
 0x62d   : > { %v1228_v21 = vpop.f32.mrb[26].mxu1  ;;  %v2546_v20 = vld [vmem:[%s3223_s7 + $0xe8] ss:$16 sps:$4 sm:$0xff]  }
 0x62e   : > { %1236 = vrot.lane.b32.xlu0 %v1228_v21, %s2632_s21  ;;  %v2426_v22 = vpop.f32.mrb[27].mxu1  ;;  %v2549_v21 = vld [vmem:[%s3225_s9 + $0x40] sm:$0xff]  }
 0x62f   : > { %v2550_v22 = vld [vmem:[%s3225_s9 + $0xc0] sm:$0xff]  }
 0x68e   : > { %v967_v25 = vpop.permute.xlu1 %966 }
 0x68f   : > { %973 = vst.msk [vmem:[#allocation2] sm:$0xff] %vm972_vm5, %v967_v25 }
 0x690   : > { %v969_v26 = vpop.permute.xlu0 %968 }
 0x691   : > { %974 = vst.msk [vmem:[#allocation2 + $0x8] sm:$0xff] %vm972_vm5, %v969_v26 }
 0x696   : > { %v1101_v27 = vpop.permute.xlu1 %1100 }
 0x697   : > { %1107 = vst.msk [vmem:[#allocation2] sm:$0xff] %vm1106_vm6, %v1101_v27 }
 0x698   : > { %v1103_v28 = vpop.permute.xlu0 %1102 }
 0x699   : > { %1108 = vst.msk [vmem:[#allocation2 + $0x8] sm:$0xff] %vm1106_vm6, %v1103_v28 }
 0x69e   : > { %v1235_v4 = vpop.permute.xlu1 %1234 }
 0x69f   : > { %1241 = vst.msk [vmem:[#allocation2] sm:$0xff] %vm1240_vm7, %v1235_v4 }
 0x6a0   : > { %v1237_v29 = vpop.permute.xlu0 %1236 }
 0x6a1   : > { %1242 = vst.msk [vmem:[#allocation2 + $0x8] sm:$0xff] %vm1240_vm7, %v1237_v29 }
 0x6a6   : > { %v1243_v32 = vld [vmem:[#allocation2] sm:$0xff] }
 0x6a8   : > { %v1244_v34 = vld [vmem:[#allocation2 + $0x8] sm:$0xff] }
 0x6a9   : > { %v1245_v35 = vpack.c.bf16 %v1244_v34, %v1243_v32 }
 0x6ab   : > { %2444 = vmatmul.mubr.bf16.vlgmr.msra.gmra.mrb[12].mxu0 %v1245_v35  ;;  %v2208_v35 = vld [vmem:[%s3221_s5] ss:$0 sm:$0xff] }
 0x6ac   : > { %1691 = vmatprep.mubr.bf16.mxu0 %v2629_v2  ;;  %v2501_v2 = vld [vmem:[%s3223_s7] ss:$16 sps:$4 sm:$0xff]  }
 0x6ad   : > { %1617 = vmatpush1.bf16.msra.mxu1 %v2501_v2 }
 0x77e   : > { %v1351_v37 = vpop.f32.mrb[12].mxu0 }
 0x77f   : > { %v1352_v38 = vadd.f32 %v2199_v36, %v1351_v37  ;;  %v2445_v39 = vpop.f32.mrb[13].mxu0 }
 0x780   : > { %v1354_v40 = vpop.f32.mrb[14].mxu0  ;;  %v2209_v39 = vld [vmem:[%s3222_s6] ss:$0 sm:$0xff] }
 0x781   : > { %v1355_v41 = vadd.f32 %v2199_v36, %v1354_v40  ;;  %v2446_v42 = vpop.f32.mrb[15].mxu0  ;;  %v1358_v43 = vadd.f32 %v1352_v38, %v2789_v23  ;;  %v2506_v23 = vld [vmem:[%s3223_s7 + $0xc] ss:$16 sps:$4 sm:$0xff]  }
 0x782   : > { %1659 = vmatprep.subr.bf16.mxu0 %v2506_v23  ;;  %v2555_v23 = vld [vmem:[%s3225_s9 + $0x8] sm:$0xff]  }
 0x783   : > { %1362 = vadd.xlane.f32.xlu1 %v1358_v43  ;;  %v1359_v44 = vadd.f32 %v1355_v41, %v2791_v24  ;;  %v2509_v24 = vld [vmem:[%s3223_s7 + $0x24] ss:$16 sps:$4 sm:$0xff]   ;;  %1660 = vmatpush1.bf16.msra.mxu0 %v2504_v46  ;;  %v2554_v46 = vld [vmem:[%s3225_s9 + $0xc8] sm:$0xff]  }
 0x784   : > { %1618 = vmatprep.subr.bf16.mxu1 %v2509_v24  ;;  %1661 = vmatprep.subr.bf16.mxu0 %v2512_v47  ;;  %v2556_v24 = vld [vmem:[%s3225_s9 + $0x88] sm:$0xff]   ;;  %v2557_v47 = vld [vmem:[%s3225_s9 + $0x50] sm:$0xff]  }
 0x785   : > { %1364 = vadd.xlane.f32.xlu0 %v1359_v44  ;;  %1619 = vmatpush1.bf16.msra.mxu1 %v2507_v48  ;;  %v2558_v48 = vld [vmem:[%s3225_s9 + $0xd0] sm:$0xff]  }
 0x786   : > { %1620 = vmatprep.subr.bf16.mxu1 %v2515_v61  ;;  %v2568_v61 = vld [vmem:[%s3225_s9 + $0xa0] sm:$0xff]  }
 0x787   : > { %1662 = vmatpush1.bf16.msra.mxu0 %v2510_v50  ;;  %v2559_v50 = vld [vmem:[%s3225_s9 + $0x10] sm:$0xff]  }
 0x788   : > { %1663 = vmatprep.subr.bf16.mxu0 %v2518_v62  ;;  %v2569_v62 = vld [vmem:[%s3225_s9 + $0x68] sm:$0xff]  }
 0x789   : > { %1621 = vmatpush1.bf16.msra.mxu1 %v2513_v63  ;;  %v2570_v63 = vld [vmem:[%s3225_s9 + $0xe8] sm:$0xff]  }
 0x78a   : > { %1622 = vmatprep.subr.bf16.mxu1 %v2521_v1  ;;  %v2572_v1 = vld [vmem:[%s3225_s9 + $0xa8] sm:$0xff]  }
 0x78b   : > { %1664 = vmatpush1.bf16.msra.mxu0 %v2516_v0  ;;  %v2571_v0 = vld [vmem:[%s3225_s9 + $0x28] sm:$0xff]  }
 0x78c   : > { %1665 = vmatprep.subr.bf16.mxu0 %v2524_v3  ;;  %v2573_v3 = vld [vmem:[%s3225_s9 + $0x70] sm:$0xff]  }
 0x78d   : > { %1623 = vmatpush1.bf16.msra.mxu1 %v2519_v5  ;;  %v2574_v5 = vld [vmem:[%s3225_s9 + $0xf0] sm:$0xff]  }
 0x78e   : > { %1624 = vmatprep.subr.bf16.mxu1 %v2527_v7  ;;  %v2576_v7 = vld [vmem:[%s3225_s9 + $0xb0] sm:$0xff]  }
 0x78f   : > { %1666 = vmatpush1.bf16.msra.mxu0 %v2522_v6  ;;  %v2575_v6 = vld [vmem:[%s3225_s9 + $0x30] sm:$0xff]  }
 0x790   : > { %1667 = vmatprep.subr.bf16.mxu0 %v2530_v8  ;;  %v2577_v8 = vld [vmem:[%s3225_s9 + $0x78] sm:$0xff]  }
 0x791   : > { %1625 = vmatpush1.bf16.msra.mxu1 %v2525_v9  ;;  %v2578_v9 = vld [vmem:[%s3225_s9 + $0xf8] sm:$0xff]  }
 0x792   : > { %1626 = vmatprep.subr.bf16.mxu1 %v2533_v59  ;;  %v2580_v59 = vld [vmem:[%s3225_s9 + $0xb8] sm:$0xff]  }
 0x793   : > { %1668 = vmatpush1.bf16.msra.mxu0 %v2528_v10  ;;  %v2579_v10 = vld [vmem:[%s3225_s9 + $0x38] sm:$0xff]  }
 0x794   : > { %1669 = vmatprep.subr.bf16.mxu0 %v2536_v11  ;;  %v1434_v11 = vld [vmem:[%s3224_s8] sm:$0xf] }
 0x795   : > { %1627 = vmatpush1.bf16.msra.mxu1 %v2531_v12  ;;  %v1450_v12 = vsub.s32 3, %v2816_v30 }
 0x796   : > { %1628 = vmatprep.subr.bf16.mxu1 %v2539_v14  ;;  %v1447_v14 = vrot.slane %v1434_v11, %v489_v49 }
 0x797   : > { %1670 = vmatpush1.bf16.msra.mxu0 %v2534_v13  ;;  %v1439_v13 = vrot.slane %v1434_v11, %v481_v31 }
 0x798   : > { %1671 = vmatprep.subr.bf16.mxu0 %v2542_v15  ;;  %v1443_v15 = vrot.slane %v1434_v11, %v485_v33 }
 0x799   : > { %1629 = vmatpush1.bf16.msra.mxu1 %v2537_v16  ;;  %v1451_v16 = vrot.slane %v1434_v11, %v1450_v12 }
 0x79a   : > { %1630 = vmatprep.subr.bf16.mxu1 %v2545_v18 }
 0x79b   : > { %1672 = vmatpush1.bf16.msra.mxu0 %v2540_v17 }
 0x79c   : > { %1673 = vmatprep.subr.bf16.mxu0 %v2548_v58 }
 0x79d   : > { %1631 = vmatpush1.bf16.msra.mxu1 %v2543_v19 }
 0x79e   : > { %2315 = vmatprep.subr.bf16.mxu1 %v2549_v21 }
 0x79f   : > { %1674 = vmatpush1.bf16.msra.mxu0 %v2546_v20 }
 0x7a0   : > { %2337 = vmatprep.subr.bf16.mxu0 %v2550_v22 }
 0x810   : > { %v1363_v51 = vpop.xlane.xlu1 %1362 }
 0x811   : > { %v1367_v57 = vmul.f32 0.0078125, %v1363_v51  ;;  %v2560_v51 = vld [vmem:[%s3225_s9 + $0x90] sm:$0xff]  }
 0x812   : > { %v1365_v52 = vpop.xlane.xlu0 %1364 }
 0x813   : > { %v2997_v53 = vsub.f32 %v1358_v43, %v1367_v57  ;;  %v1368_v54 = vmul.f32 0.0078125, %v1365_v52  ;;  %v2551_v43 = vld [vmem:[%s3225_s9] sm:$0xff]   ;;  %v2561_v57 = vld [vmem:[%s3225_s9 + $0x58] sm:$0xff]  }
 0x814   : > { %v2562_v52 = vld [vmem:[%s3225_s9 + $0xd8] sm:$0xff]  }
 0x815   : > { %v2999_v55 = vsub.f32 %v1359_v44, %v1368_v54  ;;  %v1371_v56 = vmul.f32 %v2997_v53, %v2997_v53  ;;  %v2552_v44 = vld [vmem:[%s3225_s9 + $0x80] sm:$0xff]   ;;  %v2564_v54 = vld [vmem:[%s3225_s9 + $0x98] sm:$0xff]  }
 0x817   : > { %1373 = vadd.xlane.f32.xlu0 %v1371_v56  ;;  %v1372_v60 = vmul.f32 %v2999_v55, %v2999_v55  ;;  %v2566_v56 = vld [vmem:[%s3225_s9 + $0xe0] sm:$0xff]  }
 0x81b   : > { %1375 = vadd.xlane.f32.xlu0 %v1372_v60  ;;  %v2567_v60 = vld [vmem:[%s3225_s9 + $0x20] sm:$0xff]  }
 0x8a4   : > { %v1374_v25 = vpop.xlane.xlu0 %1373 }
 0x8a5   : > { %v1377_v26 = vmul.f32 0.0078125, %v1374_v25 }
 0x8a7   : > { %v1379_v27 = vadd.f32 1e-05, %v1377_v26 }
 0x8a8   : > { %v1376_v28 = vpop.xlane.xlu0 %1375 }
 0x8a9   : > { %2613 = vrsqrt.f32 %v1379_v27  ;;  %v1378_v4 = vmul.f32 0.0078125, %v1376_v28 }
 0x8ab   : > { %v1380_v29 = vadd.f32 1e-05, %v1378_v4 }
 0x8ad   : > { %2615 = vrsqrt.f32 %v1380_v29 }
 0x8b3   : > { %v2614_v32 = vpop.eup %2613 }
 0x8b4   : > { %v1383_v34 = vmul.f32 %v2614_v32, %v2997_v53  ;;  %v2563_v53 = vld [vmem:[%s3225_s9 + $0x18] sm:$0xff]  }
 0x8b6   : > { %v1391_v38 = vmul.f32 %v2208_v35, %v1383_v34 }
 0x8b7   : > { %v2616_v36 = vpop.eup %2615 }
 0x8b8   : > { %v1384_v37 = vmul.f32 %v2616_v36, %v2999_v55  ;;  %v3091_v41 = vadd.f32 %v2209_v39, %v1391_v38  ;;  %v2565_v55 = vld [vmem:[%s3225_s9 + $0x60] sm:$0xff]  }
 0x8ba   : > { %v1392_v40 = vmul.f32 %v2208_v35, %v1384_v37 }
 0x8bc   : > { %v3093_v42 = vadd.f32 %v2209_v39, %v1392_v40 }
 0x8be   : > { %v1401_v2 = vpack.c.bf16 %v3093_v42, %v3091_v41 }
 0x8c0   : > { %1649 = vmatmul.mubr.bf16.vlgmr.msra.gmra.mrb[28].mxu1 %v1401_v2  ;;  %1692 = vmatmul.mubr.bf16.vlgmr.msra.gmra.mrb[16].mxu0 %v1401_v2 }
 0x8c1   : > { %2316 = vmatpush3.bf16.msra.mxu1 %v2551_v43  ;;  %2338 = vmatpush3.bf16.msra.mxu0 %v2552_v44 }
 0x8c2   : > { %2317 = vmatprep.subr.bf16.mxu1 %v2553_v45  ;;  %2339 = vmatprep.subr.bf16.mxu0 %v2554_v46 }
 0x8c5   : > { %2318 = vmatpush3.bf16.msra.mxu1 %v2555_v23  ;;  %2340 = vmatpush3.bf16.msra.mxu0 %v2556_v24  ;;  %v2242_v23 = vld [vmem:[%s3226_s10] ss:$0 sm:$0xff] }
 0x8c6   : > { %2319 = vmatprep.subr.bf16.mxu1 %v2557_v47  ;;  %2341 = vmatprep.subr.bf16.mxu0 %v2558_v48 }
 0x8c9   : > { %2320 = vmatpush3.bf16.msra.mxu1 %v2559_v50  ;;  %2342 = vmatpush3.bf16.msra.mxu0 %v2560_v51 }
 0x8ca   : > { %2321 = vmatprep.subr.bf16.mxu1 %v2561_v57  ;;  %2343 = vmatprep.subr.bf16.mxu0 %v2562_v52 }
 0x8cd   : > { %2322 = vmatpush3.bf16.msra.mxu1 %v2563_v53  ;;  %2344 = vmatpush3.bf16.msra.mxu0 %v2564_v54 }
 0x8ce   : > { %2323 = vmatprep.subr.bf16.mxu1 %v2565_v55  ;;  %2345 = vmatprep.subr.bf16.mxu0 %v2566_v56 }
 0x8d1   : > { %2324 = vmatpush3.bf16.msra.mxu1 %v2567_v60  ;;  %2346 = vmatpush3.bf16.msra.mxu0 %v2568_v61 }
 0x8d2   : > { %2325 = vmatprep.subr.bf16.mxu1 %v2569_v62  ;;  %2347 = vmatprep.subr.bf16.mxu0 %v2570_v63 }
 0x8d5   : > { %2326 = vmatpush3.bf16.msra.mxu1 %v2571_v0  ;;  %2348 = vmatpush3.bf16.msra.mxu0 %v2572_v1 }
 0x8d6   : > { %2327 = vmatprep.subr.bf16.mxu1 %v2573_v3  ;;  %2349 = vmatprep.subr.bf16.mxu0 %v2574_v5 }
 0x8d9   : > { %2328 = vmatpush3.bf16.msra.mxu1 %v2575_v6  ;;  %2350 = vmatpush3.bf16.msra.mxu0 %v2576_v7 }
 0x8da   : > { %2329 = vmatprep.subr.bf16.mxu1 %v2577_v8  ;;  %2351 = vmatprep.subr.bf16.mxu0 %v2578_v9 }
 0x8dd   : > { %2330 = vmatpush3.bf16.msra.mxu1 %v2579_v10  ;;  %2352 = vmatpush3.bf16.msra.mxu0 %v2580_v59 }
 0x993   : > { %v1650_v17 = vpop.f32.mrb[28].mxu1  ;;  %v1693_v18 = vpop.f32.mrb[16].mxu0 }
 0x994   : > { %v1651_v58 = vadd.f32 %v1650_v17, %v1439_v13  ;;  %v1694_v19 = vadd.f32 %v1693_v18, %v1447_v14  ;;  %v1652_v20 = vpop.f32.mrb[29].mxu1  ;;  %v1695_v21 = vpop.f32.mrb[17].mxu0  ;;  %v2276_v18 = vld [vmem:[%s3228_s12] ss:$0 sm:$0xff] }
 0x995   : > { %v1653_v22 = vadd.f32 %v1652_v20, %v1443_v15  ;;  %v1696_v25 = vadd.f32 %v1695_v21, %v1451_v16  ;;  %v1654_v26 = vpop.f32.mrb[30].mxu1  ;;  %v1697_v27 = vpop.f32.mrb[18].mxu0 }
 0x996   : > { %v1655_v28 = vadd.f32 %v1654_v26, %v1439_v13  ;;  %v1698_v4 = vadd.f32 %v1697_v27, %v1447_v14  ;;  %v1656_v31 = vpop.f32.mrb[31].mxu1  ;;  %v1699_v29 = vpop.f32.mrb[19].mxu0  ;;  %v1702_v34 = vmax.f32 %v1651_v58, 0.0  ;;  %v1704_v30 = vmax.f32 %v1694_v19, 0.0 }
 0x997   : > { %v1657_v32 = vadd.f32 %v1656_v31, %v1443_v15  ;;  %v1700_v49 = vadd.f32 %v1699_v29, %v1451_v16  ;;  %v1703_v36 = vmax.f32 %v1653_v22, 0.0  ;;  %v1705_v37 = vmax.f32 %v1696_v25, 0.0  ;;  %v2275_v15 = vld [vmem:[%s3227_s11] ss:$0 sm:$0xff] }
 0x998   : > { %v1706_v33 = vmax.f32 %v1655_v28, 0.0  ;;  %v1708_v35 = vmax.f32 %v1698_v4, 0.0 }
 0x999   : > { %v1707_v38 = vmax.f32 %v1657_v32, 0.0  ;;  %v1709_v39 = vmax.f32 %v1700_v49, 0.0 }
 0x99a   : > { %v1710_v40 = vpack.c.bf16 %v1706_v33, %v1702_v34  ;;  %v1712_v43 = vpack.c.bf16 %v1708_v35, %v1704_v30 }
 0x99b   : > { %v1711_v44 = vpack.c.bf16 %v1707_v38, %v1703_v36  ;;  %v1713_v2 = vpack.c.bf16 %v1709_v39, %v1705_v37 }
 0x99d   : > { %2009 = vmatprep.mubr.bf16.mxu1 %v1711_v44  ;;  %2050 = vmatprep.mubr.bf16.mxu0 %v1713_v2 }
 0x99e   : > { %2010 = vmatmul.mubr.bf16.vlgmr.msra.gmra.mrb[32].mxu1 %v1710_v40  ;;  %2051 = vmatmul.mubr.bf16.vlgmr.msra.gmra.mrb[20].mxu0 %v1712_v43 }
 0xa71   : > { %v2331_v45 = vpop.f32.mrb[32].mxu1  ;;  %v2353_v46 = vpop.f32.mrb[20].mxu0 }
 0xa72   : > { %v2332_v24 = vpop.f32.mrb[33].mxu1  ;;  %v2354_v47 = vpop.f32.mrb[21].mxu0 }
 0xa73   : > { %v2333_v48 = vadd.f32 %v2332_v24, %v2331_v45  ;;  %v2355_v50 = vadd.f32 %v2354_v47, %v2353_v46  ;;  %v2334_v51 = vpop.f32.mrb[34].mxu1  ;;  %v2356_v57 = vpop.f32.mrb[22].mxu0 }
 0xa74   : > { %v2335_v52 = vpop.f32.mrb[35].mxu1  ;;  %v2357_v53 = vpop.f32.mrb[23].mxu0 }
 0xa75   : > { %v2012_v54 = vadd.f32 %v2333_v48, %v2242_v23  ;;  %v2336_v55 = vadd.f32 %v2335_v52, %v2334_v51  ;;  %v2358_v56 = vadd.f32 %v2357_v53, %v2356_v57 }
 0xa77   : > { %v2053_v60 = vadd.f32 %v2355_v50, %v2012_v54  ;;  %v2015_v61 = vadd.f32 %v2336_v55, %v2242_v23 }
 0xa79   : > { %v2056_v62 = vadd.f32 %v2358_v56, %v2015_v61  ;;  %v2059_v63 = vadd.f32 %v2053_v60, %v3091_v41 }
 0xa7b   : > { %2063 = vadd.xlane.f32.xlu1 %v2059_v63  ;;  %v2060_v0 = vadd.f32 %v2056_v62, %v3093_v42 }
 0xa7d   : > { %2065 = vadd.xlane.f32.xlu0 %v2060_v0 }
 0xb08   : > { %v2064_v1 = vpop.xlane.xlu1 %2063 }
 0xb09   : > { %v2067_v3 = vmul.f32 0.0078125, %v2064_v1 }
 0xb0a   : > { %v2066_v5 = vpop.xlane.xlu0 %2065 }
 0xb0b   : > { %v2069_v6 = vsub.f32 %v2059_v63, %v2067_v3  ;;  %v2068_v7 = vmul.f32 0.0078125, %v2066_v5 }
 0xb0d   : > { %v2070_v8 = vsub.f32 %v2060_v0, %v2068_v7  ;;  %v2071_v9 = vmul.f32 %v2069_v6, %v2069_v6 }
 0xb0f   : > { %2073 = vadd.xlane.f32.xlu1 %v2071_v9  ;;  %v2072_v10 = vmul.f32 %v2070_v8, %v2070_v8 }
 0xb11   : > { %2075 = vadd.xlane.f32.xlu0 %v2072_v10 }
 0xb9c   : > { %v2074_v59 = vpop.xlane.xlu1 %2073 }
 0xb9d   : > { %v2077_v11 = vmul.f32 0.0078125, %v2074_v59 }
 0xb9e   : > { %v2076_v12 = vpop.xlane.xlu0 %2075 }
 0xb9f   : > { %v2079_v13 = vadd.f32 1e-05, %v2077_v11  ;;  %v2078_v41 = vmul.f32 0.0078125, %v2076_v12 }
 0xba1   : > { %2617 = vrsqrt.f32 %v2079_v13  ;;  %v2080_v14 = vadd.f32 1e-05, %v2078_v41 }
 0xba3   : > { %2619 = vrsqrt.f32 %v2080_v14 }
 0xbab   : > { %v2618_v42 = vpop.eup %2617 }
 0xbac   : > { %v2083_v16 = vmul.f32 %v2618_v42, %v2069_v6 }
 0xbad   : > { %v2620_v17 = vpop.eup %2619 }
 0xbae   : > { %v2091_v58 = vmul.f32 %v2275_v15, %v2083_v16  ;;  %v2084_v19 = vmul.f32 %v2620_v17, %v2070_v8 }
 0xbb0   : > { %v2099_v20 = vadd.f32 %v2276_v18, %v2091_v58  ;;  %v2092_v21 = vmul.f32 %v2275_v15, %v2084_v19 }
 0xbb2   : > { %2101 = vst [vmem:[%s440_s16] sm:$0xff] %v2099_v20  ;;  %v2100_v22 = vadd.f32 %v2276_v18, %v2092_v21 }
 0xbb4   : > { %2102 = vst [vmem:[%s440_s16 + $0x8] sm:$0xff] %v2100_v22 }
 0xbb5 PF: > { %s23_s25 = sadd.s32 1, %s2627_s25  }
 0xbb6   : > { %p20_p4 = scmp.ge.s32.totalorder %s23_s25, 4  }
 0xbb8   :  { %22 = sbr.rel (!%p20_p4) target bundleno = 1 (0x1), region = 102 }

// kernel: transformer_forward.3
= control target key start
LH: loop header
LB: loop body
LE: loop exit
PB: predicated region body
PF: predicated region fallthrough
CT: control target
= control target key end

     0   :  { %s3912_s0 = inlined_call_operand.vmem [shape: f32[2,16,128], index: 0, kind: input, shape index: {}]   ;;  %s3913_s1 = inlined_call_operand.vmem [shape: bf16[128,384], index: 1, kind: input, shape index: {}]   ;;  %s3914_s2 = inlined_call_operand.hbm [shape: f32[1,384], index: 2, kind: input, shape index: {}]   ;;  %s3915_s3 = inlined_call_operand.hbm [shape: bf16[128,128], index: 3, kind: input, shape index: {}]   ;;  %s3916_s4 = inlined_call_operand.hbm [shape: f32[1,128], index: 4, kind: input, shape index: {}]   ;;  %s3917_s5 = inlined_call_operand.hbm [shape: f32[1,128], index: 5, kind: input, shape index: {}]   ;;  %s3918_s6 = inlined_call_operand.hbm [shape: f32[1,128], index: 6, kind: input, shape index: {}]   ;;  %s3919_s7 = inlined_call_operand.vmem [shape: bf16[128,512], index: 7, kind: input, shape index: {}]   ;;  %s3920_s8 = inlined_call_operand.vmem [shape: f32[1,512], index: 8, kind: input, shape index: {}]   ;;  %s3921_s9 = inlined_call_operand.hbm [shape: bf16[512,128], index: 9, kind: input, shape index: {}]   ;;  %s3922_s10 = inlined_call_operand.hbm [shape: f32[1,128], index: 10, kind: input, shape index: {}]   ;;  %s3923_s11 = inlined_call_operand.hbm [shape: f32[1,128], index: 11, kind: input, shape index: {}]   ;;  %s3924_s12 = inlined_call_operand.hbm [shape: f32[1,128], index: 12, kind: input, shape index: {}]   ;;  %s3925_s13 = inlined_call_operand.vmem [shape: f32[2,16,128], index: 13, kind: output, shape index: {}]  }
   0x1   :  { %3929 = sst [smem:[#allocation23_spill]] %s3920_s8 }
   0x2   :  { %3930 = sst [smem:[#allocation24_spill]] %s3925_s13 }
   0x3   :  { %18 = vsyncpa [#allocation4], 0 }
   0x4   :  { %19 = vsyncpa [#allocation6], 0 }
   0x5   :  { %20 = vsyncpa [#allocation9], 0 }
   0x6   :  { %21 = vsyncpa [#allocation12], 0 }
   0x7   :  { %22 = vsyncpa [#allocation15], 0  ;;  %s3304_s25 = smov 0  }
   0x8 LB: > { %3931 = sst [smem:[#allocation22_spill]] %s3215_s25  ;;  %s3217_s26 = smov [#allocation5]   ;;  %s3215_s25 = sphi %s3304_s25, %s28_s25  }
   0x9   : > { %s363_s27 = sshll.u32 %s3217_s26, 4  ;;  %s3310_s28 = sadd.s32 4294967295, %s3215_s25   ;;  %s3315_s27 = int_to_ptr.vmem [resolvable:$true] %s363_s27 }
   0xa   : > { %p2365_p0 = scmp.ge.s32.totalorder %s3215_s25, 1  ;;  %p337_p1 = scmp.lt.s32.totalorder %s3215_s25, 3 }
   0xb   : > { %p3927_p2 = scmp.eq.s32.totalorder %s3310_s28, 0  ;;  %s3218_s30 = smov [#allocation8]  }
   0xc   : > { %p3317_p3 = pnand %p2365_p0, %p337_p1  ;;  %s388_s14 = sshll.u32 %s3218_s30, 4  ;;  %s3323_s14 = int_to_ptr.vmem [resolvable:$true] %s388_s14 }
   0xd   : > { %s3219_s16 = smov [#allocation11]   ;;  %s3220_s18 = smov [#allocation14]  }
   0xe   : > { %s3932_s29 = scalar_select %p3317_p3, 1, 0 }
   0xf   : > { %p2706_p4 = pneg %p3317_p3  ;;  %s415_s17 = sshll.u32 %s3219_s16, 4  ;;  %s3331_s17 = int_to_ptr.vmem [resolvable:$true] %s415_s17 }
  0x10   : > { %s3333_s19 = sshll.u32 %s3220_s18, 4  ;;  %s2937_s22 = scalar_lea.hbm %s3915_s3, 1024  ;;  %s441_s19 = int_to_ptr.vmem [resolvable:$true] %s3333_s19 }
  0x11   : > { %p3327_p5 = pnand %p3927_p2, %p2706_p4  ;;  %p2938_p6 = scmp.ne.s32.totalorder %s3915_s3, %s2937_s22 }
  0x12   : > { %p2944_p10 = scmp.lt.u32.totalorder %s2937_s22, %s3915_s3 }
  0x13   : > { %p3343_p7 = pneg %p3327_p5 }
  0x15   : > { %p2940_p8 = pnand %p3343_p7, %p2938_p6 }
  0x17   : > { %p2941_p9 = pneg %p2940_p8 }
  0x19   : > { %p2946_p11 = pnand %p2944_p10, %p2941_p9 }
  0x1b   : > { %2949 = shalt.err (!%p2946_p11)
}
  0x1c   : > { %s2950_s18 = scalar_lea.vmem %s3315_s27, 1024  ;;  %p2958_p1 = scmp.lt.s32.totalorder %s3315_s27, %s3315_s27 }
  0x1d   : > { %p2951_p12 = scmp.ne.s32.totalorder %s3315_s27, %s2950_s18  ;;  %p2959_p4 = scmp.lt.s32.totalorder %s2950_s18, %s2950_s18 }
  0x1f   : > { %p2953_p13 = pnand %p2951_p12, %p3343_p7  ;;  %p2960_p6 = por %p2959_p4, %p2958_p1 }
  0x21   : > { %p2954_p0 = pneg %p2953_p13 }
  0x23   : > { %p2961_p8 = pnand %p2960_p6, %p2954_p0 }
  0x25   : > { %2964 = shalt.err (!%p2961_p8)
}
  0x26   : > { %s3221_s20 = smov 64   ;;  %s3222_s21 = smov 4  }
  0x27   : > { %2712 = dma.hbm_to_vmem [thread:$0]  (!%p3327_p5), %s3915_s3, 1024, %s3315_s27, [#allocation6], %s3221_s20, %s3221_s20, %s3222_s21  }
  0x28   : > { %s2965_s16 = scalar_lea.hbm %s3917_s5, 16 }
  0x29   : > { %p2966_p9 = scmp.ne.s32.totalorder %s3917_s5, %s2965_s16  ;;  %p2972_p12 = scmp.lt.u32.totalorder %s2965_s16, %s3917_s5 }
  0x2b   : > { %p2968_p10 = pnand %p2966_p9, %p3343_p7 }
  0x2d   : > { %p2969_p11 = pneg %p2968_p10 }
  0x2f   : > { %p2974_p13 = pnand %p2972_p12, %p2969_p11 }
  0x31   : > { %2977 = shalt.err (!%p2974_p13)
}
  0x32   : > { %s2978_s27 = scalar_lea.vmem %s3323_s14, 16  ;;  %s2985_s25 = scalar_lea.vmem %s3323_s14, 32 }
  0x33   : > { %p2979_p0 = scmp.ne.s32.totalorder %s3323_s14, %s2978_s27  ;;  %p2986_p6 = scmp.lt.s32.totalorder %s3323_s14, %s3323_s14 }
  0x34   : > { %p2987_p8 = scmp.lt.s32.totalorder %s2985_s25, %s2978_s27 }
  0x35   : > { %p2981_p1 = pnand %p2979_p0, %p3343_p7 }
  0x36   : > { %p2988_p9 = por %p2987_p8, %p2986_p6 }
  0x37   : > { %p2982_p4 = pneg %p2981_p1 }
  0x39   : > { %p2989_p10 = pnand %p2988_p9, %p2982_p4 }
  0x3b   : > { %2992 = shalt.err (!%p2989_p10)
}
  0x3c   : > { %2718 = dma.hbm_to_vmem [thread:$0]  (!%p3327_p5), %s3917_s5, 16, %s3323_s14, [#allocation9]  }
  0x3d   : > { %s2993_s24 = scalar_lea.hbm %s3921_s9, 4096 }
  0x3e   : > { %p2994_p11 = scmp.ne.s32.totalorder %s3921_s9, %s2993_s24  ;;  %p3000_p0 = scmp.lt.u32.totalorder %s2993_s24, %s3921_s9 }
  0x40   : > { %p2996_p12 = pnand %p2994_p11, %p3343_p7 }
  0x42   : > { %p2997_p13 = pneg %p2996_p12 }
  0x44   : > { %p3002_p1 = pnand %p3000_p0, %p2997_p13 }
  0x46   : > { %3005 = shalt.err (!%p3002_p1)
}
  0x47   : > { %s3006_s14 = scalar_lea.vmem %s3331_s17, 4096  ;;  %p3014_p9 = scmp.lt.s32.totalorder %s3331_s17, %s3331_s17 }
  0x48   : > { %p3007_p4 = scmp.ne.s32.totalorder %s3331_s17, %s3006_s14  ;;  %p3015_p10 = scmp.lt.s32.totalorder %s3006_s14, %s3006_s14 }
  0x4a   : > { %p3009_p6 = pnand %p3007_p4, %p3343_p7  ;;  %p3016_p11 = por %p3015_p10, %p3014_p9 }
  0x4c   : > { %p3010_p8 = pneg %p3009_p6 }
  0x4e   : > { %p3017_p12 = pnand %p3016_p11, %p3010_p8 }
  0x50   : > { %3020 = shalt.err (!%p3017_p12)
}
  0x51   : > { %2724 = dma.hbm_to_vmem [thread:$0]  (!%p3327_p5), %s3921_s9, 4096, %s3331_s17, [#allocation12], %s3221_s20, %s3221_s20, %s3222_s21  }
  0x52   : > { %s3021_s23 = scalar_lea.hbm %s3923_s11, 16 }
  0x53   : > { %p3022_p13 = scmp.ne.s32.totalorder %s3923_s11, %s3021_s23  ;;  %p3028_p4 = scmp.lt.u32.totalorder %s3021_s23, %s3923_s11 }
  0x55   : > { %p3024_p0 = pnand %p3022_p13, %p3343_p7 }
  0x57   : > { %p3025_p1 = pneg %p3024_p0 }
  0x59   : > { %p3030_p6 = pnand %p3028_p4, %p3025_p1 }
  0x5b   : > { %3033 = shalt.err (!%p3030_p6)
}
  0x5c   : > { %s3034_s27 = scalar_lea.vmem %s441_s19, 16  ;;  %s3041_s17 = scalar_lea.vmem %s441_s19, 32 }
  0x5d   : > { %p3035_p8 = scmp.ne.s32.totalorder %s441_s19, %s3034_s27  ;;  %p3042_p11 = scmp.lt.s32.totalorder %s441_s19, %s441_s19 }
  0x5e   : > { %p3043_p12 = scmp.lt.s32.totalorder %s3041_s17, %s3034_s27 }
  0x5f   : > { %p3037_p9 = pnand %p3035_p8, %p3343_p7 }
  0x60   : > { %p3044_p2 = por %p3043_p12, %p3042_p11 }
  0x61   : > { %p3038_p10 = pneg %p3037_p9 }
  0x63   : > { %p3045_p3 = pnand %p3044_p2, %p3038_p10 }
  0x65   : > { %3048 = shalt.err (!%p3045_p3)
}
  0x66   : > { %2730 = dma.hbm_to_vmem [thread:$0]  (!%p3327_p5), %s3923_s11, 16, %s441_s19, [#allocation15]  }
  0x67   : > { %s3223_s14 = smov [#allocation3]   ;;  %s3224_s8 = smov [#allocation7]  }
  0x68   : > { %s353_s25 = sshll.u32 %s3223_s14, 4  ;;  %s377_s13 = sshll.u32 %s3224_s8, 4  ;;  %s354_s25 = int_to_ptr.vmem [resolvable:$true] %s353_s25  ;;  %s378_s13 = int_to_ptr.vmem [resolvable:$true] %s377_s13 }
  0x69   : > { %s3049_s24 = scalar_lea.hbm %s3914_s2, 48 }
  0x6a   : > { %p3050_p2 = scmp.ne.s32.totalorder %s3914_s2, %s3049_s24  ;;  %p3056_p0 = scmp.lt.u32.totalorder %s3049_s24, %s3914_s2 }
  0x6c   : > { %p3052_p3 = pnand %p3050_p2, %p3343_p7 }
  0x6e   : > { %p3053_p13 = pneg %p3052_p3 }
  0x70   : > { %p3058_p1 = pnand %p3056_p0, %p3053_p13 }
  0x72   : > { %3061 = shalt.err (!%p3058_p1)
}
  0x73   : > { %s3062_s19 = scalar_lea.vmem %s354_s25, 48  ;;  %s3069_s17 = scalar_lea.vmem %s354_s25, 64 }
  0x74   : > { %p3063_p4 = scmp.ne.s32.totalorder %s354_s25, %s3062_s19  ;;  %p3070_p9 = scmp.lt.s32.totalorder %s354_s25, %s354_s25 }
  0x75   : > { %p3071_p10 = scmp.lt.s32.totalorder %s3069_s17, %s3062_s19 }
  0x76   : > { %p3065_p6 = pnand %p3063_p4, %p3343_p7 }
  0x77   : > { %p3072_p11 = por %p3071_p10, %p3070_p9 }
  0x78   : > { %p3066_p8 = pneg %p3065_p6 }
  0x7a   : > { %p3073_p12 = pnand %p3072_p11, %p3066_p8 }
  0x7c   : > { %3076 = shalt.err (!%p3073_p12)
}
  0x7d   : > { %2709 = dma.hbm_to_vmem [thread:$0]  (!%p3327_p5), %s3914_s2, 48, %s354_s25, [#allocation4]  }
  0x7e   : > { %s3077_s22 = scalar_lea.hbm %s3916_s4, 16 }
  0x7f   : > { %p3078_p2 = scmp.ne.s32.totalorder %s3916_s4, %s3077_s22  ;;  %p3084_p0 = scmp.lt.u32.totalorder %s3077_s22, %s3916_s4 }
  0x81   : > { %p3080_p3 = pnand %p3078_p2, %p3343_p7 }
  0x83   : > { %p3081_p13 = pneg %p3080_p3 }
  0x85   : > { %p3086_p1 = pnand %p3084_p0, %p3081_p13 }
  0x87   : > { %3089 = shalt.err (!%p3086_p1)
}
  0x88   : > { %s3090_s18 = scalar_lea.vmem %s378_s13, 16  ;;  %s3097_s25 = scalar_lea.vmem %s378_s13, 32 }
  0x89   : > { %p3091_p4 = scmp.ne.s32.totalorder %s378_s13, %s3090_s18  ;;  %p3098_p9 = scmp.lt.s32.totalorder %s378_s13, %s378_s13 }
  0x8a   : > { %p3099_p10 = scmp.lt.s32.totalorder %s3097_s25, %s3090_s18 }
  0x8b   : > { %p3093_p6 = pnand %p3091_p4, %p3343_p7 }
  0x8c   : > { %p3100_p11 = por %p3099_p10, %p3098_p9 }
  0x8d   : > { %p3094_p8 = pneg %p3093_p6 }
  0x8f   : > { %p3101_p12 = pnand %p3100_p11, %p3094_p8 }
  0x91   : > { %3104 = shalt.err (!%p3101_p12)
}
  0x92   : > { %2715 = dma.hbm_to_vmem [thread:$0]  (!%p3327_p5), %s3916_s4, 16, %s378_s13, [#allocation6]  }
  0x93   : > { %s3225_s17 = smov [#allocation10]   ;;  %s3226_s21 = smov [#allocation13]  }
  0x94   : > { %s399_s20 = sshll.u32 %s3225_s17, 4  ;;  %s429_s14 = sshll.u32 %s3226_s21, 4  ;;  %s400_s20 = int_to_ptr.vmem [resolvable:$true] %s399_s20  ;;  %s430_s14 = int_to_ptr.vmem [resolvable:$true] %s429_s14 }
  0x95   : > { %s3105_s23 = scalar_lea.hbm %s3918_s6, 16 }
  0x96   : > { %p3106_p2 = scmp.ne.s32.totalorder %s3918_s6, %s3105_s23  ;;  %p3112_p0 = scmp.lt.u32.totalorder %s3105_s23, %s3918_s6 }
  0x98   : > { %p3108_p3 = pnand %p3106_p2, %p3343_p7 }
  0x9a   : > { %p3109_p13 = pneg %p3108_p3 }
  0x9c   : > { %p3114_p1 = pnand %p3112_p0, %p3109_p13 }
  0x9e   : > { %3117 = shalt.err (!%p3114_p1)
}
  0x9f   : > { %s3118_s13 = scalar_lea.vmem %s400_s20, 16  ;;  %s3125_s25 = scalar_lea.vmem %s400_s20, 32 }
  0xa0   : > { %p3119_p4 = scmp.ne.s32.totalorder %s400_s20, %s3118_s13  ;;  %p3126_p9 = scmp.lt.s32.totalorder %s400_s20, %s400_s20 }
  0xa1   : > { %p3127_p10 = scmp.lt.s32.totalorder %s3125_s25, %s3118_s13 }
  0xa2   : > { %p3121_p6 = pnand %p3119_p4, %p3343_p7 }
  0xa3   : > { %p3128_p11 = por %p3127_p10, %p3126_p9 }
  0xa4   : > { %p3122_p8 = pneg %p3121_p6 }
  0xa6   : > { %p3129_p12 = pnand %p3128_p11, %p3122_p8 }
  0xa8   : > { %3132 = shalt.err (!%p3129_p12)
}
  0xa9   : > { %2721 = dma.hbm_to_vmem [thread:$0]  (!%p3327_p5), %s3918_s6, 16, %s400_s20, [#allocation9]  }
  0xaa   : > { %s3133_s8 = scalar_lea.hbm %s3922_s10, 16 }
  0xab   : > { %p3134_p2 = scmp.ne.s32.totalorder %s3922_s10, %s3133_s8  ;;  %p3140_p0 = scmp.lt.u32.totalorder %s3133_s8, %s3922_s10 }
  0xad   : > { %p3136_p3 = pnand %p3134_p2, %p3343_p7 }
  0xaf   : > { %p3137_p13 = pneg %p3136_p3 }
  0xb1   : > { %p3142_p1 = pnand %p3140_p0, %p3137_p13 }
  0xb3   : > { %3145 = shalt.err (!%p3142_p1)
}
  0xb4   : > { %s3146_s16 = scalar_lea.vmem %s430_s14, 16  ;;  %s3153_s20 = scalar_lea.vmem %s430_s14, 32 }
  0xb5   : > { %p3147_p4 = scmp.ne.s32.totalorder %s430_s14, %s3146_s16  ;;  %p3154_p9 = scmp.lt.s32.totalorder %s430_s14, %s430_s14 }
  0xb6   : > { %p3155_p10 = scmp.lt.s32.totalorder %s3153_s20, %s3146_s16 }
  0xb7   : > { %p3149_p6 = pnand %p3147_p4, %p3343_p7 }
  0xb8   : > { %p3156_p11 = por %p3155_p10, %p3154_p9 }
  0xb9   : > { %p3150_p8 = pneg %p3149_p6 }
  0xbb   : > { %p3157_p12 = pnand %p3156_p11, %p3150_p8 }
  0xbd   : > { %3160 = shalt.err (!%p3157_p12)
}
  0xbe   : > { %2727 = dma.hbm_to_vmem [thread:$0]  (!%p3327_p5), %s3922_s10, 16, %s430_s14, [#allocation12]  }
  0xbf   : > { %s3227_s25 = smov [#allocation16]   ;;  %s3161_s21 = scalar_lea.hbm %s3924_s12, 16 }
  0xc0   : > { %s451_s27 = sshll.u32 %s3227_s25, 4  ;;  %p3162_p2 = scmp.ne.s32.totalorder %s3924_s12, %s3161_s21  ;;  %s452_s27 = int_to_ptr.vmem [resolvable:$true] %s451_s27 }
  0xc1   : > { %p3168_p0 = scmp.lt.u32.totalorder %s3161_s21, %s3924_s12 }
  0xc2   : > { %p3164_p3 = pnand %p3162_p2, %p3343_p7 }
  0xc4   : > { %p3165_p13 = pneg %p3164_p3 }
  0xc6   : > { %p3170_p1 = pnand %p3168_p0, %p3165_p13 }
  0xc8   : > { %3173 = shalt.err (!%p3170_p1)
}
  0xc9   : > { %s3174_s14 = scalar_lea.vmem %s452_s27, 16  ;;  %s3181_s30 = scalar_lea.vmem %s452_s27, 32 }
  0xca   : > { %p3175_p4 = scmp.ne.s32.totalorder %s452_s27, %s3174_s14  ;;  %p3182_p9 = scmp.lt.s32.totalorder %s452_s27, %s452_s27 }
  0xcb   : > { %p3183_p10 = scmp.lt.s32.totalorder %s3181_s30, %s3174_s14 }
  0xcc   : > { %p3177_p6 = pnand %p3175_p4, %p3343_p7 }
  0xcd   : > { %p3184_p11 = por %p3183_p10, %p3182_p9 }
  0xce   : > { %p3178_p8 = pneg %p3177_p6 }
  0xd0   : > { %p3185_p12 = pnand %p3184_p11, %p3178_p8 }
  0xd2   : > { %3188 = shalt.err (!%p3185_p12)
}
  0xd3   : > { %2733 = dma.hbm_to_vmem [thread:$0]  (!%p3327_p5), %s3924_s12, 16, %s452_s27, [#allocation15]  }
  0xd4   : > { %p3935_p2 = scmp.ne.s32.totalorder %s3932_s29, 0 }
  0xd5   : > { %p3936_p3 = scmp.eq.s32.totalorder (!%p3935_p2), %s3310_s28, 0 }
  0xd6   : > { %472 = sbr.rel (%p3935_p2) target bundleno = 3228 (0xc9c), region = 72 }
  0xdd   : > { %3194 = dma.done.wait (%p3936_p3), [#allocation4], 48   ;;  %p3937_p7 = pmov %p3936_p3 }
  0xde   : > { %p3938_p13 = pmov %p3936_p3 }
  0xdf   : > { %3196 = vsyncadd (%p3937_p7), [#allocation4], 4294967248 }
  0xe0   : > { %3198 = dma.done.wait (%p3938_p13), [#allocation6], 1040   ;;  %p3939_p0 = pmov %p3936_p3 }
  0xe2   : > { %3200 = vsyncadd (%p3939_p0), [#allocation6], 4294966256  ;;  %p3940_p1 = pmov %p3939_p0 }
  0xe3   : > { %p3941_p5 = pmov %p3939_p0 }
  0xe4   : > { %3202 = dma.done.wait (%p3940_p1), [#allocation9], 32  }
  0xe5   : > { %3204 = vsyncadd (%p3941_p5), [#allocation9], 4294967264  ;;  %p3942_p4 = pmov %p3939_p0 }
  0xe6   : > { %p3943_p6 = pmov %p3939_p0 }
  0xe7   : > { %3206 = dma.done.wait (%p3942_p4), [#allocation12], 4112  }
  0xe8   : > { %3208 = vsyncadd (%p3943_p6), [#allocation12], 4294963184  ;;  %p3944_p8 = pmov %p3939_p0 }
  0xe9   : > { %p3945_p9 = pmov %p3939_p0 }
  0xea   : > { %3210 = dma.done.wait (%p3944_p8), [#allocation15], 32  }
  0xeb   : > { %3212 = vsyncadd (%p3945_p9), [#allocation15], 4294967264  ;;  %v3228_v0 = vmov 0   ;;  %v3229_v1 = vmov 0.0   ;;  %v2777_v2 = vld [vmem:[%s3913_s1 + $0x4] ss:$12 sps:$4 sm:$0xff]   ;;  %v596_v29 = vlaneseq }
  0xec   : > { %771 = vmatprep.mubr.bf16.mxu0 %v3228_v0  ;;  %2582 = vmatprep.subr.bf16.mxu1 %v3229_v1  ;;  %v2779_v3 = vld [vmem:[%s3913_s1] ss:$12 sps:$4 sm:$0xff]   ;;  %v2780_v4 = vld [vmem:[%s3913_s1 + $0x1c] ss:$12 sps:$4 sm:$0xff]   ;;  %v2782_v5 = vld [vmem:[%s3913_s1 + $0x18] ss:$12 sps:$4 sm:$0xff]  }
  0xed   : > { %739 = vmatprep.subr.bf16.mxu0 %v2777_v2  ;;  %v2783_v6 = vld [vmem:[%s3913_s1 + $0x34] ss:$12 sps:$4 sm:$0xff]   ;;  %p548_p10 = scmp.lt.s32.totalorder %s3310_s28, 1  ;;  %v2785_v7 = vld [vmem:[%s3913_s1 + $0x30] ss:$12 sps:$4 sm:$0xff]   ;;  %vm3230_vm0 = vmmov 0  }
  0xee   : > { %740 = vmatpush1.bf16.msra.mxu0 %v2779_v3  ;;  %v2786_v8 = vld [vmem:[%s3913_s1 + $0x4c] ss:$12 sps:$4 sm:$0xff]   ;;  %v2788_v9 = vld [vmem:[%s3913_s1 + $0x48] ss:$12 sps:$4 sm:$0xff]   ;;  %v2789_v10 = vld [vmem:[%s3913_s1 + $0x64] ss:$12 sps:$4 sm:$0xff]   ;;  %2598 = vmatprep.mubr.msk.bf16.mxu1 %vm3230_vm0, %v3229_v1 }
  0xef   : > { %741 = vmatprep.subr.bf16.mxu0 %v2780_v4  ;;  %s3950_s28 = smov (!%p548_p10, %s3310_s28), 1  ;;  %v2801_v11 = vld [vmem:[%s3913_s1 + $0x8] ss:$12 sps:$4 sm:$0xff]   ;;  %v2802_v12 = vld [vmem:[%s3913_s1 + $0x20] ss:$12 sps:$4 sm:$0xff]   ;;  %v3653_v30 = vshrl.u32 %v596_v29, 7 }
  0xf0   : > { %s2502_s26 = sshll.u32 %s3950_s28, 4  ;;  %2583 = vmatpush3.bf16.msra.mxu1 %v2801_v11  ;;  %v2791_v13 = vld [vmem:[%s3913_s1 + $0x60] ss:$12 sps:$4 sm:$0xff]   ;;  %v2792_v14 = vld [vmem:[%s3913_s1 + $0x7c] ss:$12 sps:$4 sm:$0xff]   ;;  %vm834_vm1 = vcmask 261120  }
  0xf1   : > { %2584 = vmatprep.subr.bf16.mxu1 %v3229_v1  ;;  %v2794_v15 = vld [vmem:[%s3913_s1 + $0x78] ss:$12 sps:$4 sm:$0xff]   ;;  %v2795_v16 = vld [vmem:[%s3913_s1 + $0x94] ss:$12 sps:$4 sm:$0xff]   ;;  %v2804_v18 = vld [vmem:[%s3913_s1 + $0x50] ss:$12 sps:$4 sm:$0xff]   ;;  %s552_s27 = scalar_lea.vmem %s3912_s0, %s2502_s26 }
  0xf2   : > { %742 = vmatpush1.bf16.msra.mxu0 %v2782_v5  ;;  %v2803_v17 = vld [vmem:[%s3913_s1 + $0x38] ss:$12 sps:$4 sm:$0xff]   ;;  %v2797_v19 = vld [vmem:[%s3913_s1 + $0x90] ss:$12 sps:$4 sm:$0xff]   ;;  %v2805_v21 = vld [vmem:[%s3913_s1 + $0x68] ss:$12 sps:$4 sm:$0xff]  }
  0xf3   : > { %743 = vmatprep.subr.bf16.mxu0 %v2783_v6  ;;  %v2798_v20 = vld [vmem:[%s3913_s1 + $0xac] ss:$12 sps:$4 sm:$0xff]   ;;  %v2800_v22 = vld [vmem:[%s3913_s1 + $0xa8] ss:$12 sps:$4 sm:$0xff]   ;;  %v3626_v23 = vld [vmem:[%s552_s27] sm:$0xff]  ;;  %v598_v31 = vsub.s32 0, %v3653_v30 }
  0xf4   : > { %2585 = vmatpush3.bf16.msra.mxu1 %v2802_v12  ;;  %v3628_v24 = vld [vmem:[%s552_s27 + $0x8] sm:$0xff]  ;;  %v2807_v27 = vld [vmem:[%s3913_s1 + $0x98] ss:$12 sps:$4 sm:$0xff]   ;;  %v2808_v28 = vld [vmem:[%s3913_s1 + $0xb0] ss:$12 sps:$4 sm:$0xff]   ;;  %v602_v33 = vsub.s32 1, %v3653_v30 }
  0xf5   : > { %2586 = vmatprep.subr.bf16.mxu1 %v3229_v1  ;;  %v2806_v25 = vld [vmem:[%s3913_s1 + $0x80] ss:$12 sps:$4 sm:$0xff]   ;;  %v561_v26 = vpack.c.bf16 %v3628_v24, %v3626_v23  ;;  %v594_v32 = vld [vmem:[#allocation3] sm:$0x7]  ;;  %v606_v49 = vsub.s32 2, %v3653_v30  ;;  %v3673_v58 = vand.u32 127, %v596_v29 }
  0xf6   : > { %744 = vmatpush1.bf16.msra.mxu0 %v2785_v7  ;;  %v599_v34 = vrot.slane %v594_v32, %v598_v31  ;;  %v603_v36 = vrot.slane %v594_v32, %v602_v33  ;;  %v3676_v59 = vadd.s32 8, %v3653_v30  ;;  %vm884_vm3 = vcmask 130048   ;;  %s3231_s20 = smov 96   ;;  %s3232_s29 = smov 32  }
  0xf7   : > { %745 = vmatprep.subr.bf16.mxu0 %v2786_v8  ;;  %v607_v50 = vrot.slane %v594_v32, %v606_v49  ;;  %vm828_vm2 = vcmp.le.s32.totalorder %v3673_v58, %v3653_v30  ;;  %s3233_s15 = smov 64   ;;  %vm1089_vm5 = vcmask 523520   ;;  %vm1223_vm6 = vcmask 785920   ;;  %s3947_s13 = sld [smem:[#allocation24_spill]] }
  0xf8   : > { %2587 = vmatpush3.bf16.msra.mxu1 %v2803_v17  ;;  %vm829_vm4 = vcmp.le.s32.totalorder %v3673_v58, %v3676_v59  ;;  %vm1357_vm7 = vcmask 1048320  }
  0xf9   : > { %2588 = vmatprep.subr.bf16.mxu1 %v3229_v1 }
  0xfa   : > { %746 = vmatpush1.bf16.msra.mxu0 %v2788_v9 }
  0xfb   : > { %747 = vmatprep.subr.bf16.mxu0 %v2789_v10 }
  0xfc   : > { %2589 = vmatpush3.bf16.msra.mxu1 %v2804_v18 }
  0xfd   : > { %2590 = vmatprep.subr.bf16.mxu1 %v3229_v1  ;;  %s557_s25 = scalar_lea.vmem %s3947_s13, %s2502_s26 }
  0xfe   : > { %748 = vmatpush1.bf16.msra.mxu0 %v2791_v13 }
  0xff   : > { %749 = vmatprep.subr.bf16.mxu0 %v2792_v14 }
 0x100   : > { %2591 = vmatpush3.bf16.msra.mxu1 %v2805_v21 }
 0x101   : > { %2592 = vmatprep.subr.bf16.mxu1 %v3229_v1 }
 0x102   : > { %750 = vmatpush1.bf16.msra.mxu0 %v2794_v15 }
 0x103   : > { %751 = vmatprep.subr.bf16.mxu0 %v2795_v16 }
 0x104   : > { %2593 = vmatpush3.bf16.msra.mxu1 %v2806_v25 }
 0x105   : > { %2594 = vmatprep.subr.bf16.mxu1 %v3229_v1 }
 0x106   : > { %752 = vmatpush1.bf16.msra.mxu0 %v2797_v19 }
 0x107   : > { %753 = vmatprep.subr.bf16.mxu0 %v2798_v20 }
 0x108   : > { %2595 = vmatpush3.bf16.msra.mxu1 %v2807_v27 }
 0x109   : > { %2596 = vmatprep.subr.bf16.mxu1 %v3229_v1 }
 0x10a   : > { %754 = vmatpush1.bf16.msra.mxu0 %v2800_v22 }
 0x10b   : > { %2626 = vmatprep.subr.bf16.mxu0 %v3229_v1 }
 0x10c   : > { %2597 = vmatpush3.bf16.msra.mxu1 %v2808_v28 }
 0x10d   : > { %772 = vmatmul.mubr.bf16.vlgmr.msra.gmra.mrb[0].mxu0 %v561_v26  ;;  %2602 = vmatprep.subr.bf16.mxu1 %v3229_v1 }
 0x10e   : > { %2628 = vmatprep.mubr.msk.bf16.mxu0 %vm3230_vm0, %v3229_v1 }
 0x10f   : > { %2599 = vmatmul.mubr.bf16.vlgmr.msra.gmra.mrb[0].mxu1 %v561_v26 }
 0x110   : > { %2604 = vmatprep.mubr.msk.bf16.mxu1 %vm3230_vm0, %v3229_v1 }
 0x1e0   : > { %v773_v35 = vpop.f32.mrb[0].mxu0 }
 0x1e1   : > { %v774_v37 = vadd.f32 %v773_v35, %v599_v34  ;;  %v775_v38 = vpop.f32.mrb[1].mxu0 }
 0x1e2   : > { %v777_v39 = vpop.f32.mrb[2].mxu0  ;;  %v776_v42 = vadd.f32 %v775_v38, %v603_v36  ;;  %v816_v51 = vpop.f32.mrb[0].mxu1 }
 0x1e3   : > { %v778_v40 = vadd.f32 %v777_v39, %v599_v34  ;;  %v779_v41 = vpop.f32.mrb[3].mxu0  ;;  %v830_v44 = vmul.f32 0.17677669, %v774_v37  ;;  %v817_v52 = vadd.f32 %v816_v51, %v607_v50  ;;  %v2600_v53 = vpop.f32.mrb[1].mxu1 }
 0x1e4   : > { %v780_v43 = vadd.f32 %v779_v41, %v603_v36  ;;  %v819_v54 = vpop.f32.mrb[2].mxu1 }
 0x1e5   : > { %v831_v45 = vmul.f32 0.17677669, %v778_v40  ;;  %v820_v55 = vadd.f32 %v819_v54, %v607_v50  ;;  %v2601_v56 = vpop.f32.mrb[3].mxu1 }
 0x1e6   : > { %v833_v46 = vpack.c.bf16 %v780_v43, %v776_v42 }
 0x1e7   : > { %v832_v47 = vpack.c.bf16 %v831_v45, %v830_v44  ;;  %v3669_v57 = vpack.c.bf16 %v820_v55, %v817_v52 }
 0x1e8   : > { %v839_v48 = vsel %vm834_vm1, %v833_v46, 0 }
 0x1e9   : > { %2603 = vmatpush3.bf16.xpose.msra.mxu1 %v839_v48 }
 0x1ea   : > { %2608 = vmatprep.subr.bf16.mxu1 %v3229_v1 }
 0x1f0   : > { %2605 = vmatmul.mubr.msk.bf16.vlgmr.msra.gmra.mrb[4].mxu1 %vm834_vm1, %v832_v47 }
 0x1f1   : > { %2610 = vmatprep.mubr.msk.bf16.mxu1 %vm3230_vm0, %v3229_v1  ;;  %2609 = vmatpush3.bf16.msra.mxu1 %v3669_v57 }
 0x1f2   : > { %2614 = vmatprep.subr.bf16.mxu1 %v3229_v1 }
 0x2c3   : > { %v875_v60 = vpop.f32.mrb[4].mxu1 }
 0x2c4   : > { %v882_v61 = vsel %vm828_vm2, %v875_v60, -1e+30  ;;  %v2606_v62 = vpop.f32.mrb[5].mxu1 }
 0x2c5   : > { %v878_v63 = vpop.f32.mrb[6].mxu1  ;;  %v885_v2 = vsel %vm884_vm3, %v882_v61, -inf }
 0x2c6   : > { %v883_v3 = vsel %vm829_vm4, %v878_v63, -1e+30  ;;  %886 = vmax.xlane.f32.xlu0 %v885_v2  ;;  %v2607_v4 = vpop.f32.mrb[7].mxu1 }
 0x2c7   : > { %v888_v5 = vsel %vm884_vm3, %v883_v3, -inf }
 0x2ca   : > { %889 = vmax.xlane.f32.xlu0 %v888_v5 }
 0x2e0   : > { %959 = vrot.lane.b32.xlu0 %v833_v46, %s3231_s20 }
 0x2e4   : > { %1228 = vrot.lane.b32.xlu0 %v833_v46, %s3232_s29 }
 0x353   : > { %v887_v6 = vpop.xlane.xlu0 %886 }
 0x354   : > { %v891_v7 = vsub.f32 %v882_v61, %v887_v6 }
 0x356   : > { %v893_v8 = vmul.f32 1.442695, %v891_v7 }
 0x357   : > { %v890_v9 = vpop.xlane.xlu0 %889 }
 0x358   : > { %2897 = vpow2.f32 %v893_v8  ;;  %v892_v10 = vsub.f32 %v883_v3, %v890_v9 }
 0x35a   : > { %v895_v11 = vmul.f32 1.442695, %v892_v10 }
 0x35b   : > { %v960_v19 = vpop.permute.xlu0 %959 }
 0x35c   : > { %2899 = vpow2.f32 %v895_v11  ;;  %v965_v32 = vsel %vm834_vm1, %v960_v19, 0 }
 0x35f   : > { %v1229_v28 = vpop.permute.xlu0 %1228 }
 0x360   : > { %v1234_v35 = vsel %vm834_vm1, %v1229_v28, 0 }
 0x362   : > { %v2898_v12 = vpop.eup %2897 }
 0x363   : > { %v897_v13 = vsel %vm884_vm3, %v2898_v12, 0.0 }
 0x364   : > { %898 = vadd.xlane.f32.xlu1 %v897_v13 }
 0x366   : > { %v2900_v14 = vpop.eup %2899 }
 0x367   : > { %v900_v15 = vsel %vm884_vm3, %v2900_v14, 0.0 }
 0x368   : > { %901 = vadd.xlane.f32.xlu1 %v900_v15 }
 0x379   : > { %956 = vrot.lane.b32.xlu1 %v832_v47, %s3231_s20 }
 0x37d   : > { %1094 = vrot.lane.b32.xlu1 %v833_v46, %s3233_s15 }
 0x381   : > { %1092 = vrot.lane.b32.xlu1 %v832_v47, %s3233_s15 }
 0x385   : > { %1226 = vrot.lane.b32.xlu1 %v832_v47, %s3232_s29 }
 0x3f1   : > { %v899_v16 = vpop.xlane.xlu1 %898 }
 0x3f2   : > { %2901 = vrcp.f32 %v899_v16 }
 0x3f5   : > { %v902_v17 = vpop.xlane.xlu1 %901 }
 0x3f6   : > { %2903 = vrcp.f32 %v902_v17 }
 0x3f9   : > { %v957_v18 = vpop.permute.xlu1 %956 }
 0x3fc   : > { %v2902_v21 = vpop.eup %2901 }
 0x3fd   : > { %v1095_v20 = vpop.permute.xlu1 %1094  ;;  %v905_v26 = vmul.f32 %v2902_v21, %v2898_v12 }
 0x3fe   : > { %v1100_v22 = vsel %vm834_vm1, %v1095_v20, 0 }
 0x3ff   : > { %2627 = vmatpush3.bf16.xpose.msra.mxu0 %v1100_v22 }
 0x400   : > { %v2904_v25 = vpop.eup %2903  ;;  %2638 = vmatprep.subr.bf16.mxu0 %v3229_v1 }
 0x401   : > { %v906_v27 = vmul.f32 %v2904_v25, %v2900_v14  ;;  %v1093_v34 = vpop.permute.xlu1 %1092 }
 0x403   : > { %v907_v29 = vpack.c.bf16 %v906_v27, %v905_v26 }
 0x405   : > { %2611 = vmatmul.mubr.msk.bf16.vlgmr.msra.gmra.mrb[8].mxu1 %vm884_vm3, %v907_v29  ;;  %v1227_v36 = vpop.permute.xlu1 %1226 }
 0x406   : > { %2615 = vmatpush3.bf16.xpose.msra.mxu1 %v965_v32  ;;  %2629 = vmatmul.mubr.msk.bf16.vlgmr.msra.gmra.mrb[4].mxu0 %vm834_vm1, %v1093_v34 }
 0x407   : > { %2639 = vmatpush3.bf16.xpose.msra.mxu0 %v1234_v35  ;;  %2616 = vmatprep.mubr.msk.bf16.mxu1 %vm3230_vm0, %v3229_v1 }
 0x408   : > { %2640 = vmatprep.mubr.msk.bf16.mxu0 %vm3230_vm0, %v3229_v1  ;;  %2620 = vmatprep.subr.bf16.mxu1 %v3229_v1 }
 0x409   : > { %2650 = vmatprep.subr.bf16.mxu0 %v3229_v1 }
 0x40d   : > { %2617 = vmatmul.mubr.msk.bf16.vlgmr.msra.gmra.mrb[12].mxu1 %vm834_vm1, %v957_v18 }
 0x40e   : > { %2641 = vmatmul.mubr.msk.bf16.vlgmr.msra.gmra.mrb[8].mxu0 %vm834_vm1, %v1227_v36  ;;  %2622 = vmatprep.mubr.msk.bf16.mxu1 %vm3230_vm0, %v3229_v1 }
 0x40f   : > { %2666 = vmatprep.mubr.msk.bf16.mxu0 %vm3230_vm0, %v3229_v1 }
 0x4d8   : > { %v946_v37 = vpop.f32.mrb[8].mxu1 }
 0x4d9   : > { %953 = vst.msk [vmem:[#allocation2] sm:$0xff] %vm834_vm1, %v946_v37  ;;  %v2612_v38 = vpop.f32.mrb[9].mxu1  ;;  %v1136_v39 = vpop.f32.mrb[4].mxu0 }
 0x4da   : > { %v949_v40 = vpop.f32.mrb[10].mxu1  ;;  %v2630_v41 = vpop.f32.mrb[5].mxu0  ;;  %v1143_v53 = vsel %vm828_vm2, %v1136_v39, -1e+30 }
 0x4db   : > { %954 = vst.msk [vmem:[#allocation2 + $0x8] sm:$0xff] %vm834_vm1, %v949_v40  ;;  %v2613_v42 = vpop.f32.mrb[11].mxu1  ;;  %v1139_v43 = vpop.f32.mrb[6].mxu0  ;;  %v1145_v63 = vsel %vm884_vm3, %v1143_v53, -inf }
 0x4dc   : > { %v2631_v44 = vpop.f32.mrb[7].mxu0  ;;  %v1144_v2 = vsel %vm829_vm4, %v1139_v43, -1e+30 }
 0x4dd   : > { %v1148_v4 = vsel %vm884_vm3, %v1144_v2, -inf }
 0x4e0   : > { %v1001_v45 = vpop.f32.mrb[12].mxu1 }
 0x4e1   : > { %v1008_v46 = vsel %vm828_vm2, %v1001_v45, -1e+30  ;;  %v2618_v47 = vpop.f32.mrb[13].mxu1  ;;  %v1270_v48 = vpop.f32.mrb[8].mxu0 }
 0x4e2   : > { %v1004_v50 = vpop.f32.mrb[14].mxu1  ;;  %v2642_v51 = vpop.f32.mrb[9].mxu0  ;;  %v1010_v52 = vsel %vm884_vm3, %v1008_v46, -inf  ;;  %v1277_v5 = vsel %vm828_vm2, %v1270_v48, -1e+30 }
 0x4e3   : > { %v1009_v54 = vsel %vm829_vm4, %v1004_v50, -1e+30  ;;  %v1273_v55 = vpop.f32.mrb[10].mxu0  ;;  %1011 = vmax.xlane.f32.xlu0 %v1010_v52  ;;  %v2619_v56 = vpop.f32.mrb[15].mxu1  ;;  %v1279_v6 = vsel %vm884_vm3, %v1277_v5, -inf }
 0x4e4   : > { %v2643_v60 = vpop.f32.mrb[11].mxu0  ;;  %v1013_v61 = vsel %vm884_vm3, %v1009_v54, -inf  ;;  %v1278_v62 = vsel %vm829_vm4, %v1273_v55, -1e+30 }
 0x4e5   : > { %1014 = vmax.xlane.f32.xlu1 %v1013_v61  ;;  %v1282_v3 = vsel %vm884_vm3, %v1278_v62, -inf }
 0x4e7   : > { %1146 = vmax.xlane.f32.xlu0 %v1145_v63 }
 0x4e9   : > { %1283 = vmax.xlane.f32.xlu1 %v1282_v3 }
 0x4eb   : > { %1149 = vmax.xlane.f32.xlu0 %v1148_v4 }
 0x4ef   : > { %1280 = vmax.xlane.f32.xlu0 %v1279_v6  ;;  %v2810_v6 = vld [vmem:[#allocation5 + $0x8] sm:$0xff]  }
 0x570   : > { %v1012_v7 = vpop.xlane.xlu0 %1011 }
 0x571   : > { %v1016_v15 = vsub.f32 %v1008_v46, %v1012_v7  ;;  %v2811_v7 = vld [vmem:[#allocation5 + $0x10] sm:$0xff]  }
 0x572   : > { %v1015_v8 = vpop.xlane.xlu1 %1014 }
 0x573   : > { %v1017_v16 = vsub.f32 %v1009_v54, %v1015_v8  ;;  %v1018_v20 = vmul.f32 1.442695, %v1016_v15  ;;  %v2812_v8 = vld [vmem:[#allocation5 + $0x18] sm:$0xff]  }
 0x574   : > { %v1147_v9 = vpop.xlane.xlu0 %1146 }
 0x575   : > { %v1151_v10 = vsub.f32 %v1143_v53, %v1147_v9  ;;  %v1020_v21 = vmul.f32 1.442695, %v1017_v16  ;;  %v2813_v9 = vld [vmem:[#allocation5 + $0x20] sm:$0xff]  }
 0x576   : > { %v1284_v59 = vpop.xlane.xlu1 %1283 }
 0x577   : > { %v1153_v11 = vmul.f32 1.442695, %v1151_v10  ;;  %v1286_v12 = vsub.f32 %v1278_v62, %v1284_v59 }
 0x578   : > { %v1150_v13 = vpop.xlane.xlu0 %1149 }
 0x579   : > { %2905 = vpow2.f32 %v1153_v11  ;;  %v1152_v14 = vsub.f32 %v1144_v2, %v1150_v13  ;;  %v1289_v17 = vmul.f32 1.442695, %v1286_v12  ;;  %v2814_v13 = vld [vmem:[#allocation5 + $0x28] sm:$0xff]  }
 0x57b   : > { %v1155_v18 = vmul.f32 1.442695, %v1152_v14  ;;  %v2815_v14 = vld [vmem:[#allocation5 + $0x30] sm:$0xff]  }
 0x57c   : > { %v1281_v58 = vpop.xlane.xlu0 %1280 }
 0x57d   : > { %2907 = vpow2.f32 %v1155_v18  ;;  %v1285_v19 = vsub.f32 %v1277_v5, %v1281_v58  ;;  %v2809_v5 = vld [vmem:[#allocation5] sm:$0xff]   ;;  %v2816_v18 = vld [vmem:[#allocation5 + $0x38] sm:$0xff]  }
 0x57e   : > { %2909 = vpow2.f32 %v1289_v17  ;;  %2651 = vmatpush3.bf16.msra.mxu0 %v2809_v5  ;;  %v2835_v5 = vld [vmem:[%s3919_s7 + $0x60] ss:$16 sps:$4 sm:$0xff]  }
 0x57f   : > { %v1287_v22 = vmul.f32 1.442695, %v1285_v19  ;;  %2652 = vmatprep.subr.bf16.mxu0 %v3229_v1 }
 0x581   : > { %2911 = vpow2.f32 %v1287_v22 }
 0x582   : > { %2913 = vpow2.f32 %v1018_v20  ;;  %2653 = vmatpush3.bf16.msra.mxu0 %v2810_v6  ;;  %v2838_v6 = vld [vmem:[%s3919_s7 + $0x68] ss:$16 sps:$4 sm:$0xff]  }
 0x583   : > { %v2906_v25 = vpop.eup %2905  ;;  %2915 = vpow2.f32 %v1020_v21  ;;  %2654 = vmatprep.subr.bf16.mxu0 %v3229_v1 }
 0x584   : > { %v1157_v26 = vsel %vm884_vm3, %v2906_v25, 0.0 }
 0x585   : > { %1158 = vadd.xlane.f32.xlu0 %v1157_v26 }
 0x586   : > { %2655 = vmatpush3.bf16.msra.mxu0 %v2811_v7  ;;  %v2843_v7 = vld [vmem:[%s3919_s7 + $0x84] ss:$16 sps:$4 sm:$0xff]  }
 0x587   : > { %v2908_v27 = vpop.eup %2907  ;;  %2656 = vmatprep.subr.bf16.mxu0 %v3229_v1 }
 0x588   : > { %v1160_v28 = vsel %vm884_vm3, %v2908_v27, 0.0  ;;  %v2910_v29 = vpop.eup %2909 }
 0x589   : > { %1161 = vadd.xlane.f32.xlu1 %v1160_v28  ;;  %v1294_v36 = vsel %vm884_vm3, %v2910_v29, 0.0 }
 0x58a   : > { %2657 = vmatpush3.bf16.msra.mxu0 %v2812_v8  ;;  %v2846_v8 = vld [vmem:[%s3919_s7 + $0x8c] ss:$16 sps:$4 sm:$0xff]  }
 0x58b   : > { %v2912_v32 = vpop.eup %2911  ;;  %2658 = vmatprep.subr.bf16.mxu0 %v3229_v1 }
 0x58c   : > { %v2914_v34 = vpop.eup %2913  ;;  %v1291_v35 = vsel %vm884_vm3, %v2912_v32, 0.0 }
 0x58d   : > { %v2916_v37 = vpop.eup %2915  ;;  %1292 = vadd.xlane.f32.xlu0 %v1291_v35  ;;  %1295 = vadd.xlane.f32.xlu1 %v1294_v36  ;;  %v1022_v38 = vsel %vm884_vm3, %v2914_v34, 0.0  ;;  %v2422_v36 = vld [vmem:[#allocation7] ss:$0 sm:$0xff] }
 0x58e   : > { %v1025_v39 = vsel %vm884_vm3, %v2916_v37, 0.0  ;;  %2659 = vmatpush3.bf16.msra.mxu0 %v2813_v9  ;;  %v2841_v9 = vld [vmem:[%s3919_s7 + $0x80] ss:$16 sps:$4 sm:$0xff]  }
 0x58f   : > { %2660 = vmatprep.subr.bf16.mxu0 %v3229_v1 }
 0x591   : > { %1023 = vadd.xlane.f32.xlu0 %v1022_v38  ;;  %1026 = vadd.xlane.f32.xlu1 %v1025_v39 }
 0x592   : > { %2661 = vmatpush3.bf16.msra.mxu0 %v2814_v13  ;;  %v2850_v13 = vld [vmem:[%s3919_s7 + $0xa8] ss:$16 sps:$4 sm:$0xff]  }
 0x593   : > { %2662 = vmatprep.subr.bf16.mxu0 %v3229_v1 }
 0x596   : > { %2663 = vmatpush3.bf16.msra.mxu0 %v2815_v14  ;;  %v2855_v14 = vld [vmem:[%s3919_s7 + $0xc4] ss:$16 sps:$4 sm:$0xff]  }
 0x597   : > { %2664 = vmatprep.subr.bf16.mxu0 %v3229_v1 }
 0x59a   : > { %2665 = vmatpush3.bf16.msra.mxu0 %v2816_v18  ;;  %v2861_v18 = vld [vmem:[%s3919_s7 + $0xe4] ss:$16 sps:$4 sm:$0xff]  }
 0x5a2   : > { %1168 = vrot.lane.b32.xlu1 %v3669_v57, %s3233_s15 }
 0x5a6   : > { %1302 = vrot.lane.b32.xlu1 %v3669_v57, %s3232_s29 }
 0x5a7   : > { %1034 = vrot.lane.b32.xlu0 %v3669_v57, %s3231_s20 }
 0x612   : > { %v1159_v40 = vpop.xlane.xlu0 %1158 }
 0x616   : > { %v1162_v41 = vpop.xlane.xlu1 %1161 }
 0x61a   : > { %v1293_v42 = vpop.xlane.xlu0 %1292  ;;  %v1296_v43 = vpop.xlane.xlu1 %1295 }
 0x61e   : > { %v1024_v44 = vpop.xlane.xlu0 %1023  ;;  %v1027_v45 = vpop.xlane.xlu1 %1026 }
 0x61f   : > { %2917 = vrcp.f32 %v1024_v44 }
 0x620   : > { %2919 = vrcp.f32 %v1027_v45  ;;  %v2817_v45 = vld [vmem:[%s3919_s7] ss:$16 sps:$4 sm:$0xff]  }
 0x621   : > { %2921 = vrcp.f32 %v1162_v41 }
 0x622   : > { %v1035_v46 = vpop.permute.xlu0 %1034  ;;  %2923 = vrcp.f32 %v1159_v40  ;;  %v1169_v53 = vpop.permute.xlu1 %1168 }
 0x623   : > { %2621 = vmatpush3.bf16.msra.mxu1 %v1035_v46  ;;  %2925 = vrcp.f32 %v1293_v42  ;;  %v2820_v46 = vld [vmem:[%s3919_s7 + $0x8] ss:$16 sps:$4 sm:$0xff]  }
 0x624   : > { %2632 = vmatprep.subr.bf16.mxu1 %v3229_v1  ;;  %2927 = vrcp.f32 %v1296_v43 }
 0x626   : > { %v1303_v63 = vpop.permute.xlu1 %1302 }
 0x629   : > { %v2918_v47 = vpop.eup %2917 }
 0x62a   : > { %v2920_v48 = vpop.eup %2919  ;;  %v1030_v50 = vmul.f32 %v2918_v47, %v2914_v34  ;;  %v2828_v47 = vld [vmem:[%s3919_s7 + $0x2c] ss:$16 sps:$4 sm:$0xff]  }
 0x62b   : > { %v1031_v51 = vmul.f32 %v2920_v48, %v2916_v37  ;;  %v2922_v52 = vpop.eup %2921  ;;  %v2823_v48 = vld [vmem:[%s3919_s7 + $0x20] ss:$16 sps:$4 sm:$0xff]  }
 0x62c   : > { %v2924_v54 = vpop.eup %2923  ;;  %v1166_v55 = vmul.f32 %v2922_v52, %v2908_v27 }
 0x62d   : > { %v1032_v57 = vpack.c.bf16 %v1031_v51, %v1030_v50  ;;  %v1165_v56 = vmul.f32 %v2924_v54, %v2906_v25  ;;  %v2926_v60 = vpop.eup %2925  ;;  %v2826_v50 = vld [vmem:[%s3919_s7 + $0x28] ss:$16 sps:$4 sm:$0xff]  }
 0x62e   : > { %v2928_v62 = vpop.eup %2927  ;;  %v1299_v2 = vmul.f32 %v2926_v60, %v2912_v32 }
 0x62f   : > { %2623 = vmatmul.mubr.msk.bf16.vlgmr.msra.gmra.mrb[16].mxu1 %vm884_vm3, %v1032_v57  ;;  %v1167_v61 = vpack.c.bf16 %v1166_v55, %v1165_v56  ;;  %v1300_v3 = vmul.f32 %v2928_v62, %v2910_v29  ;;  %v2834_v62 = vld [vmem:[%s3919_s7 + $0x4c] ss:$16 sps:$4 sm:$0xff]  }
 0x630   : > { %2633 = vmatpush3.bf16.msra.mxu1 %v1169_v53  ;;  %2634 = vmatprep.mubr.msk.bf16.mxu1 %vm3230_vm0, %v3229_v1 }
 0x631   : > { %2644 = vmatprep.subr.bf16.mxu1 %v3229_v1  ;;  %v1301_v4 = vpack.c.bf16 %v1300_v3, %v1299_v2  ;;  %v2832_v2 = vld [vmem:[%s3919_s7 + $0x48] ss:$16 sps:$4 sm:$0xff]   ;;  %v2837_v3 = vld [vmem:[%s3919_s7 + $0x64] ss:$16 sps:$4 sm:$0xff]  }
 0x637   : > { %2635 = vmatmul.mubr.msk.bf16.vlgmr.msra.gmra.mrb[20].mxu1 %vm884_vm3, %v1167_v61  ;;  %v2831_v61 = vld [vmem:[%s3919_s7 + $0x44] ss:$16 sps:$4 sm:$0xff]  }
 0x638   : > { %2645 = vmatpush3.bf16.msra.mxu1 %v1303_v63  ;;  %2646 = vmatprep.mubr.msk.bf16.mxu1 %vm3230_vm0, %v3229_v1  ;;  %v2829_v63 = vld [vmem:[%s3919_s7 + $0x40] ss:$16 sps:$4 sm:$0xff]  }
 0x63f   : > { %2647 = vmatmul.mubr.msk.bf16.vlgmr.msra.gmra.mrb[24].mxu1 %vm884_vm3, %v1301_v4  ;;  %v2840_v4 = vld [vmem:[%s3919_s7 + $0x6c] ss:$16 sps:$4 sm:$0xff]  }
 0x640   : > { %1765 = vmatprep.mubr.bf16.mxu1 %v3228_v0 }
 0x702   : > { %v1074_v10 = vpop.f32.mrb[16].mxu1 }
 0x703   : > { %1083 = vrot.lane.b32.xlu1 %v1074_v10, %s3232_s29  ;;  %v2624_v59 = vpop.f32.mrb[17].mxu1  ;;  %v2844_v10 = vld [vmem:[%s3919_s7 + $0x88] ss:$16 sps:$4 sm:$0xff]  }
 0x704   : > { %v1077_v11 = vpop.f32.mrb[18].mxu1  ;;  %v2849_v59 = vld [vmem:[%s3919_s7 + $0xa4] ss:$16 sps:$4 sm:$0xff]  }
 0x705   : > { %1085 = vrot.lane.b32.xlu0 %v1077_v11, %s3232_s29  ;;  %v2625_v12 = vpop.f32.mrb[19].mxu1  ;;  %v2852_v11 = vld [vmem:[%s3919_s7 + $0xac] ss:$16 sps:$4 sm:$0xff]   ;;  %s3946_s29 = sld [smem:[#allocation23_spill]] }
 0x706   : > { %v2847_v12 = vld [vmem:[%s3919_s7 + $0xa0] ss:$16 sps:$4 sm:$0xff]  }
 0x70a   : > { %v1208_v15 = vpop.f32.mrb[20].mxu1 }
 0x70b   : > { %1217 = vrot.lane.b32.xlu1 %v1208_v15, %s3233_s15  ;;  %v2636_v16 = vpop.f32.mrb[21].mxu1  ;;  %v2858_v15 = vld [vmem:[%s3919_s7 + $0xcc] ss:$16 sps:$4 sm:$0xff]  }
 0x70c   : > { %v1211_v17 = vpop.f32.mrb[22].mxu1  ;;  %v2853_v16 = vld [vmem:[%s3919_s7 + $0xc0] ss:$16 sps:$4 sm:$0xff]  }
 0x70d   : > { %1219 = vrot.lane.b32.xlu0 %v1211_v17, %s3233_s15  ;;  %v2637_v58 = vpop.f32.mrb[23].mxu1  ;;  %v2856_v17 = vld [vmem:[%s3919_s7 + $0xc8] ss:$16 sps:$4 sm:$0xff]  }
 0x70e   : > { %v2864_v58 = vld [vmem:[%s3919_s7 + $0xec] ss:$16 sps:$4 sm:$0xff]  }
 0x712   : > { %v1342_v19 = vpop.f32.mrb[24].mxu1 }
 0x713   : > { %1351 = vrot.lane.b32.xlu1 %v1342_v19, %s3231_s20  ;;  %v2648_v20 = vpop.f32.mrb[25].mxu1  ;;  %v2859_v19 = vld [vmem:[%s3919_s7 + $0xe0] ss:$16 sps:$4 sm:$0xff]  }
 0x714   : > { %v1345_v21 = vpop.f32.mrb[26].mxu1  ;;  %v2862_v20 = vld [vmem:[%s3919_s7 + $0xe8] ss:$16 sps:$4 sm:$0xff]  }
 0x715   : > { %1353 = vrot.lane.b32.xlu0 %v1345_v21, %s3231_s20  ;;  %v2649_v22 = vpop.f32.mrb[27].mxu1  ;;  %v2865_v21 = vld [vmem:[#allocation11 + $0x40] sm:$0xff]  }
 0x716   : > { %v2866_v22 = vld [vmem:[#allocation11 + $0xc0] sm:$0xff]  }
 0x775   : > { %v1084_v25 = vpop.permute.xlu1 %1083 }
 0x776   : > { %1090 = vst.msk [vmem:[#allocation2] sm:$0xff] %vm1089_vm5, %v1084_v25 }
 0x777   : > { %v1086_v26 = vpop.permute.xlu0 %1085 }
 0x778   : > { %1091 = vst.msk [vmem:[#allocation2 + $0x8] sm:$0xff] %vm1089_vm5, %v1086_v26 }
 0x77d   : > { %v1218_v27 = vpop.permute.xlu1 %1217 }
 0x77e   : > { %1224 = vst.msk [vmem:[#allocation2] sm:$0xff] %vm1223_vm6, %v1218_v27 }
 0x77f   : > { %v1220_v28 = vpop.permute.xlu0 %1219 }
 0x780   : > { %1225 = vst.msk [vmem:[#allocation2 + $0x8] sm:$0xff] %vm1223_vm6, %v1220_v28 }
 0x785   : > { %v1352_v1 = vpop.permute.xlu1 %1351 }
 0x786   : > { %1358 = vst.msk [vmem:[#allocation2] sm:$0xff] %vm1357_vm7, %v1352_v1 }
 0x787   : > { %v1354_v29 = vpop.permute.xlu0 %1353 }
 0x788   : > { %1359 = vst.msk [vmem:[#allocation2 + $0x8] sm:$0xff] %vm1357_vm7, %v1354_v29 }
 0x78d   : > { %v1360_v32 = vld [vmem:[#allocation2] sm:$0xff] }
 0x78f   : > { %v1361_v34 = vld [vmem:[#allocation2 + $0x8] sm:$0xff] }
 0x790   : > { %v1362_v35 = vpack.c.bf16 %v1361_v34, %v1360_v32 }
 0x792   : > { %2667 = vmatmul.mubr.bf16.vlgmr.msra.gmra.mrb[12].mxu0 %v1362_v35  ;;  %v2431_v35 = vld [vmem:[#allocation8] ss:$0 sm:$0xff] }
 0x793   : > { %1808 = vmatprep.mubr.bf16.mxu0 %v3228_v0  ;;  %v2819_v0 = vld [vmem:[%s3919_s7 + $0x4] ss:$16 sps:$4 sm:$0xff]  }
 0x794   : > { %1733 = vmatprep.subr.bf16.mxu1 %v2819_v0  ;;  %v2869_v0 = vld [vmem:[#allocation11 + $0x48] sm:$0xff]  }
 0x795   : > { %1734 = vmatpush1.bf16.msra.mxu1 %v2817_v45 }
 0x865   : > { %v1468_v37 = vpop.f32.mrb[12].mxu0 }
 0x866   : > { %v1469_v38 = vadd.f32 %v2422_v36, %v1468_v37  ;;  %v2668_v39 = vpop.f32.mrb[13].mxu0 }
 0x867   : > { %v1471_v40 = vpop.f32.mrb[14].mxu0  ;;  %v2432_v39 = vld [vmem:[#allocation10] ss:$0 sm:$0xff] }
 0x868   : > { %v1472_v41 = vadd.f32 %v2422_v36, %v1471_v40  ;;  %v2669_v42 = vpop.f32.mrb[15].mxu0  ;;  %v1475_v43 = vadd.f32 %v1469_v38, %v3626_v23  ;;  %v2822_v23 = vld [vmem:[%s3919_s7 + $0xc] ss:$16 sps:$4 sm:$0xff]  }
 0x869   : > { %1776 = vmatprep.subr.bf16.mxu0 %v2822_v23  ;;  %v2871_v23 = vld [vmem:[#allocation11 + $0x8] sm:$0xff]  }
 0x86a   : > { %1479 = vadd.xlane.f32.xlu1 %v1475_v43  ;;  %v1476_v44 = vadd.f32 %v1472_v41, %v3628_v24  ;;  %v2825_v24 = vld [vmem:[%s3919_s7 + $0x24] ss:$16 sps:$4 sm:$0xff]   ;;  %1777 = vmatpush1.bf16.msra.mxu0 %v2820_v46 }
 0x86b   : > { %1735 = vmatprep.subr.bf16.mxu1 %v2825_v24  ;;  %1778 = vmatprep.subr.bf16.mxu0 %v2828_v47  ;;  %v2870_v46 = vld [vmem:[#allocation11 + $0xc8] sm:$0xff]   ;;  %v2873_v47 = vld [vmem:[#allocation11 + $0x50] sm:$0xff]  }
 0x86c   : > { %1481 = vadd.xlane.f32.xlu0 %v1476_v44  ;;  %1736 = vmatpush1.bf16.msra.mxu1 %v2823_v48  ;;  %v2872_v24 = vld [vmem:[#allocation11 + $0x88] sm:$0xff]   ;;  %v2874_v48 = vld [vmem:[#allocation11 + $0xd0] sm:$0xff]  }
 0x86d   : > { %1737 = vmatprep.subr.bf16.mxu1 %v2831_v61  ;;  %v2884_v61 = vld [vmem:[#allocation11 + $0xa0] sm:$0xff]  }
 0x86e   : > { %1779 = vmatpush1.bf16.msra.mxu0 %v2826_v50  ;;  %v2875_v50 = vld [vmem:[#allocation11 + $0x10] sm:$0xff]  }
 0x86f   : > { %1780 = vmatprep.subr.bf16.mxu0 %v2834_v62  ;;  %v2885_v62 = vld [vmem:[#allocation11 + $0x68] sm:$0xff]  }
 0x870   : > { %1738 = vmatpush1.bf16.msra.mxu1 %v2829_v63  ;;  %v2886_v63 = vld [vmem:[#allocation11 + $0xe8] sm:$0xff]  }
 0x871   : > { %1739 = vmatprep.subr.bf16.mxu1 %v2837_v3  ;;  %v2888_v3 = vld [vmem:[#allocation11 + $0xa8] sm:$0xff]  }
 0x872   : > { %1781 = vmatpush1.bf16.msra.mxu0 %v2832_v2  ;;  %v2887_v2 = vld [vmem:[#allocation11 + $0x28] sm:$0xff]  }
 0x873   : > { %1782 = vmatprep.subr.bf16.mxu0 %v2840_v4  ;;  %v2889_v4 = vld [vmem:[#allocation11 + $0x70] sm:$0xff]  }
 0x874   : > { %1740 = vmatpush1.bf16.msra.mxu1 %v2835_v5  ;;  %v2890_v5 = vld [vmem:[#allocation11 + $0xf0] sm:$0xff]  }
 0x875   : > { %1741 = vmatprep.subr.bf16.mxu1 %v2843_v7  ;;  %v2892_v7 = vld [vmem:[#allocation11 + $0xb0] sm:$0xff]  }
 0x876   : > { %1783 = vmatpush1.bf16.msra.mxu0 %v2838_v6  ;;  %v2891_v6 = vld [vmem:[#allocation11 + $0x30] sm:$0xff]  }
 0x877   : > { %1784 = vmatprep.subr.bf16.mxu0 %v2846_v8  ;;  %v2893_v8 = vld [vmem:[#allocation11 + $0x78] sm:$0xff]  }
 0x878   : > { %1742 = vmatpush1.bf16.msra.mxu1 %v2841_v9  ;;  %v2894_v9 = vld [vmem:[#allocation11 + $0xf8] sm:$0xff]  }
 0x879   : > { %1743 = vmatprep.subr.bf16.mxu1 %v2849_v59  ;;  %v2896_v59 = vld [vmem:[#allocation11 + $0xb8] sm:$0xff]  }
 0x87a   : > { %1785 = vmatpush1.bf16.msra.mxu0 %v2844_v10  ;;  %v2895_v10 = vld [vmem:[#allocation11 + $0x38] sm:$0xff]  }
 0x87b   : > { %1786 = vmatprep.subr.bf16.mxu0 %v2852_v11  ;;  %v1551_v11 = vld [vmem:[%s3946_s29] sm:$0xf] }
 0x87c   : > { %1744 = vmatpush1.bf16.msra.mxu1 %v2847_v12  ;;  %v1567_v12 = vsub.s32 3, %v3653_v30 }
 0x87d   : > { %1745 = vmatprep.subr.bf16.mxu1 %v2855_v14  ;;  %v1564_v14 = vrot.slane %v1551_v11, %v606_v49 }
 0x87e   : > { %1787 = vmatpush1.bf16.msra.mxu0 %v2850_v13  ;;  %v1556_v13 = vrot.slane %v1551_v11, %v598_v31 }
 0x87f   : > { %1788 = vmatprep.subr.bf16.mxu0 %v2858_v15  ;;  %v1560_v15 = vrot.slane %v1551_v11, %v602_v33 }
 0x880   : > { %1746 = vmatpush1.bf16.msra.mxu1 %v2853_v16  ;;  %v1568_v16 = vrot.slane %v1551_v11, %v1567_v12 }
 0x881   : > { %1747 = vmatprep.subr.bf16.mxu1 %v2861_v18 }
 0x882   : > { %1789 = vmatpush1.bf16.msra.mxu0 %v2856_v17 }
 0x883   : > { %1790 = vmatprep.subr.bf16.mxu0 %v2864_v58 }
 0x884   : > { %1748 = vmatpush1.bf16.msra.mxu1 %v2859_v19 }
 0x885   : > { %2538 = vmatprep.subr.bf16.mxu1 %v2865_v21 }
 0x886   : > { %1791 = vmatpush1.bf16.msra.mxu0 %v2862_v20 }
 0x887   : > { %2560 = vmatprep.subr.bf16.mxu0 %v2866_v22 }
 0x8f7   : > { %v1480_v51 = vpop.xlane.xlu1 %1479 }
 0x8f8   : > { %v1484_v57 = vmul.f32 0.0078125, %v1480_v51  ;;  %v2876_v51 = vld [vmem:[#allocation11 + $0x90] sm:$0xff]  }
 0x8f9   : > { %v1482_v52 = vpop.xlane.xlu0 %1481 }
 0x8fa   : > { %v3804_v53 = vsub.f32 %v1475_v43, %v1484_v57  ;;  %v1485_v54 = vmul.f32 0.0078125, %v1482_v52  ;;  %v2867_v43 = vld [vmem:[#allocation11] sm:$0xff]   ;;  %v2877_v57 = vld [vmem:[#allocation11 + $0x58] sm:$0xff]  }
 0x8fb   : > { %v2878_v52 = vld [vmem:[#allocation11 + $0xd8] sm:$0xff]  }
 0x8fc   : > { %v3806_v55 = vsub.f32 %v1476_v44, %v1485_v54  ;;  %v1488_v56 = vmul.f32 %v3804_v53, %v3804_v53  ;;  %v2868_v44 = vld [vmem:[#allocation11 + $0x80] sm:$0xff]   ;;  %v2880_v54 = vld [vmem:[#allocation11 + $0x98] sm:$0xff]  }
 0x8fe   : > { %1490 = vadd.xlane.f32.xlu0 %v1488_v56  ;;  %v1489_v60 = vmul.f32 %v3806_v55, %v3806_v55  ;;  %v2882_v56 = vld [vmem:[#allocation11 + $0xe0] sm:$0xff]  }
 0x902   : > { %1492 = vadd.xlane.f32.xlu0 %v1489_v60  ;;  %v2883_v60 = vld [vmem:[#allocation11 + $0x20] sm:$0xff]  }
 0x98b   : > { %v1491_v25 = vpop.xlane.xlu0 %1490 }
 0x98c   : > { %v1494_v26 = vmul.f32 0.0078125, %v1491_v25 }
 0x98e   : > { %v1496_v27 = vadd.f32 1e-05, %v1494_v26 }
 0x98f   : > { %v1493_v28 = vpop.xlane.xlu0 %1492 }
 0x990   : > { %2929 = vrsqrt.f32 %v1496_v27  ;;  %v1495_v1 = vmul.f32 0.0078125, %v1493_v28 }
 0x992   : > { %v1497_v29 = vadd.f32 1e-05, %v1495_v1 }
 0x994   : > { %2931 = vrsqrt.f32 %v1497_v29 }
 0x99a   : > { %v2930_v32 = vpop.eup %2929 }
 0x99b   : > { %v1500_v34 = vmul.f32 %v2930_v32, %v3804_v53  ;;  %v2879_v53 = vld [vmem:[#allocation11 + $0x18] sm:$0xff]  }
 0x99d   : > { %v1508_v38 = vmul.f32 %v2431_v35, %v1500_v34 }
 0x99e   : > { %v2932_v36 = vpop.eup %2931 }
 0x99f   : > { %v1501_v37 = vmul.f32 %v2932_v36, %v3806_v55  ;;  %v3886_v41 = vadd.f32 %v2432_v39, %v1508_v38  ;;  %v2881_v55 = vld [vmem:[#allocation11 + $0x60] sm:$0xff]  }
 0x9a1   : > { %v1509_v40 = vmul.f32 %v2431_v35, %v1501_v37 }
 0x9a3   : > { %v3888_v42 = vadd.f32 %v2432_v39, %v1509_v40 }
 0x9a5   : > { %v1518_v45 = vpack.c.bf16 %v3888_v42, %v3886_v41 }
 0x9a7   : > { %1766 = vmatmul.mubr.bf16.vlgmr.msra.gmra.mrb[28].mxu1 %v1518_v45  ;;  %1809 = vmatmul.mubr.bf16.vlgmr.msra.gmra.mrb[16].mxu0 %v1518_v45 }
 0x9a8   : > { %2539 = vmatpush3.bf16.msra.mxu1 %v2867_v43  ;;  %2561 = vmatpush3.bf16.msra.mxu0 %v2868_v44 }
 0x9a9   : > { %2540 = vmatprep.subr.bf16.mxu1 %v2869_v0  ;;  %2562 = vmatprep.subr.bf16.mxu0 %v2870_v46 }
 0x9ac   : > { %2541 = vmatpush3.bf16.msra.mxu1 %v2871_v23  ;;  %2563 = vmatpush3.bf16.msra.mxu0 %v2872_v24  ;;  %v2465_v23 = vld [vmem:[#allocation13] ss:$0 sm:$0xff] }
 0x9ad   : > { %2542 = vmatprep.subr.bf16.mxu1 %v2873_v47  ;;  %2564 = vmatprep.subr.bf16.mxu0 %v2874_v48 }
 0x9b0   : > { %2543 = vmatpush3.bf16.msra.mxu1 %v2875_v50  ;;  %2565 = vmatpush3.bf16.msra.mxu0 %v2876_v51 }
 0x9b1   : > { %2544 = vmatprep.subr.bf16.mxu1 %v2877_v57  ;;  %2566 = vmatprep.subr.bf16.mxu0 %v2878_v52 }
 0x9b4   : > { %2545 = vmatpush3.bf16.msra.mxu1 %v2879_v53  ;;  %2567 = vmatpush3.bf16.msra.mxu0 %v2880_v54 }
 0x9b5   : > { %2546 = vmatprep.subr.bf16.mxu1 %v2881_v55  ;;  %2568 = vmatprep.subr.bf16.mxu0 %v2882_v56 }
 0x9b8   : > { %2547 = vmatpush3.bf16.msra.mxu1 %v2883_v60  ;;  %2569 = vmatpush3.bf16.msra.mxu0 %v2884_v61 }
 0x9b9   : > { %2548 = vmatprep.subr.bf16.mxu1 %v2885_v62  ;;  %2570 = vmatprep.subr.bf16.mxu0 %v2886_v63 }
 0x9bc   : > { %2549 = vmatpush3.bf16.msra.mxu1 %v2887_v2  ;;  %2571 = vmatpush3.bf16.msra.mxu0 %v2888_v3 }
 0x9bd   : > { %2550 = vmatprep.subr.bf16.mxu1 %v2889_v4  ;;  %2572 = vmatprep.subr.bf16.mxu0 %v2890_v5 }
 0x9c0   : > { %2551 = vmatpush3.bf16.msra.mxu1 %v2891_v6  ;;  %2573 = vmatpush3.bf16.msra.mxu0 %v2892_v7 }
 0x9c1   : > { %2552 = vmatprep.subr.bf16.mxu1 %v2893_v8  ;;  %2574 = vmatprep.subr.bf16.mxu0 %v2894_v9 }
 0x9c4   : > { %2553 = vmatpush3.bf16.msra.mxu1 %v2895_v10  ;;  %2575 = vmatpush3.bf16.msra.mxu0 %v2896_v59 }
 0xa7a   : > { %v1767_v17 = vpop.f32.mrb[28].mxu1  ;;  %v1810_v18 = vpop.f32.mrb[16].mxu0 }
 0xa7b   : > { %v1768_v58 = vadd.f32 %v1767_v17, %v1556_v13  ;;  %v1811_v19 = vadd.f32 %v1810_v18, %v1564_v14  ;;  %v1769_v20 = vpop.f32.mrb[29].mxu1  ;;  %v1812_v21 = vpop.f32.mrb[17].mxu0  ;;  %v2499_v18 = vld [vmem:[#allocation16] ss:$0 sm:$0xff] }
 0xa7c   : > { %v1770_v22 = vadd.f32 %v1769_v20, %v1560_v15  ;;  %v1813_v25 = vadd.f32 %v1812_v21, %v1568_v16  ;;  %v1771_v26 = vpop.f32.mrb[30].mxu1  ;;  %v1814_v27 = vpop.f32.mrb[18].mxu0 }
 0xa7d   : > { %v1772_v28 = vadd.f32 %v1771_v26, %v1556_v13  ;;  %v1815_v1 = vadd.f32 %v1814_v27, %v1564_v14  ;;  %v1773_v31 = vpop.f32.mrb[31].mxu1  ;;  %v1816_v29 = vpop.f32.mrb[19].mxu0  ;;  %v1819_v34 = vmax.f32 %v1768_v58, 0.0  ;;  %v1821_v30 = vmax.f32 %v1811_v19, 0.0 }
 0xa7e   : > { %v1774_v32 = vadd.f32 %v1773_v31, %v1560_v15  ;;  %v1817_v49 = vadd.f32 %v1816_v29, %v1568_v16  ;;  %v1820_v36 = vmax.f32 %v1770_v22, 0.0  ;;  %v1822_v37 = vmax.f32 %v1813_v25, 0.0  ;;  %v2498_v15 = vld [vmem:[#allocation14] ss:$0 sm:$0xff] }
 0xa7f   : > { %v1823_v33 = vmax.f32 %v1772_v28, 0.0  ;;  %v1825_v35 = vmax.f32 %v1815_v1, 0.0 }
 0xa80   : > { %v1824_v38 = vmax.f32 %v1774_v32, 0.0  ;;  %v1826_v39 = vmax.f32 %v1817_v49, 0.0 }
 0xa81   : > { %v1827_v40 = vpack.c.bf16 %v1823_v33, %v1819_v34  ;;  %v1829_v43 = vpack.c.bf16 %v1825_v35, %v1821_v30 }
 0xa82   : > { %v1828_v44 = vpack.c.bf16 %v1824_v38, %v1820_v36  ;;  %v1830_v45 = vpack.c.bf16 %v1826_v39, %v1822_v37 }
 0xa84   : > { %2126 = vmatprep.mubr.bf16.mxu1 %v1828_v44  ;;  %2167 = vmatprep.mubr.bf16.mxu0 %v1830_v45 }
 0xa85   : > { %2127 = vmatmul.mubr.bf16.vlgmr.msra.gmra.mrb[32].mxu1 %v1827_v40  ;;  %2168 = vmatmul.mubr.bf16.vlgmr.msra.gmra.mrb[20].mxu0 %v1829_v43 }
 0xb58   : > { %v2554_v0 = vpop.f32.mrb[32].mxu1  ;;  %v2576_v46 = vpop.f32.mrb[20].mxu0 }
 0xb59   : > { %v2555_v24 = vpop.f32.mrb[33].mxu1  ;;  %v2577_v47 = vpop.f32.mrb[21].mxu0 }
 0xb5a   : > { %v2556_v48 = vadd.f32 %v2555_v24, %v2554_v0  ;;  %v2578_v50 = vadd.f32 %v2577_v47, %v2576_v46  ;;  %v2557_v51 = vpop.f32.mrb[34].mxu1  ;;  %v2579_v57 = vpop.f32.mrb[22].mxu0 }
 0xb5b   : > { %v2558_v52 = vpop.f32.mrb[35].mxu1  ;;  %v2580_v53 = vpop.f32.mrb[23].mxu0 }
 0xb5c   : > { %v2129_v54 = vadd.f32 %v2556_v48, %v2465_v23  ;;  %v2559_v55 = vadd.f32 %v2558_v52, %v2557_v51  ;;  %v2581_v56 = vadd.f32 %v2580_v53, %v2579_v57 }
 0xb5e   : > { %v2170_v60 = vadd.f32 %v2578_v50, %v2129_v54  ;;  %v2132_v61 = vadd.f32 %v2559_v55, %v2465_v23 }
 0xb60   : > { %v2173_v62 = vadd.f32 %v2581_v56, %v2132_v61  ;;  %v2176_v63 = vadd.f32 %v2170_v60, %v3886_v41 }
 0xb62   : > { %2180 = vadd.xlane.f32.xlu1 %v2176_v63  ;;  %v2177_v2 = vadd.f32 %v2173_v62, %v3888_v42 }
 0xb64   : > { %2182 = vadd.xlane.f32.xlu0 %v2177_v2 }
 0xbef   : > { %v2181_v3 = vpop.xlane.xlu1 %2180 }
 0xbf0   : > { %v2184_v4 = vmul.f32 0.0078125, %v2181_v3 }
 0xbf1   : > { %v2183_v5 = vpop.xlane.xlu0 %2182 }
 0xbf2   : > { %v2186_v6 = vsub.f32 %v2176_v63, %v2184_v4  ;;  %v2185_v7 = vmul.f32 0.0078125, %v2183_v5 }
 0xbf4   : > { %v2187_v8 = vsub.f32 %v2177_v2, %v2185_v7  ;;  %v2188_v9 = vmul.f32 %v2186_v6, %v2186_v6 }
 0xbf6   : > { %2190 = vadd.xlane.f32.xlu1 %v2188_v9  ;;  %v2189_v10 = vmul.f32 %v2187_v8, %v2187_v8 }
 0xbf8   : > { %2192 = vadd.xlane.f32.xlu0 %v2189_v10 }
 0xc83   : > { %v2191_v59 = vpop.xlane.xlu1 %2190 }
 0xc84   : > { %v2194_v11 = vmul.f32 0.0078125, %v2191_v59 }
 0xc85   : > { %v2193_v12 = vpop.xlane.xlu0 %2192 }
 0xc86   : > { %v2196_v13 = vadd.f32 1e-05, %v2194_v11  ;;  %v2195_v41 = vmul.f32 0.0078125, %v2193_v12 }
 0xc88   : > { %2933 = vrsqrt.f32 %v2196_v13  ;;  %v2197_v14 = vadd.f32 1e-05, %v2195_v41 }
 0xc8a   : > { %2935 = vrsqrt.f32 %v2197_v14 }
 0xc92   : > { %v2934_v42 = vpop.eup %2933 }
 0xc93   : > { %v2200_v16 = vmul.f32 %v2934_v42, %v2186_v6 }
 0xc94   : > { %v2936_v17 = vpop.eup %2935 }
 0xc95   : > { %v2208_v58 = vmul.f32 %v2498_v15, %v2200_v16  ;;  %v2201_v19 = vmul.f32 %v2936_v17, %v2187_v8 }
 0xc97   : > { %v2216_v20 = vadd.f32 %v2499_v18, %v2208_v58  ;;  %v2209_v21 = vmul.f32 %v2498_v15, %v2201_v19 }
 0xc99   : > { %2218 = vst [vmem:[%s557_s25] sm:$0xff] %v2216_v20  ;;  %v2217_v22 = vadd.f32 %v2499_v18, %v2209_v21 }
 0xc9b   : > { %2219 = vst [vmem:[%s557_s25 + $0x8] sm:$0xff] %v2217_v22 }
 0xc9c PF: > { %s3948_s27 = sld [smem:[#allocation22_spill]] }
 0xca2   : > { %s28_s25 = sadd.s32 1, %s3948_s27  }
 0xca3   : > { %p25_p11 = scmp.ge.s32.totalorder %s28_s25, 4  }
 0xca5   :  { %27 = sbr.rel (!%p25_p11) target bundleno = 8 (0x8), region = 139 }
 0xcac   :  { %2241 = vsyncpa [#allocation4], 1 }
 0xcad   :  { %2243 = vsyncpa [#allocation4 + $0x1], 1 }
 0xcae   :  { %2244 = vsyncpa [#allocation6], 1 }
 0xcaf   :  { %2245 = vsyncpa [#allocation9], 1 }
 0xcb0   :  { %2246 = vsyncpa [#allocation12], 1 }
 0xcb1   :  { %2247 = vsyncpa [#allocation15], 1 }

</bundles_post_ra>
